<compile_context>
chip_gen: v6e
topology: v6e:2x2x1
jax: 0.10.0
libtpu: 0.0.40
codegen_flags: <defaults>
</compile_context>

<pallas_src>
import math
from functools import partial

import numpy as np
import jax
import jax.numpy as jnp
from jax import lax
from jax.experimental import pallas as pl
from jax.experimental.pallas import tpu as pltpu

UP_RATIO = 2     # Activation1d up/down ratio
FILT_K = 12      # kaiser-sinc kernel size (BigVGAN alias-free default)
CONV_K = 7       # first WNConv1d kernel size
ACT_PAD = 3      # input halo (per side) actually consumed by one fused Activation1d


# ---------------------------------------------------------------------------
# alias_free_torch.kaiser_sinc_filter1d  (numpy, compile-time constant)
# ---------------------------------------------------------------------------
def kaiser_sinc_filter1d(cutoff: float, half_width: float, kernel_size: int) -> np.ndarray:
    even = kernel_size % 2 == 0
    half_size = kernel_size // 2
    delta_f = 4.0 * half_width
    A = 2.285 * (half_size - 1) * math.pi * delta_f + 7.95
    if A > 50.0:
        beta = 0.1102 * (A - 8.7)
    elif A >= 21.0:
        beta = 0.5842 * (A - 21.0) ** 0.4 + 0.07886 * (A - 21.0)
    else:
        beta = 0.0
    window = np.kaiser(kernel_size, beta)
    time = (np.arange(-half_size, half_size) + 0.5) if even else (np.arange(kernel_size) - half_size)
    filt = 2.0 * cutoff * window * np.sinc(2.0 * cutoff * time)
    filt = filt / filt.sum()
    return filt.astype(np.float32)


# Same filter is used by UpSample1d and DownSample1d (cutoff=0.5/r, half_width=0.6/r).
_FILT = tuple(float(v) for v in kaiser_sinc_filter1d(0.5 / UP_RATIO, 0.6 / UP_RATIO, FILT_K))


# ---------------------------------------------------------------------------
# In-kernel fused Activation1d(SnakeBeta)
# ---------------------------------------------------------------------------
def _fused_activation1d(upad_ref, exp_alpha, inv_beta, p_ref, q_ref, T):
    """2x sinc upsample -> SnakeBeta -> 2x sinc downsample, fully in VMEM.

    upad_ref : (C, T+6) input edge-replicated by 3 on each side (VMEM ref).
    p_ref/q_ref : (C, T+5) VMEM scratch holding the two polyphase branches of the
      stride-2 low-pass; they encode the replicate-(5,6) padding of the 2x-rate signal:
        P[m] = y_clamped[2m-5],  Q[m] = y_clamped[2m-4]
    Returns the (C, T) float32 activation output as a register value.
    """
    C = upad_ref.shape[0]

    # polyphase upsample (= ratio * conv_transpose1d(stride=2, kaiser-sinc) cropped);
    # tap windows are read as ref-side slices to keep vreg pressure low.
    even = jnp.zeros((C, T), jnp.float32)
    odd = jnp.zeros((C, T), jnp.float32)
    for a in range(FILT_K // 2):
        even = even + _FILT[2 * a + 1] * upad_ref[:, 5 - a: 5 - a + T]
        odd = odd + _FILT[2 * a] * upad_ref[:, 6 - a: 6 - a + T]
    even = even * float(UP_RATIO)
    odd = odd * float(UP_RATIO)

    # SnakeBeta (alpha_logscale=True):  y + 1/(exp(beta)+1e-9) * sin(exp(alpha)*y)^2
    even = even + inv_beta * jnp.square(jnp.sin(exp_alpha * even))
    odd = odd + inv_beta * jnp.square(jnp.sin(exp_alpha * odd))

    # Build P / Q phases (replicate padding of the 2x-rate signal at the true edges).
    p_ref[:, 0:3] = jnp.broadcast_to(even[:, 0:1], (C, 3))
    p_ref[:, 3:3 + T] = odd
    p_ref[:, 3 + T:5 + T] = jnp.broadcast_to(odd[:, T - 1:T], (C, 2))
    q_ref[:, 0:2] = jnp.broadcast_to(even[:, 0:1], (C, 2))
    q_ref[:, 2:2 + T] = even
    q_ref[:, 2 + T:5 + T] = jnp.broadcast_to(odd[:, T - 1:T], (C, 3))

    # stride-2 depthwise low-pass:  out[t] = sum_a filt[2a]*P[t+a] + filt[2a+1]*Q[t+a]
    acc = jnp.zeros((C, T), jnp.float32)
    for a in range(FILT_K // 2):
        acc = acc + _FILT[2 * a] * p_ref[:, a: a + T]
        acc = acc + _FILT[2 * a + 1] * q_ref[:, a: a + T]
    return acc


# ---------------------------------------------------------------------------
# Fused ResidualUnit kernel (one grid step = one batch element)
# ---------------------------------------------------------------------------
def _residual_unit_kernel(xpad_ref, ea1_ref, ib1_ref, w1_ref, b1_ref,
                          ea2_ref, ib2_ref, w2_ref, b2_ref,
                          out_ref,
                          p_ref, q_ref, h1pad_ref, slab_ref, h2pad_ref,
                          *, dilation, use_bf16):
    C, T = out_ref.shape
    pad = (CONV_K - 1) * dilation // 2          # = 3 * dilation

    # ---- Activation1d #1 ---------------------------------------------------
    h1 = _fused_activation1d(xpad_ref, ea1_ref[...], ib1_ref[...], p_ref, q_ref, T)

    # ---- WNConv1d(k=7, dilation) as a single im2col MXU contraction --------
    # zero-padded act1 output (Conv1d padding = 3*dilation)
    h1pad_ref[:, 0:pad] = jnp.zeros((C, pad), jnp.float32)
    h1pad_ref[:, pad:pad + T] = h1
    h1pad_ref[:, pad + T:2 * pad + T] = jnp.zeros((C, pad), jnp.float32)
    # im2col slab: row block k holds the input shifted by tap k
    for k in range(CONV_K):
        slab_ref[k * C:(k + 1) * C, :] = h1pad_ref[:, k * dilation: k * dilation + T]
    slab = slab_ref[...]
    if use_bf16:
        slab = slab.astype(jnp.bfloat16)
    h2 = jnp.dot(w1_ref[...], slab, preferred_element_type=jnp.float32) + b1_ref[...]

    # ---- Activation1d #2 (edge-replicate conv7 output by 3 into scratch) ---
    h2pad_ref[:, 0:3] = jnp.broadcast_to(h2[:, 0:1], (C, 3))
    h2pad_ref[:, 3:3 + T] = h2
    h2pad_ref[:, 3 + T:6 + T] = jnp.broadcast_to(h2[:, T - 1:T], (C, 3))
    h3 = _fused_activation1d(h2pad_ref, ea2_ref[...], ib2_ref[...], p_ref, q_ref, T)

    # ---- WNConv1d(k=1) + residual add --------------------------------------
    if use_bf16:
        h3 = h3.astype(jnp.bfloat16)
    out_ref[...] = (xpad_ref[:, ACT_PAD:ACT_PAD + T]
                    + jnp.dot(w2_ref[...], h3, preferred_element_type=jnp.float32)
                    + b2_ref[...])


# ---------------------------------------------------------------------------
# Wrapper
# ---------------------------------------------------------------------------
def _bcast_spec(shape):
    n = len(shape)
    return pl.BlockSpec(shape, lambda b: (0,) * n)   # batch-invariant parameter


def residual_unit_forward(x, params, dilation, *, use_bf16=True):
    B, C, T = x.shape
    # Edge-replicate halo consumed by the first Activation1d (UpSample1d replicate pad).
    xpad = jnp.pad(x, ((0, 0), (0, 0), (ACT_PAD, ACT_PAD)), mode="edge")

    # Snake params: fold the exp / reciprocal on the host side.
    ea1 = jnp.exp(params["alpha1"]).reshape(C, 1)
    ib1 = (1.0 / (jnp.exp(params["beta1"]) + 1e-9)).reshape(C, 1)
    ea2 = jnp.exp(params["alpha2"]).reshape(C, 1)
    ib2 = (1.0 / (jnp.exp(params["beta2"]) + 1e-9)).reshape(C, 1)

    # im2col layout of the weight-normalised conv7 weights: (C_out, K*C_in)
    w1 = jnp.transpose(params["w1"], (0, 2, 1)).reshape(C, CONV_K * C)
    w2 = params["w2"][:, :, 0]
    if use_bf16:
        w1 = w1.astype(jnp.bfloat16)
        w2 = w2.astype(jnp.bfloat16)
    b1 = params["b1"].reshape(C, 1)
    b2 = params["b2"].reshape(C, 1)

    pad = (CONV_K - 1) * dilation // 2
    kernel = partial(_residual_unit_kernel, dilation=dilation, use_bf16=use_bf16)
    return pl.pallas_call(
        kernel,
        grid=(B,),
        in_specs=[
            pl.BlockSpec((None, C, T + 2 * ACT_PAD), lambda b: (b, 0, 0)),   # xpad
            _bcast_spec((C, 1)), _bcast_spec((C, 1)),                        # ea1, ib1
            _bcast_spec((C, CONV_K * C)), _bcast_spec((C, 1)),               # w1, b1
            _bcast_spec((C, 1)), _bcast_spec((C, 1)),                        # ea2, ib2
            _bcast_spec((C, C)), _bcast_spec((C, 1)),                        # w2, b2
        ],
        out_specs=pl.BlockSpec((None, C, T), lambda b: (b, 0, 0)),
        out_shape=jax.ShapeDtypeStruct((B, C, T), jnp.float32),
        scratch_shapes=[
            pltpu.VMEM((C, T + 5), jnp.float32),            # P phase
            pltpu.VMEM((C, T + 5), jnp.float32),            # Q phase
            pltpu.VMEM((C, T + 2 * pad), jnp.float32),      # zero-padded conv7 input
            pltpu.VMEM((CONV_K * C, T), jnp.float32),       # im2col slab
            pltpu.VMEM((C, T + 2 * ACT_PAD), jnp.float32),  # edge-padded act2 input
        ],
        compiler_params=pltpu.CompilerParams(
            dimension_semantics=("parallel",),              # megacore / v7x dual-TC
            vmem_limit_bytes=48 * 1024 * 1024,
        ),
    )(xpad, ea1, ib1, w1, b1, ea2, ib2, w2, b2)


# ---------------------------------------------------------------------------
# Deterministic synthetic parameters (shapes from ResidualUnit.__init__)
# ---------------------------------------------------------------------------
def init_params(key, dim):
    ks = jax.random.split(key, 10)

    def wn_weight(kv, kg, shape):
        v = 0.1 * jax.random.normal(kv, shape, jnp.float32)
        g = 1.0 + 0.1 * jax.random.normal(kg, (shape[0], 1, 1), jnp.float32)
        norm = jnp.sqrt(jnp.sum(v * v, axis=(1, 2), keepdims=True))
        return g * v / norm                      # weight_norm (dim=0)

    return dict(
        alpha1=0.1 * jax.random.normal(ks[0], (dim,), jnp.float32),
        beta1=0.1 * jax.random.normal(ks[1], (dim,), jnp.float32),
        alpha2=0.1 * jax.random.normal(ks[2], (dim,), jnp.float32),
        beta2=0.1 * jax.random.normal(ks[3], (dim,), jnp.float32),
        w1=wn_weight(ks[4], ks[5], (dim, dim, CONV_K)),   # Conv1d(dim, dim, 7, dilation)
        b1=0.1 * jax.random.normal(ks[6], (dim,), jnp.float32),
        w2=wn_weight(ks[7], ks[8], (dim, dim, 1)),        # Conv1d(dim, dim, 1)
        b2=0.1 * jax.random.normal(ks[9], (dim,), jnp.float32),
    )


# ---------------------------------------------------------------------------
# Pure-JAX reference (lax convolutions) for correctness checks
# ---------------------------------------------------------------------------
def _ref_snake(h, alpha, beta):
    a = jnp.exp(alpha)[None, :, None]
    b = jnp.exp(beta)[None, :, None]
    return h + (1.0 / (b + 1e-9)) * jnp.sin(a * h) ** 2


def _ref_act_block(x, alpha, beta, filt):
    B, C, T = x.shape
    hp = jnp.pad(x, ((0, 0), (0, 0), (5, 5)), mode="edge")
    w_up = jnp.broadcast_to(jnp.flip(filt)[None, None, :], (C, 1, FILT_K))
    y = lax.conv_general_dilated(hp, w_up, window_strides=(1,),
                                 padding=((FILT_K - 1, FILT_K - 1),), lhs_dilation=(2,),
                                 dimension_numbers=("NCH", "OIH", "NCH"),
                                 feature_group_count=C)
    y = float(UP_RATIO) * y[..., 15:-15]
    y = _ref_snake(y, alpha, beta)
    yp = jnp.pad(y, ((0, 0), (0, 0), (5, 6)), mode="edge")
    w_dn = jnp.broadcast_to(filt[None, None, :], (C, 1, FILT_K))
    return lax.conv_general_dilated(yp, w_dn, window_strides=(2,), padding=((0, 0),),
                                    dimension_numbers=("NCH", "OIH", "NCH"),
                                    feature_group_count=C)


def _ref_wnconv(h, w, b, dilation, pad, bf16):
    lhs, rhs = (h.astype(jnp.bfloat16), w.astype(jnp.bfloat16)) if bf16 else (h, w)
    out = lax.conv_general_dilated(lhs, rhs, (1,), ((pad, pad),), rhs_dilation=(dilation,),
                                   dimension_numbers=("NCH", "OIH", "NCH"),
                                   preferred_element_type=jnp.float32)
    return out + b[None, :, None]


def _ref_forward(x, params, dilation, filt, bf16):
    pad = (CONV_K - 1) * dilation // 2
    h = _ref_act_block(x, params["alpha1"], params["beta1"], filt)
    h = _ref_wnconv(h, params["w1"], params["b1"], dilation, pad, bf16)
    h = _ref_act_block(h, params["alpha2"], params["beta2"], filt)
    h = _ref_wnconv(h, params["w2"], params["b2"], 1, 0, bf16)
    return x + h


if __name__ == "__main__":
    B, DIM, T = 2, 16, 16
    key = jax.random.PRNGKey(0)
    kx, kp = jax.random.split(key)
    x = jax.random.normal(kx, (B, DIM, T), jnp.float32)
    params = init_params(kp, DIM)
    filt = jnp.asarray(_FILT, jnp.float32)

    for dilation in (1, 3):
        # exact-semantics check (f32 matmuls)
        out_f32 = jax.block_until_ready(residual_unit_forward(x, params, dilation, use_bf16=False))
        assert out_f32.shape == (B, DIM, T) and out_f32.dtype == jnp.float32
        ref_f32 = jax.block_until_ready(_ref_forward(x, params, dilation, filt, bf16=False))
        err = float(jnp.max(jnp.abs(out_f32 - ref_f32)))
        assert err < 1e-4, f"f32 mismatch (dilation={dilation}): {err}"

        # default fast path: bf16 MXU inputs, f32 accumulation
        out_bf = jax.block_until_ready(residual_unit_forward(x, params, dilation, use_bf16=True))
        ref_bf = jax.block_until_ready(_ref_forward(x, params, dilation, filt, bf16=True))
        err_bf = float(jnp.max(jnp.abs(out_bf - ref_bf)))
        assert err_bf < 2e-3, f"bf16 mismatch (dilation={dilation}): {err_bf}"
        drift = float(jnp.max(jnp.abs(out_bf - ref_f32)))
        assert drift < 5e-2, f"bf16-vs-f32 drift too large (dilation={dilation}): {drift}"

    print("KERNEL_OK")
</pallas_src>

<mosaic_0001>
module attributes {stable_mosaic.version = 11 : i64} {
  func.func @_residual_unit_kernel(%arg0: i32, %arg1: memref<1x16x22xf32, #tpu.memory_space<vmem>>, %arg2: memref<16x1xf32, #tpu.memory_space<vmem>>, %arg3: memref<16x1xf32, #tpu.memory_space<vmem>>, %arg4: memref<16x112xf32, #tpu.memory_space<vmem>>, %arg5: memref<16x1xf32, #tpu.memory_space<vmem>>, %arg6: memref<16x1xf32, #tpu.memory_space<vmem>>, %arg7: memref<16x1xf32, #tpu.memory_space<vmem>>, %arg8: memref<16x16xf32, #tpu.memory_space<vmem>>, %arg9: memref<16x1xf32, #tpu.memory_space<vmem>>, %arg10: memref<1x16x16xf32, #tpu.memory_space<vmem>>, %arg11: memref<16x21xf32, #tpu.memory_space<vmem>>, %arg12: memref<16x21xf32, #tpu.memory_space<vmem>>, %arg13: memref<16x22xf32, #tpu.memory_space<vmem>>, %arg14: memref<112x16xf32, #tpu.memory_space<vmem>>, %arg15: memref<16x22xf32, #tpu.memory_space<vmem>>) attributes {dimension_semantics = [#tpu.dimension_semantics<parallel>], iteration_bounds = array<i64: 2>, scalar_prefetch = 0 : i64, scratch_operands = 5 : i64, tpu.core_type = #tpu.core_type<tc>, window_params = [{transform_indices = @transform_0, window_bounds = array<i64: 1, 16, 22>}, {pipeline_mode = #tpu.pipeline_mode<synchronous>, transform_indices = @transform_1, window_bounds = array<i64: 16, 1>}, {pipeline_mode = #tpu.pipeline_mode<synchronous>, transform_indices = @transform_2, window_bounds = array<i64: 16, 1>}, {pipeline_mode = #tpu.pipeline_mode<synchronous>, transform_indices = @transform_3, window_bounds = array<i64: 16, 112>}, {pipeline_mode = #tpu.pipeline_mode<synchronous>, transform_indices = @transform_4, window_bounds = array<i64: 16, 1>}, {pipeline_mode = #tpu.pipeline_mode<synchronous>, transform_indices = @transform_5, window_bounds = array<i64: 16, 1>}, {pipeline_mode = #tpu.pipeline_mode<synchronous>, transform_indices = @transform_6, window_bounds = array<i64: 16, 1>}, {pipeline_mode = #tpu.pipeline_mode<synchronous>, transform_indices = @transform_7, window_bounds = array<i64: 16, 16>}, {pipeline_mode = #tpu.pipeline_mode<synchronous>, transform_indices = @transform_8, window_bounds = array<i64: 16, 1>}, {transform_indices = @transform_9, window_bounds = array<i64: 1, 16, 16>}]} {
    %c0 = arith.constant 0 : index
    %c0_0 = arith.constant 0 : index
    %0 = vector.load %arg2[%c0, %c0_0] : memref<16x1xf32, #tpu.memory_space<vmem>>, vector<16x1xf32>
    %c0_1 = arith.constant 0 : index
    %c0_2 = arith.constant 0 : index
    %1 = vector.load %arg3[%c0_1, %c0_2] : memref<16x1xf32, #tpu.memory_space<vmem>>, vector<16x1xf32>
    %cst = arith.constant 0.000000e+00 : f32
    %2 = vector.broadcast %cst : f32 to vector<16x16xf32>
    %cst_3 = arith.constant 0.000000e+00 : f32
    %3 = vector.broadcast %cst_3 : f32 to vector<16x16xf32>
    %c0_4 = arith.constant 0 : index
    %c0_5 = arith.constant 0 : index
    %c5 = arith.constant 5 : index
    %4 = vector.load %arg1[%c0_4, %c0_5, %c5] : memref<1x16x22xf32, #tpu.memory_space<vmem>>, vector<1x16x16xf32>
    %5 = vector.shape_cast %4 : vector<1x16x16xf32> to vector<16x16xf32>
    %cst_6 = arith.constant 0.00938946381 : f32
    %6 = vector.broadcast %cst_6 : f32 to vector<16x16xf32>
    %7 = arith.mulf %6, %5 : vector<16x16xf32>
    %8 = arith.addf %2, %7 : vector<16x16xf32>
    %c0_7 = arith.constant 0 : index
    %c0_8 = arith.constant 0 : index
    %c6 = arith.constant 6 : index
    %9 = vector.load %arg1[%c0_7, %c0_8, %c6] : memref<1x16x22xf32, #tpu.memory_space<vmem>>, vector<1x16x16xf32>
    %10 = vector.shape_cast %9 : vector<1x16x16xf32> to vector<16x16xf32>
    %cst_9 = arith.constant 0.00202896656 : f32
    %11 = vector.broadcast %cst_9 : f32 to vector<16x16xf32>
    %12 = arith.mulf %11, %10 : vector<16x16xf32>
    %13 = arith.addf %3, %12 : vector<16x16xf32>
    %c0_10 = arith.constant 0 : index
    %c0_11 = arith.constant 0 : index
    %c4 = arith.constant 4 : index
    %14 = vector.load %arg1[%c0_10, %c0_11, %c4] : memref<1x16x22xf32, #tpu.memory_space<vmem>>, vector<1x16x16xf32>
    %15 = vector.shape_cast %14 : vector<1x16x16xf32> to vector<16x16xf32>
    %cst_12 = arith.constant -0.0576573759 : f32
    %16 = vector.broadcast %cst_12 : f32 to vector<16x16xf32>
    %17 = arith.mulf %16, %15 : vector<16x16xf32>
    %18 = arith.addf %8, %17 : vector<16x16xf32>
    %c0_13 = arith.constant 0 : index
    %c0_14 = arith.constant 0 : index
    %c5_15 = arith.constant 5 : index
    %19 = vector.load %arg1[%c0_13, %c0_14, %c5_15] : memref<1x16x22xf32, #tpu.memory_space<vmem>>, vector<1x16x16xf32>
    %20 = vector.shape_cast %19 : vector<1x16x16xf32> to vector<16x16xf32>
    %cst_16 = arith.constant -0.0255434643 : f32
    %21 = vector.broadcast %cst_16 : f32 to vector<16x16xf32>
    %22 = arith.mulf %21, %20 : vector<16x16xf32>
    %23 = arith.addf %13, %22 : vector<16x16xf32>
    %c0_17 = arith.constant 0 : index
    %c0_18 = arith.constant 0 : index
    %c3 = arith.constant 3 : index
    %24 = vector.load %arg1[%c0_17, %c0_18, %c3] : memref<1x16x22xf32, #tpu.memory_space<vmem>>, vector<1x16x16xf32>
    %25 = vector.shape_cast %24 : vector<1x16x16xf32> to vector<16x16xf32>
    %cst_19 = arith.constant 0.443209797 : f32
    %26 = vector.broadcast %cst_19 : f32 to vector<16x16xf32>
    %27 = arith.mulf %26, %25 : vector<16x16xf32>
    %28 = arith.addf %18, %27 : vector<16x16xf32>
    %c0_20 = arith.constant 0 : index
    %c0_21 = arith.constant 0 : index
    %c4_22 = arith.constant 4 : index
    %29 = vector.load %arg1[%c0_20, %c0_21, %c4_22] : memref<1x16x22xf32, #tpu.memory_space<vmem>>, vector<1x16x16xf32>
    %30 = vector.shape_cast %29 : vector<1x16x16xf32> to vector<16x16xf32>
    %cst_23 = arith.constant 0.128572613 : f32
    %31 = vector.broadcast %cst_23 : f32 to vector<16x16xf32>
    %32 = arith.mulf %31, %30 : vector<16x16xf32>
    %33 = arith.addf %23, %32 : vector<16x16xf32>
    %c0_24 = arith.constant 0 : index
    %c0_25 = arith.constant 0 : index
    %c2 = arith.constant 2 : index
    %34 = vector.load %arg1[%c0_24, %c0_25, %c2] : memref<1x16x22xf32, #tpu.memory_space<vmem>>, vector<1x16x16xf32>
    %35 = vector.shape_cast %34 : vector<1x16x16xf32> to vector<16x16xf32>
    %cst_26 = arith.constant 0.128572613 : f32
    %36 = vector.broadcast %cst_26 : f32 to vector<16x16xf32>
    %37 = arith.mulf %36, %35 : vector<16x16xf32>
    %38 = arith.addf %28, %37 : vector<16x16xf32>
    %c0_27 = arith.constant 0 : index
    %c0_28 = arith.constant 0 : index
    %c3_29 = arith.constant 3 : index
    %39 = vector.load %arg1[%c0_27, %c0_28, %c3_29] : memref<1x16x22xf32, #tpu.memory_space<vmem>>, vector<1x16x16xf32>
    %40 = vector.shape_cast %39 : vector<1x16x16xf32> to vector<16x16xf32>
    %cst_30 = arith.constant 0.443209797 : f32
    %41 = vector.broadcast %cst_30 : f32 to vector<16x16xf32>
    %42 = arith.mulf %41, %40 : vector<16x16xf32>
    %43 = arith.addf %33, %42 : vector<16x16xf32>
    %c0_31 = arith.constant 0 : index
    %c0_32 = arith.constant 0 : index
    %c1 = arith.constant 1 : index
    %44 = vector.load %arg1[%c0_31, %c0_32, %c1] : memref<1x16x22xf32, #tpu.memory_space<vmem>>, vector<1x16x16xf32>
    %45 = vector.shape_cast %44 : vector<1x16x16xf32> to vector<16x16xf32>
    %cst_33 = arith.constant -0.0255434643 : f32
    %46 = vector.broadcast %cst_33 : f32 to vector<16x16xf32>
    %47 = arith.mulf %46, %45 : vector<16x16xf32>
    %48 = arith.addf %38, %47 : vector<16x16xf32>
    %c0_34 = arith.constant 0 : index
    %c0_35 = arith.constant 0 : index
    %c2_36 = arith.constant 2 : index
    %49 = vector.load %arg1[%c0_34, %c0_35, %c2_36] : memref<1x16x22xf32, #tpu.memory_space<vmem>>, vector<1x16x16xf32>
    %50 = vector.shape_cast %49 : vector<1x16x16xf32> to vector<16x16xf32>
    %cst_37 = arith.constant -0.0576573759 : f32
    %51 = vector.broadcast %cst_37 : f32 to vector<16x16xf32>
    %52 = arith.mulf %51, %50 : vector<16x16xf32>
    %53 = arith.addf %43, %52 : vector<16x16xf32>
    %c0_38 = arith.constant 0 : index
    %c0_39 = arith.constant 0 : index
    %c0_40 = arith.constant 0 : index
    %54 = vector.load %arg1[%c0_38, %c0_39, %c0_40] : memref<1x16x22xf32, #tpu.memory_space<vmem>>, vector<1x16x16xf32>
    %55 = vector.shape_cast %54 : vector<1x16x16xf32> to vector<16x16xf32>
    %cst_41 = arith.constant 0.00202896656 : f32
    %56 = vector.broadcast %cst_41 : f32 to vector<16x16xf32>
    %57 = arith.mulf %56, %55 : vector<16x16xf32>
    %58 = arith.addf %48, %57 : vector<16x16xf32>
    %c0_42 = arith.constant 0 : index
    %c0_43 = arith.constant 0 : index
    %c1_44 = arith.constant 1 : index
    %59 = vector.load %arg1[%c0_42, %c0_43, %c1_44] : memref<1x16x22xf32, #tpu.memory_space<vmem>>, vector<1x16x16xf32>
    %60 = vector.shape_cast %59 : vector<1x16x16xf32> to vector<16x16xf32>
    %cst_45 = arith.constant 0.00938946381 : f32
    %61 = vector.broadcast %cst_45 : f32 to vector<16x16xf32>
    %62 = arith.mulf %61, %60 : vector<16x16xf32>
    %63 = arith.addf %53, %62 : vector<16x16xf32>
    %cst_46 = arith.constant 2.000000e+00 : f32
    %64 = vector.broadcast %cst_46 : f32 to vector<16x16xf32>
    %65 = arith.mulf %58, %64 : vector<16x16xf32>
    %cst_47 = arith.constant 2.000000e+00 : f32
    %66 = vector.broadcast %cst_47 : f32 to vector<16x16xf32>
    %67 = arith.mulf %63, %66 : vector<16x16xf32>
    %68 = vector.broadcast %0 : vector<16x1xf32> to vector<16x16xf32>
    %69 = arith.mulf %68, %65 : vector<16x16xf32>
    %70 = math.sin %69 : vector<16x16xf32>
    %71 = arith.mulf %70, %70 : vector<16x16xf32>
    %72 = vector.broadcast %1 : vector<16x1xf32> to vector<16x16xf32>
    %73 = arith.mulf %72, %71 : vector<16x16xf32>
    %74 = arith.addf %65, %73 : vector<16x16xf32>
    %75 = vector.broadcast %0 : vector<16x1xf32> to vector<16x16xf32>
    %76 = arith.mulf %75, %67 : vector<16x16xf32>
    %77 = math.sin %76 : vector<16x16xf32>
    %78 = arith.mulf %77, %77 : vector<16x16xf32>
    %79 = vector.broadcast %1 : vector<16x1xf32> to vector<16x16xf32>
    %80 = arith.mulf %79, %78 : vector<16x16xf32>
    %81 = arith.addf %67, %80 : vector<16x16xf32>
    %82 = vector.extract_strided_slice %74 {offsets = [0, 0], sizes = [16, 1], strides = [1, 1]} : vector<16x16xf32> to vector<16x1xf32>
    %83 = vector.shape_cast %82 : vector<16x1xf32> to vector<16x1xf32>
    %84 = vector.broadcast %83 : vector<16x1xf32> to vector<16x3xf32>
    %c0_48 = arith.constant 0 : index
    %c0_49 = arith.constant 0 : index
    %85 = vector.load %arg11[%c0_48, %c0_49] : memref<16x21xf32, #tpu.memory_space<vmem>>, vector<16x3xf32>
    tpu.vector_store %arg11[%c0_48, %c0_49], %84 {strides = array<i32>} : memref<16x21xf32, #tpu.memory_space<vmem>>, vector<16x3xf32>,
    %c0_50 = arith.constant 0 : index
    %c3_51 = arith.constant 3 : index
    %86 = vector.load %arg11[%c0_50, %c3_51] : memref<16x21xf32, #tpu.memory_space<vmem>>, vector<16x16xf32>
    tpu.vector_store %arg11[%c0_50, %c3_51], %81 {strides = array<i32>} : memref<16x21xf32, #tpu.memory_space<vmem>>, vector<16x16xf32>,
    %87 = vector.extract_strided_slice %81 {offsets = [0, 15], sizes = [16, 1], strides = [1, 1]} : vector<16x16xf32> to vector<16x1xf32>
    %88 = vector.shape_cast %87 : vector<16x1xf32> to vector<16x1xf32>
    %89 = vector.broadcast %88 : vector<16x1xf32> to vector<16x2xf32>
    %c0_52 = arith.constant 0 : index
    %c19 = arith.constant 19 : index
    %90 = vector.load %arg11[%c0_52, %c19] : memref<16x21xf32, #tpu.memory_space<vmem>>, vector<16x2xf32>
    tpu.vector_store %arg11[%c0_52, %c19], %89 {strides = array<i32>} : memref<16x21xf32, #tpu.memory_space<vmem>>, vector<16x2xf32>,
    %91 = vector.extract_strided_slice %74 {offsets = [0, 0], sizes = [16, 1], strides = [1, 1]} : vector<16x16xf32> to vector<16x1xf32>
    %92 = vector.shape_cast %91 : vector<16x1xf32> to vector<16x1xf32>
    %93 = vector.broadcast %92 : vector<16x1xf32> to vector<16x2xf32>
    %c0_53 = arith.constant 0 : index
    %c0_54 = arith.constant 0 : index
    %94 = vector.load %arg12[%c0_53, %c0_54] : memref<16x21xf32, #tpu.memory_space<vmem>>, vector<16x2xf32>
    tpu.vector_store %arg12[%c0_53, %c0_54], %93 {strides = array<i32>} : memref<16x21xf32, #tpu.memory_space<vmem>>, vector<16x2xf32>,
    %c0_55 = arith.constant 0 : index
    %c2_56 = arith.constant 2 : index
    %95 = vector.load %arg12[%c0_55, %c2_56] : memref<16x21xf32, #tpu.memory_space<vmem>>, vector<16x16xf32>
    tpu.vector_store %arg12[%c0_55, %c2_56], %74 {strides = array<i32>} : memref<16x21xf32, #tpu.memory_space<vmem>>, vector<16x16xf32>,
    %96 = vector.extract_strided_slice %81 {offsets = [0, 15], sizes = [16, 1], strides = [1, 1]} : vector<16x16xf32> to vector<16x1xf32>
    %97 = vector.shape_cast %96 : vector<16x1xf32> to vector<16x1xf32>
    %98 = vector.broadcast %97 : vector<16x1xf32> to vector<16x3xf32>
    %c0_57 = arith.constant 0 : index
    %c18 = arith.constant 18 : index
    %99 = vector.load %arg12[%c0_57, %c18] : memref<16x21xf32, #tpu.memory_space<vmem>>, vector<16x3xf32>
    tpu.vector_store %arg12[%c0_57, %c18], %98 {strides = array<i32>} : memref<16x21xf32, #tpu.memory_space<vmem>>, vector<16x3xf32>,
    %cst_58 = arith.constant 0.000000e+00 : f32
    %100 = vector.broadcast %cst_58 : f32 to vector<16x16xf32>
    %c0_59 = arith.constant 0 : index
    %c0_60 = arith.constant 0 : index
    %101 = vector.load %arg11[%c0_59, %c0_60] : memref<16x21xf32, #tpu.memory_space<vmem>>, vector<16x16xf32>
    %cst_61 = arith.constant 0.00202896656 : f32
    %102 = vector.broadcast %cst_61 : f32 to vector<16x16xf32>
    %103 = arith.mulf %102, %101 : vector<16x16xf32>
    %104 = arith.addf %100, %103 : vector<16x16xf32>
    %c0_62 = arith.constant 0 : index
    %c0_63 = arith.constant 0 : index
    %105 = vector.load %arg12[%c0_62, %c0_63] : memref<16x21xf32, #tpu.memory_space<vmem>>, vector<16x16xf32>
    %cst_64 = arith.constant 0.00938946381 : f32
    %106 = vector.broadcast %cst_64 : f32 to vector<16x16xf32>
    %107 = arith.mulf %106, %105 : vector<16x16xf32>
    %108 = arith.addf %104, %107 : vector<16x16xf32>
    %c0_65 = arith.constant 0 : index
    %c1_66 = arith.constant 1 : index
    %109 = vector.load %arg11[%c0_65, %c1_66] : memref<16x21xf32, #tpu.memory_space<vmem>>, vector<16x16xf32>
    %cst_67 = arith.constant -0.0255434643 : f32
    %110 = vector.broadcast %cst_67 : f32 to vector<16x16xf32>
    %111 = arith.mulf %110, %109 : vector<16x16xf32>
    %112 = arith.addf %108, %111 : vector<16x16xf32>
    %c0_68 = arith.constant 0 : index
    %c1_69 = arith.constant 1 : index
    %113 = vector.load %arg12[%c0_68, %c1_69] : memref<16x21xf32, #tpu.memory_space<vmem>>, vector<16x16xf32>
    %cst_70 = arith.constant -0.0576573759 : f32
    %114 = vector.broadcast %cst_70 : f32 to vector<16x16xf32>
    %115 = arith.mulf %114, %113 : vector<16x16xf32>
    %116 = arith.addf %112, %115 : vector<16x16xf32>
    %c0_71 = arith.constant 0 : index
    %c2_72 = arith.constant 2 : index
    %117 = vector.load %arg11[%c0_71, %c2_72] : memref<16x21xf32, #tpu.memory_space<vmem>>, vector<16x16xf32>
    %cst_73 = arith.constant 0.128572613 : f32
    %118 = vector.broadcast %cst_73 : f32 to vector<16x16xf32>
    %119 = arith.mulf %118, %117 : vector<16x16xf32>
    %120 = arith.addf %116, %119 : vector<16x16xf32>
    %c0_74 = arith.constant 0 : index
    %c2_75 = arith.constant 2 : index
    %121 = vector.load %arg12[%c0_74, %c2_75] : memref<16x21xf32, #tpu.memory_space<vmem>>, vector<16x16xf32>
    %cst_76 = arith.constant 0.443209797 : f32
    %122 = vector.broadcast %cst_76 : f32 to vector<16x16xf32>
    %123 = arith.mulf %122, %121 : vector<16x16xf32>
    %124 = arith.addf %120, %123 : vector<16x16xf32>
    %c0_77 = arith.constant 0 : index
    %c3_78 = arith.constant 3 : index
    %125 = vector.load %arg11[%c0_77, %c3_78] : memref<16x21xf32, #tpu.memory_space<vmem>>, vector<16x16xf32>
    %cst_79 = arith.constant 0.443209797 : f32
    %126 = vector.broadcast %cst_79 : f32 to vector<16x16xf32>
    %127 = arith.mulf %126, %125 : vector<16x16xf32>
    %128 = arith.addf %124, %127 : vector<16x16xf32>
    %c0_80 = arith.constant 0 : index
    %c3_81 = arith.constant 3 : index
    %129 = vector.load %arg12[%c0_80, %c3_81] : memref<16x21xf32, #tpu.memory_space<vmem>>, vector<16x16xf32>
    %cst_82 = arith.constant 0.128572613 : f32
    %130 = vector.broadcast %cst_82 : f32 to vector<16x16xf32>
    %131 = arith.mulf %130, %129 : vector<16x16xf32>
    %132 = arith.addf %128, %131 : vector<16x16xf32>
    %c0_83 = arith.constant 0 : index
    %c4_84 = arith.constant 4 : index
    %133 = vector.load %arg11[%c0_83, %c4_84] : memref<16x21xf32, #tpu.memory_space<vmem>>, vector<16x16xf32>
    %cst_85 = arith.constant -0.0576573759 : f32
    %134 = vector.broadcast %cst_85 : f32 to vector<16x16xf32>
    %135 = arith.mulf %134, %133 : vector<16x16xf32>
    %136 = arith.addf %132, %135 : vector<16x16xf32>
    %c0_86 = arith.constant 0 : index
    %c4_87 = arith.constant 4 : index
    %137 = vector.load %arg12[%c0_86, %c4_87] : memref<16x21xf32, #tpu.memory_space<vmem>>, vector<16x16xf32>
    %cst_88 = arith.constant -0.0255434643 : f32
    %138 = vector.broadcast %cst_88 : f32 to vector<16x16xf32>
    %139 = arith.mulf %138, %137 : vector<16x16xf32>
    %140 = arith.addf %136, %139 : vector<16x16xf32>
    %c0_89 = arith.constant 0 : index
    %c5_90 = arith.constant 5 : index
    %141 = vector.load %arg11[%c0_89, %c5_90] : memref<16x21xf32, #tpu.memory_space<vmem>>, vector<16x16xf32>
    %cst_91 = arith.constant 0.00938946381 : f32
    %142 = vector.broadcast %cst_91 : f32 to vector<16x16xf32>
    %143 = arith.mulf %142, %141 : vector<16x16xf32>
    %144 = arith.addf %140, %143 : vector<16x16xf32>
    %c0_92 = arith.constant 0 : index
    %c5_93 = arith.constant 5 : index
    %145 = vector.load %arg12[%c0_92, %c5_93] : memref<16x21xf32, #tpu.memory_space<vmem>>, vector<16x16xf32>
    %cst_94 = arith.constant 0.00202896656 : f32
    %146 = vector.broadcast %cst_94 : f32 to vector<16x16xf32>
    %147 = arith.mulf %146, %145 : vector<16x16xf32>
    %148 = arith.addf %144, %147 : vector<16x16xf32>
    %cst_95 = arith.constant 0.000000e+00 : f32
    %149 = vector.broadcast %cst_95 : f32 to vector<16x3xf32>
    %c0_96 = arith.constant 0 : index
    %c0_97 = arith.constant 0 : index
    %150 = vector.load %arg13[%c0_96, %c0_97] : memref<16x22xf32, #tpu.memory_space<vmem>>, vector<16x3xf32>
    tpu.vector_store %arg13[%c0_96, %c0_97], %149 {strides = array<i32>} : memref<16x22xf32, #tpu.memory_space<vmem>>, vector<16x3xf32>,
    %c0_98 = arith.constant 0 : index
    %c3_99 = arith.constant 3 : index
    %151 = vector.load %arg13[%c0_98, %c3_99] : memref<16x22xf32, #tpu.memory_space<vmem>>, vector<16x16xf32>
    tpu.vector_store %arg13[%c0_98, %c3_99], %148 {strides = array<i32>} : memref<16x22xf32, #tpu.memory_space<vmem>>, vector<16x16xf32>,
    %cst_100 = arith.constant 0.000000e+00 : f32
    %152 = vector.broadcast %cst_100 : f32 to vector<16x3xf32>
    %c0_101 = arith.constant 0 : index
    %c19_102 = arith.constant 19 : index
    %153 = vector.load %arg13[%c0_101, %c19_102] : memref<16x22xf32, #tpu.memory_space<vmem>>, vector<16x3xf32>
    tpu.vector_store %arg13[%c0_101, %c19_102], %152 {strides = array<i32>} : memref<16x22xf32, #tpu.memory_space<vmem>>, vector<16x3xf32>,
    %c0_103 = arith.constant 0 : index
    %c0_104 = arith.constant 0 : index
    %154 = vector.load %arg13[%c0_103, %c0_104] : memref<16x22xf32, #tpu.memory_space<vmem>>, vector<16x16xf32>
    %c0_105 = arith.constant 0 : index
    %c0_106 = arith.constant 0 : index
    %155 = vector.load %arg14[%c0_105, %c0_106] : memref<112x16xf32, #tpu.memory_space<vmem>>, vector<16x16xf32>
    tpu.vector_store %arg14[%c0_105, %c0_106], %154 {strides = array<i32>} : memref<112x16xf32, #tpu.memory_space<vmem>>, vector<16x16xf32>,
    %c0_107 = arith.constant 0 : index
    %c1_108 = arith.constant 1 : index
    %156 = vector.load %arg13[%c0_107, %c1_108] : memref<16x22xf32, #tpu.memory_space<vmem>>, vector<16x16xf32>
    %c16 = arith.constant 16 : index
    %c0_109 = arith.constant 0 : index
    %157 = vector.load %arg14[%c16, %c0_109] : memref<112x16xf32, #tpu.memory_space<vmem>>, vector<16x16xf32>
    tpu.vector_store %arg14[%c16, %c0_109], %156 {strides = array<i32>} : memref<112x16xf32, #tpu.memory_space<vmem>>, vector<16x16xf32>,
    %c0_110 = arith.constant 0 : index
    %c2_111 = arith.constant 2 : index
    %158 = vector.load %arg13[%c0_110, %c2_111] : memref<16x22xf32, #tpu.memory_space<vmem>>, vector<16x16xf32>
    %c32 = arith.constant 32 : index
    %c0_112 = arith.constant 0 : index
    %159 = vector.load %arg14[%c32, %c0_112] : memref<112x16xf32, #tpu.memory_space<vmem>>, vector<16x16xf32>
    tpu.vector_store %arg14[%c32, %c0_112], %158 {strides = array<i32>} : memref<112x16xf32, #tpu.memory_space<vmem>>, vector<16x16xf32>,
    %c0_113 = arith.constant 0 : index
    %c3_114 = arith.constant 3 : index
    %160 = vector.load %arg13[%c0_113, %c3_114] : memref<16x22xf32, #tpu.memory_space<vmem>>, vector<16x16xf32>
    %c48 = arith.constant 48 : index
    %c0_115 = arith.constant 0 : index
    %161 = vector.load %arg14[%c48, %c0_115] : memref<112x16xf32, #tpu.memory_space<vmem>>, vector<16x16xf32>
    tpu.vector_store %arg14[%c48, %c0_115], %160 {strides = array<i32>} : memref<112x16xf32, #tpu.memory_space<vmem>>, vector<16x16xf32>,
    %c0_116 = arith.constant 0 : index
    %c4_117 = arith.constant 4 : index
    %162 = vector.load %arg13[%c0_116, %c4_117] : memref<16x22xf32, #tpu.memory_space<vmem>>, vector<16x16xf32>
    %c64 = arith.constant 64 : index
    %c0_118 = arith.constant 0 : index
    %163 = vector.load %arg14[%c64, %c0_118] : memref<112x16xf32, #tpu.memory_space<vmem>>, vector<16x16xf32>
    tpu.vector_store %arg14[%c64, %c0_118], %162 {strides = array<i32>} : memref<112x16xf32, #tpu.memory_space<vmem>>, vector<16x16xf32>,
    %c0_119 = arith.constant 0 : index
    %c5_120 = arith.constant 5 : index
    %164 = vector.load %arg13[%c0_119, %c5_120] : memref<16x22xf32, #tpu.memory_space<vmem>>, vector<16x16xf32>
    %c80 = arith.constant 80 : index
    %c0_121 = arith.constant 0 : index
    %165 = vector.load %arg14[%c80, %c0_121] : memref<112x16xf32, #tpu.memory_space<vmem>>, vector<16x16xf32>
    tpu.vector_store %arg14[%c80, %c0_121], %164 {strides = array<i32>} : memref<112x16xf32, #tpu.memory_space<vmem>>, vector<16x16xf32>,
    %c0_122 = arith.constant 0 : index
    %c6_123 = arith.constant 6 : index
    %166 = vector.load %arg13[%c0_122, %c6_123] : memref<16x22xf32, #tpu.memory_space<vmem>>, vector<16x16xf32>
    %c96 = arith.constant 96 : index
    %c0_124 = arith.constant 0 : index
    %167 = vector.load %arg14[%c96, %c0_124] : memref<112x16xf32, #tpu.memory_space<vmem>>, vector<16x16xf32>
    tpu.vector_store %arg14[%c96, %c0_124], %166 {strides = array<i32>} : memref<112x16xf32, #tpu.memory_space<vmem>>, vector<16x16xf32>,
    %c0_125 = arith.constant 0 : index
    %c0_126 = arith.constant 0 : index
    %168 = vector.load %arg14[%c0_125, %c0_126] : memref<112x16xf32, #tpu.memory_space<vmem>>, vector<112x16xf32>
    %c0_127 = arith.constant 0 : index
    %c0_128 = arith.constant 0 : index
    %169 = vector.load %arg4[%c0_127, %c0_128] : memref<16x112xf32, #tpu.memory_space<vmem>>, vector<16x112xf32>
    %cst_129 = arith.constant dense<0.000000e+00> : vector<16x16xf32>
    %170 = tpu.matmul %169, %168, %cst_129 {dimension_numbers = #tpu.dot_dimension_numbers<[1], [0], [0], [1], [0, 0, 1, 1], [], []>} : vector<16x112xf32>, vector<112x16xf32>, vector<16x16xf32> -> vector<16x16xf32>
    %c0_130 = arith.constant 0 : index
    %c0_131 = arith.constant 0 : index
    %171 = vector.load %arg5[%c0_130, %c0_131] : memref<16x1xf32, #tpu.memory_space<vmem>>, vector<16x1xf32>
    %172 = vector.broadcast %171 : vector<16x1xf32> to vector<16x16xf32>
    %173 = arith.addf %170, %172 : vector<16x16xf32>
    %174 = vector.extract_strided_slice %173 {offsets = [0, 0], sizes = [16, 1], strides = [1, 1]} : vector<16x16xf32> to vector<16x1xf32>
    %175 = vector.shape_cast %174 : vector<16x1xf32> to vector<16x1xf32>
    %176 = vector.broadcast %175 : vector<16x1xf32> to vector<16x3xf32>
    %c0_132 = arith.constant 0 : index
    %c0_133 = arith.constant 0 : index
    %177 = vector.load %arg15[%c0_132, %c0_133] : memref<16x22xf32, #tpu.memory_space<vmem>>, vector<16x3xf32>
    tpu.vector_store %arg15[%c0_132, %c0_133], %176 {strides = array<i32>} : memref<16x22xf32, #tpu.memory_space<vmem>>, vector<16x3xf32>,
    %c0_134 = arith.constant 0 : index
    %c3_135 = arith.constant 3 : index
    %178 = vector.load %arg15[%c0_134, %c3_135] : memref<16x22xf32, #tpu.memory_space<vmem>>, vector<16x16xf32>
    tpu.vector_store %arg15[%c0_134, %c3_135], %173 {strides = array<i32>} : memref<16x22xf32, #tpu.memory_space<vmem>>, vector<16x16xf32>,
    %179 = vector.extract_strided_slice %173 {offsets = [0, 15], sizes = [16, 1], strides = [1, 1]} : vector<16x16xf32> to vector<16x1xf32>
    %180 = vector.shape_cast %179 : vector<16x1xf32> to vector<16x1xf32>
    %181 = vector.broadcast %180 : vector<16x1xf32> to vector<16x3xf32>
    %c0_136 = arith.constant 0 : index
    %c19_137 = arith.constant 19 : index
    %182 = vector.load %arg15[%c0_136, %c19_137] : memref<16x22xf32, #tpu.memory_space<vmem>>, vector<16x3xf32>
    tpu.vector_store %arg15[%c0_136, %c19_137], %181 {strides = array<i32>} : memref<16x22xf32, #tpu.memory_space<vmem>>, vector<16x3xf32>,
    %c0_138 = arith.constant 0 : index
    %c0_139 = arith.constant 0 : index
    %183 = vector.load %arg6[%c0_138, %c0_139] : memref<16x1xf32, #tpu.memory_space<vmem>>, vector<16x1xf32>
    %c0_140 = arith.constant 0 : index
    %c0_141 = arith.constant 0 : index
    %184 = vector.load %arg7[%c0_140, %c0_141] : memref<16x1xf32, #tpu.memory_space<vmem>>, vector<16x1xf32>
    %cst_142 = arith.constant 0.000000e+00 : f32
    %185 = vector.broadcast %cst_142 : f32 to vector<16x16xf32>
    %cst_143 = arith.constant 0.000000e+00 : f32
    %186 = vector.broadcast %cst_143 : f32 to vector<16x16xf32>
    %c0_144 = arith.constant 0 : index
    %c5_145 = arith.constant 5 : index
    %187 = vector.load %arg15[%c0_144, %c5_145] : memref<16x22xf32, #tpu.memory_space<vmem>>, vector<16x16xf32>
    %cst_146 = arith.constant 0.00938946381 : f32
    %188 = vector.broadcast %cst_146 : f32 to vector<16x16xf32>
    %189 = arith.mulf %188, %187 : vector<16x16xf32>
    %190 = arith.addf %185, %189 : vector<16x16xf32>
    %c0_147 = arith.constant 0 : index
    %c6_148 = arith.constant 6 : index
    %191 = vector.load %arg15[%c0_147, %c6_148] : memref<16x22xf32, #tpu.memory_space<vmem>>, vector<16x16xf32>
    %cst_149 = arith.constant 0.00202896656 : f32
    %192 = vector.broadcast %cst_149 : f32 to vector<16x16xf32>
    %193 = arith.mulf %192, %191 : vector<16x16xf32>
    %194 = arith.addf %186, %193 : vector<16x16xf32>
    %c0_150 = arith.constant 0 : index
    %c4_151 = arith.constant 4 : index
    %195 = vector.load %arg15[%c0_150, %c4_151] : memref<16x22xf32, #tpu.memory_space<vmem>>, vector<16x16xf32>
    %cst_152 = arith.constant -0.0576573759 : f32
    %196 = vector.broadcast %cst_152 : f32 to vector<16x16xf32>
    %197 = arith.mulf %196, %195 : vector<16x16xf32>
    %198 = arith.addf %190, %197 : vector<16x16xf32>
    %c0_153 = arith.constant 0 : index
    %c5_154 = arith.constant 5 : index
    %199 = vector.load %arg15[%c0_153, %c5_154] : memref<16x22xf32, #tpu.memory_space<vmem>>, vector<16x16xf32>
    %cst_155 = arith.constant -0.0255434643 : f32
    %200 = vector.broadcast %cst_155 : f32 to vector<16x16xf32>
    %201 = arith.mulf %200, %199 : vector<16x16xf32>
    %202 = arith.addf %194, %201 : vector<16x16xf32>
    %c0_156 = arith.constant 0 : index
    %c3_157 = arith.constant 3 : index
    %203 = vector.load %arg15[%c0_156, %c3_157] : memref<16x22xf32, #tpu.memory_space<vmem>>, vector<16x16xf32>
    %cst_158 = arith.constant 0.443209797 : f32
    %204 = vector.broadcast %cst_158 : f32 to vector<16x16xf32>
    %205 = arith.mulf %204, %203 : vector<16x16xf32>
    %206 = arith.addf %198, %205 : vector<16x16xf32>
    %c0_159 = arith.constant 0 : index
    %c4_160 = arith.constant 4 : index
    %207 = vector.load %arg15[%c0_159, %c4_160] : memref<16x22xf32, #tpu.memory_space<vmem>>, vector<16x16xf32>
    %cst_161 = arith.constant 0.128572613 : f32
    %208 = vector.broadcast %cst_161 : f32 to vector<16x16xf32>
    %209 = arith.mulf %208, %207 : vector<16x16xf32>
    %210 = arith.addf %202, %209 : vector<16x16xf32>
    %c0_162 = arith.constant 0 : index
    %c2_163 = arith.constant 2 : index
    %211 = vector.load %arg15[%c0_162, %c2_163] : memref<16x22xf32, #tpu.memory_space<vmem>>, vector<16x16xf32>
    %cst_164 = arith.constant 0.128572613 : f32
    %212 = vector.broadcast %cst_164 : f32 to vector<16x16xf32>
    %213 = arith.mulf %212, %211 : vector<16x16xf32>
    %214 = arith.addf %206, %213 : vector<16x16xf32>
    %c0_165 = arith.constant 0 : index
    %c3_166 = arith.constant 3 : index
    %215 = vector.load %arg15[%c0_165, %c3_166] : memref<16x22xf32, #tpu.memory_space<vmem>>, vector<16x16xf32>
    %cst_167 = arith.constant 0.443209797 : f32
    %216 = vector.broadcast %cst_167 : f32 to vector<16x16xf32>
    %217 = arith.mulf %216, %215 : vector<16x16xf32>
    %218 = arith.addf %210, %217 : vector<16x16xf32>
    %c0_168 = arith.constant 0 : index
    %c1_169 = arith.constant 1 : index
    %219 = vector.load %arg15[%c0_168, %c1_169] : memref<16x22xf32, #tpu.memory_space<vmem>>, vector<16x16xf32>
    %cst_170 = arith.constant -0.0255434643 : f32
    %220 = vector.broadcast %cst_170 : f32 to vector<16x16xf32>
    %221 = arith.mulf %220, %219 : vector<16x16xf32>
    %222 = arith.addf %214, %221 : vector<16x16xf32>
    %c0_171 = arith.constant 0 : index
    %c2_172 = arith.constant 2 : index
    %223 = vector.load %arg15[%c0_171, %c2_172] : memref<16x22xf32, #tpu.memory_space<vmem>>, vector<16x16xf32>
    %cst_173 = arith.constant -0.0576573759 : f32
    %224 = vector.broadcast %cst_173 : f32 to vector<16x16xf32>
    %225 = arith.mulf %224, %223 : vector<16x16xf32>
    %226 = arith.addf %218, %225 : vector<16x16xf32>
    %c0_174 = arith.constant 0 : index
    %c0_175 = arith.constant 0 : index
    %227 = vector.load %arg15[%c0_174, %c0_175] : memref<16x22xf32, #tpu.memory_space<vmem>>, vector<16x16xf32>
    %cst_176 = arith.constant 0.00202896656 : f32
    %228 = vector.broadcast %cst_176 : f32 to vector<16x16xf32>
    %229 = arith.mulf %228, %227 : vector<16x16xf32>
    %230 = arith.addf %222, %229 : vector<16x16xf32>
    %c0_177 = arith.constant 0 : index
    %c1_178 = arith.constant 1 : index
    %231 = vector.load %arg15[%c0_177, %c1_178] : memref<16x22xf32, #tpu.memory_space<vmem>>, vector<16x16xf32>
    %cst_179 = arith.constant 0.00938946381 : f32
    %232 = vector.broadcast %cst_179 : f32 to vector<16x16xf32>
    %233 = arith.mulf %232, %231 : vector<16x16xf32>
    %234 = arith.addf %226, %233 : vector<16x16xf32>
    %cst_180 = arith.constant 2.000000e+00 : f32
    %235 = vector.broadcast %cst_180 : f32 to vector<16x16xf32>
    %236 = arith.mulf %230, %235 : vector<16x16xf32>
    %cst_181 = arith.constant 2.000000e+00 : f32
    %237 = vector.broadcast %cst_181 : f32 to vector<16x16xf32>
    %238 = arith.mulf %234, %237 : vector<16x16xf32>
    %239 = vector.broadcast %183 : vector<16x1xf32> to vector<16x16xf32>
    %240 = arith.mulf %239, %236 : vector<16x16xf32>
    %241 = math.sin %240 : vector<16x16xf32>
    %242 = arith.mulf %241, %241 : vector<16x16xf32>
    %243 = vector.broadcast %184 : vector<16x1xf32> to vector<16x16xf32>
    %244 = arith.mulf %243, %242 : vector<16x16xf32>
    %245 = arith.addf %236, %244 : vector<16x16xf32>
    %246 = vector.broadcast %183 : vector<16x1xf32> to vector<16x16xf32>
    %247 = arith.mulf %246, %238 : vector<16x16xf32>
    %248 = math.sin %247 : vector<16x16xf32>
    %249 = arith.mulf %248, %248 : vector<16x16xf32>
    %250 = vector.broadcast %184 : vector<16x1xf32> to vector<16x16xf32>
    %251 = arith.mulf %250, %249 : vector<16x16xf32>
    %252 = arith.addf %238, %251 : vector<16x16xf32>
    %253 = vector.extract_strided_slice %245 {offsets = [0, 0], sizes = [16, 1], strides = [1, 1]} : vector<16x16xf32> to vector<16x1xf32>
    %254 = vector.shape_cast %253 : vector<16x1xf32> to vector<16x1xf32>
    %255 = vector.broadcast %254 : vector<16x1xf32> to vector<16x3xf32>
    %c0_182 = arith.constant 0 : index
    %c0_183 = arith.constant 0 : index
    %256 = vector.load %arg11[%c0_182, %c0_183] : memref<16x21xf32, #tpu.memory_space<vmem>>, vector<16x3xf32>
    tpu.vector_store %arg11[%c0_182, %c0_183], %255 {strides = array<i32>} : memref<16x21xf32, #tpu.memory_space<vmem>>, vector<16x3xf32>,
    %c0_184 = arith.constant 0 : index
    %c3_185 = arith.constant 3 : index
    %257 = vector.load %arg11[%c0_184, %c3_185] : memref<16x21xf32, #tpu.memory_space<vmem>>, vector<16x16xf32>
    tpu.vector_store %arg11[%c0_184, %c3_185], %252 {strides = array<i32>} : memref<16x21xf32, #tpu.memory_space<vmem>>, vector<16x16xf32>,
    %258 = vector.extract_strided_slice %252 {offsets = [0, 15], sizes = [16, 1], strides = [1, 1]} : vector<16x16xf32> to vector<16x1xf32>
    %259 = vector.shape_cast %258 : vector<16x1xf32> to vector<16x1xf32>
    %260 = vector.broadcast %259 : vector<16x1xf32> to vector<16x2xf32>
    %c0_186 = arith.constant 0 : index
    %c19_187 = arith.constant 19 : index
    %261 = vector.load %arg11[%c0_186, %c19_187] : memref<16x21xf32, #tpu.memory_space<vmem>>, vector<16x2xf32>
    tpu.vector_store %arg11[%c0_186, %c19_187], %260 {strides = array<i32>} : memref<16x21xf32, #tpu.memory_space<vmem>>, vector<16x2xf32>,
    %262 = vector.extract_strided_slice %245 {offsets = [0, 0], sizes = [16, 1], strides = [1, 1]} : vector<16x16xf32> to vector<16x1xf32>
    %263 = vector.shape_cast %262 : vector<16x1xf32> to vector<16x1xf32>
    %264 = vector.broadcast %263 : vector<16x1xf32> to vector<16x2xf32>
    %c0_188 = arith.constant 0 : index
    %c0_189 = arith.constant 0 : index
    %265 = vector.load %arg12[%c0_188, %c0_189] : memref<16x21xf32, #tpu.memory_space<vmem>>, vector<16x2xf32>
    tpu.vector_store %arg12[%c0_188, %c0_189], %264 {strides = array<i32>} : memref<16x21xf32, #tpu.memory_space<vmem>>, vector<16x2xf32>,
    %c0_190 = arith.constant 0 : index
    %c2_191 = arith.constant 2 : index
    %266 = vector.load %arg12[%c0_190, %c2_191] : memref<16x21xf32, #tpu.memory_space<vmem>>, vector<16x16xf32>
    tpu.vector_store %arg12[%c0_190, %c2_191], %245 {strides = array<i32>} : memref<16x21xf32, #tpu.memory_space<vmem>>, vector<16x16xf32>,
    %267 = vector.extract_strided_slice %252 {offsets = [0, 15], sizes = [16, 1], strides = [1, 1]} : vector<16x16xf32> to vector<16x1xf32>
    %268 = vector.shape_cast %267 : vector<16x1xf32> to vector<16x1xf32>
    %269 = vector.broadcast %268 : vector<16x1xf32> to vector<16x3xf32>
    %c0_192 = arith.constant 0 : index
    %c18_193 = arith.constant 18 : index
    %270 = vector.load %arg12[%c0_192, %c18_193] : memref<16x21xf32, #tpu.memory_space<vmem>>, vector<16x3xf32>
    tpu.vector_store %arg12[%c0_192, %c18_193], %269 {strides = array<i32>} : memref<16x21xf32, #tpu.memory_space<vmem>>, vector<16x3xf32>,
    %cst_194 = arith.constant 0.000000e+00 : f32
    %271 = vector.broadcast %cst_194 : f32 to vector<16x16xf32>
    %c0_195 = arith.constant 0 : index
    %c0_196 = arith.constant 0 : index
    %272 = vector.load %arg11[%c0_195, %c0_196] : memref<16x21xf32, #tpu.memory_space<vmem>>, vector<16x16xf32>
    %cst_197 = arith.constant 0.00202896656 : f32
    %273 = vector.broadcast %cst_197 : f32 to vector<16x16xf32>
    %274 = arith.mulf %273, %272 : vector<16x16xf32>
    %275 = arith.addf %271, %274 : vector<16x16xf32>
    %c0_198 = arith.constant 0 : index
    %c0_199 = arith.constant 0 : index
    %276 = vector.load %arg12[%c0_198, %c0_199] : memref<16x21xf32, #tpu.memory_space<vmem>>, vector<16x16xf32>
    %cst_200 = arith.constant 0.00938946381 : f32
    %277 = vector.broadcast %cst_200 : f32 to vector<16x16xf32>
    %278 = arith.mulf %277, %276 : vector<16x16xf32>
    %279 = arith.addf %275, %278 : vector<16x16xf32>
    %c0_201 = arith.constant 0 : index
    %c1_202 = arith.constant 1 : index
    %280 = vector.load %arg11[%c0_201, %c1_202] : memref<16x21xf32, #tpu.memory_space<vmem>>, vector<16x16xf32>
    %cst_203 = arith.constant -0.0255434643 : f32
    %281 = vector.broadcast %cst_203 : f32 to vector<16x16xf32>
    %282 = arith.mulf %281, %280 : vector<16x16xf32>
    %283 = arith.addf %279, %282 : vector<16x16xf32>
    %c0_204 = arith.constant 0 : index
    %c1_205 = arith.constant 1 : index
    %284 = vector.load %arg12[%c0_204, %c1_205] : memref<16x21xf32, #tpu.memory_space<vmem>>, vector<16x16xf32>
    %cst_206 = arith.constant -0.0576573759 : f32
    %285 = vector.broadcast %cst_206 : f32 to vector<16x16xf32>
    %286 = arith.mulf %285, %284 : vector<16x16xf32>
    %287 = arith.addf %283, %286 : vector<16x16xf32>
    %c0_207 = arith.constant 0 : index
    %c2_208 = arith.constant 2 : index
    %288 = vector.load %arg11[%c0_207, %c2_208] : memref<16x21xf32, #tpu.memory_space<vmem>>, vector<16x16xf32>
    %cst_209 = arith.constant 0.128572613 : f32
    %289 = vector.broadcast %cst_209 : f32 to vector<16x16xf32>
    %290 = arith.mulf %289, %288 : vector<16x16xf32>
    %291 = arith.addf %287, %290 : vector<16x16xf32>
    %c0_210 = arith.constant 0 : index
    %c2_211 = arith.constant 2 : index
    %292 = vector.load %arg12[%c0_210, %c2_211] : memref<16x21xf32, #tpu.memory_space<vmem>>, vector<16x16xf32>
    %cst_212 = arith.constant 0.443209797 : f32
    %293 = vector.broadcast %cst_212 : f32 to vector<16x16xf32>
    %294 = arith.mulf %293, %292 : vector<16x16xf32>
    %295 = arith.addf %291, %294 : vector<16x16xf32>
    %c0_213 = arith.constant 0 : index
    %c3_214 = arith.constant 3 : index
    %296 = vector.load %arg11[%c0_213, %c3_214] : memref<16x21xf32, #tpu.memory_space<vmem>>, vector<16x16xf32>
    %cst_215 = arith.constant 0.443209797 : f32
    %297 = vector.broadcast %cst_215 : f32 to vector<16x16xf32>
    %298 = arith.mulf %297, %296 : vector<16x16xf32>
    %299 = arith.addf %295, %298 : vector<16x16xf32>
    %c0_216 = arith.constant 0 : index
    %c3_217 = arith.constant 3 : index
    %300 = vector.load %arg12[%c0_216, %c3_217] : memref<16x21xf32, #tpu.memory_space<vmem>>, vector<16x16xf32>
    %cst_218 = arith.constant 0.128572613 : f32
    %301 = vector.broadcast %cst_218 : f32 to vector<16x16xf32>
    %302 = arith.mulf %301, %300 : vector<16x16xf32>
    %303 = arith.addf %299, %302 : vector<16x16xf32>
    %c0_219 = arith.constant 0 : index
    %c4_220 = arith.constant 4 : index
    %304 = vector.load %arg11[%c0_219, %c4_220] : memref<16x21xf32, #tpu.memory_space<vmem>>, vector<16x16xf32>
    %cst_221 = arith.constant -0.0576573759 : f32
    %305 = vector.broadcast %cst_221 : f32 to vector<16x16xf32>
    %306 = arith.mulf %305, %304 : vector<16x16xf32>
    %307 = arith.addf %303, %306 : vector<16x16xf32>
    %c0_222 = arith.constant 0 : index
    %c4_223 = arith.constant 4 : index
    %308 = vector.load %arg12[%c0_222, %c4_223] : memref<16x21xf32, #tpu.memory_space<vmem>>, vector<16x16xf32>
    %cst_224 = arith.constant -0.0255434643 : f32
    %309 = vector.broadcast %cst_224 : f32 to vector<16x16xf32>
    %310 = arith.mulf %309, %308 : vector<16x16xf32>
    %311 = arith.addf %307, %310 : vector<16x16xf32>
    %c0_225 = arith.constant 0 : index
    %c5_226 = arith.constant 5 : index
    %312 = vector.load %arg11[%c0_225, %c5_226] : memref<16x21xf32, #tpu.memory_space<vmem>>, vector<16x16xf32>
    %cst_227 = arith.constant 0.00938946381 : f32
    %313 = vector.broadcast %cst_227 : f32 to vector<16x16xf32>
    %314 = arith.mulf %313, %312 : vector<16x16xf32>
    %315 = arith.addf %311, %314 : vector<16x16xf32>
    %c0_228 = arith.constant 0 : index
    %c5_229 = arith.constant 5 : index
    %316 = vector.load %arg12[%c0_228, %c5_229] : memref<16x21xf32, #tpu.memory_space<vmem>>, vector<16x16xf32>
    %cst_230 = arith.constant 0.00202896656 : f32
    %317 = vector.broadcast %cst_230 : f32 to vector<16x16xf32>
    %318 = arith.mulf %317, %316 : vector<16x16xf32>
    %319 = arith.addf %315, %318 : vector<16x16xf32>
    %c0_231 = arith.constant 0 : index
    %c0_232 = arith.constant 0 : index
    %c3_233 = arith.constant 3 : index
    %320 = vector.load %arg1[%c0_231, %c0_232, %c3_233] : memref<1x16x22xf32, #tpu.memory_space<vmem>>, vector<1x16x16xf32>
    %321 = vector.shape_cast %320 : vector<1x16x16xf32> to vector<16x16xf32>
    %c0_234 = arith.constant 0 : index
    %c0_235 = arith.constant 0 : index
    %322 = vector.load %arg8[%c0_234, %c0_235] : memref<16x16xf32, #tpu.memory_space<vmem>>, vector<16x16xf32>
    %cst_236 = arith.constant dense<0.000000e+00> : vector<16x16xf32>
    %323 = tpu.matmul %322, %319, %cst_236 {dimension_numbers = #tpu.dot_dimension_numbers<[1], [0], [0], [1], [0, 0, 1, 1], [], []>} : vector<16x16xf32>, vector<16x16xf32>, vector<16x16xf32> -> vector<16x16xf32>
    %324 = arith.addf %321, %323 : vector<16x16xf32>
    %c0_237 = arith.constant 0 : index
    %c0_238 = arith.constant 0 : index
    %325 = vector.load %arg9[%c0_237, %c0_238] : memref<16x1xf32, #tpu.memory_space<vmem>>, vector<16x1xf32>
    %326 = vector.broadcast %325 : vector<16x1xf32> to vector<16x16xf32>
    %327 = arith.addf %324, %326 : vector<16x16xf32>
    %c0_239 = arith.constant 0 : index
    %c0_240 = arith.constant 0 : index
    %c0_241 = arith.constant 0 : index
    %328 = vector.load %arg10[%c0_239, %c0_240, %c0_241] : memref<1x16x16xf32, #tpu.memory_space<vmem>>, vector<1x16x16xf32>
    %329 = vector.shape_cast %328 : vector<1x16x16xf32> to vector<16x16xf32>
    %330 = vector.shape_cast %327 : vector<16x16xf32> to vector<1x16x16xf32>
    tpu.vector_store %arg10[%c0_239, %c0_240, %c0_241], %330 {strides = array<i32>} : memref<1x16x16xf32, #tpu.memory_space<vmem>>, vector<1x16x16xf32>,
    return
  }
  func.func @transform_0(%arg0: i32) -> (i32, i32, i32) {
    %c0_i32 = arith.constant 0 : i32
    %c0_i32_0 = arith.constant 0 : i32
    %c0_i32_1 = arith.constant 0 : i32
    return %arg0, %c0_i32, %c0_i32_0 : i32, i32, i32
  }
  func.func @transform_1(%arg0: i32) -> (i32, i32) {
    %c0_i32 = arith.constant 0 : i32
    %c0_i32_0 = arith.constant 0 : i32
    %c0_i32_1 = arith.constant 0 : i32
    return %c0_i32, %c0_i32_0 : i32, i32
  }
  func.func @transform_2(%arg0: i32) -> (i32, i32) {
    %c0_i32 = arith.constant 0 : i32
    %c0_i32_0 = arith.constant 0 : i32
    %c0_i32_1 = arith.constant 0 : i32
    return %c0_i32, %c0_i32_0 : i32, i32
  }
  func.func @transform_3(%arg0: i32) -> (i32, i32) {
    %c0_i32 = arith.constant 0 : i32
    %c0_i32_0 = arith.constant 0 : i32
    %c0_i32_1 = arith.constant 0 : i32
    return %c0_i32, %c0_i32_0 : i32, i32
  }
  func.func @transform_4(%arg0: i32) -> (i32, i32) {
    %c0_i32 = arith.constant 0 : i32
    %c0_i32_0 = arith.constant 0 : i32
    %c0_i32_1 = arith.constant 0 : i32
    return %c0_i32, %c0_i32_0 : i32, i32
  }
  func.func @transform_5(%arg0: i32) -> (i32, i32) {
    %c0_i32 = arith.constant 0 : i32
    %c0_i32_0 = arith.constant 0 : i32
    %c0_i32_1 = arith.constant 0 : i32
    return %c0_i32, %c0_i32_0 : i32, i32
  }
  func.func @transform_6(%arg0: i32) -> (i32, i32) {
    %c0_i32 = arith.constant 0 : i32
    %c0_i32_0 = arith.constant 0 : i32
    %c0_i32_1 = arith.constant 0 : i32
    return %c0_i32, %c0_i32_0 : i32, i32
  }
  func.func @transform_7(%arg0: i32) -> (i32, i32) {
    %c0_i32 = arith.constant 0 : i32
    %c0_i32_0 = arith.constant 0 : i32
    %c0_i32_1 = arith.constant 0 : i32
    return %c0_i32, %c0_i32_0 : i32, i32
  }
  func.func @transform_8(%arg0: i32) -> (i32, i32) {
    %c0_i32 = arith.constant 0 : i32
    %c0_i32_0 = arith.constant 0 : i32
    %c0_i32_1 = arith.constant 0 : i32
    return %c0_i32, %c0_i32_0 : i32, i32
  }
  func.func @transform_9(%arg0: i32) -> (i32, i32, i32) {
    %c0_i32 = arith.constant 0 : i32
    %c0_i32_0 = arith.constant 0 : i32
    %c0_i32_1 = arith.constant 0 : i32
    return %arg0, %c0_i32, %c0_i32_0 : i32, i32, i32
  }
}

</mosaic_0001>

<bundles_post_ra>
// kernel: tpu_custom_call.1
= control target key start
LH: loop header
LB: loop body
LE: loop exit
PB: predicated region body
PF: predicated region fallthrough
CT: control target
= control target key end

     0   :  { %14 = vsyncpa [#allocation8], 0  ;;  %s3618_s0 = inlined_call_operand.vmem [shape: f32[2,16,22], index: 0, kind: input, shape index: {}]   ;;  %s3619_s1 = inlined_call_operand.vmem [shape: f32[16,1], index: 1, kind: input, shape index: {}]   ;;  %s3620_s2 = inlined_call_operand.vmem [shape: f32[16,1], index: 2, kind: input, shape index: {}]   ;;  %s3621_s3 = inlined_call_operand.vmem [shape: f32[16,112], index: 3, kind: input, shape index: {}]   ;;  %s3622_s4 = inlined_call_operand.vmem [shape: f32[16,1], index: 4, kind: input, shape index: {}]   ;;  %s3623_s5 = inlined_call_operand.vmem [shape: f32[16,1], index: 5, kind: input, shape index: {}]   ;;  %s3624_s6 = inlined_call_operand.vmem [shape: f32[16,1], index: 6, kind: input, shape index: {}]   ;;  %s3625_s7 = inlined_call_operand.vmem [shape: f32[16,16], index: 7, kind: input, shape index: {}]   ;;  %s3626_s8 = inlined_call_operand.vmem [shape: f32[16,1], index: 8, kind: input, shape index: {}]   ;;  %s3627_s9 = inlined_call_operand.hbm [shape: f32[2,16,16], index: 9, kind: output, shape index: {}]  }
   0x1   :  { %16 = vsyncpa [#allocation8 + $0x1], 0  ;;  %s2644_s30 = smov 0   ;;  %s2646_s10 = smov 0  }
   0x2   :  { %s2648_s11 = smov 0   ;;  %s2650_s12 = smov 0  }
   0x3 LB: > { %s2665_s13 = sadd.s32 4294967295, %s2567_s12   ;;  %s2256_s14 = sadd.s32 4294967294, %s2567_s12   ;;  %s2567_s12 = sphi %s2650_s12, %s3667_s12   ;;  %s2563_s11 = sphi %s2648_s11, %s3666_s11   ;;  %s2559_s10 = sphi %s2646_s10, %s3665_s10   ;;  %s2555_s30 = sphi %s2644_s30, %s3664_s30  }
   0x4   : > { %s2669_s15 = sadd.s32 1, %s2567_s12   ;;  %s223_s16 = sadd.s32 1, %s2563_s11 }
   0x5   : > { %s220_s17 = ssub.s32 %s2567_s12, %s2669_s15  ;;  %p233_p0 = scmp.ne.s32.totalorder %s2563_s11, %s2559_s10 }
   0x6   : > { %p221_p1 = scmp.eq.s32.totalorder %s220_s17, 0  ;;  %p234_p2 = scmp.eq.s32.totalorder %s2665_s13, 1 }
   0x7   : > { %p239_p3 = scmp.ne.s32.totalorder %s2559_s10, %s2555_s30  ;;  %p240_p4 = scmp.eq.s32.totalorder %s2256_s14, 1 }
   0x8   : > { %s2680_s18 = scalar_select %p221_p1, %s2563_s11, %s223_s16  }
   0x9   : > { %p2682_p5 = por %p234_p2, %p233_p0  ;;  %p2686_p6 = por %p240_p4, %p239_p3 }
   0xa   : > { %p2259_p7 = scmp.ge.s32.totalorder %s2567_s12, 1  ;;  %p290_p8 = scmp.lt.s32.totalorder %s2567_s12, 3 }
   0xc   : > { %p291_p9 = pnand %p2259_p7, %p290_p8 }
   0xd   : > { %p326_p10 = scmp.lt.s32.totalorder (!%p291_p9), %s2665_s13, 1  ;;  %s3632_s26 = smov (!%p291_p9), 1  }
   0xe   : > { %294 = sbr.rel (%p291_p9) target bundleno = 2246 (0x8c6), region = 56  ;;  %s3636_s27 = smov (!%p291_p9), 2  }
   0xf   : > { %s2572_s28 = smov (!%p291_p9), 3   ;;  %s3630_s29 = smov (!%p291_p9), 4  }
  0x10   : > { %s2583_s17 = smov (!%p291_p9), 125   ;;  %s2585_s23 = smov (!%p291_p9), 126  }
  0x11   : > { %s2586_s24 = smov (!%p291_p9), 124   ;;  %s3634_s14 = smov (!%p291_p9), 123  }
  0x12   : > { %s2589_s16 = smov (!%p291_p9), 122  }
  0x13   : > { %v2569_v0 = vmov 0   ;;  %s327_s21 = scalar_select %p326_p10, %s2665_s13, 1  ;;  %v332_v11 = vld [vmem:[%s3619_s1 + $0x8] sm:$0xff]  ;;  %v331_v13 = vld [vmem:[%s3619_s1] sm:$0xff]  ;;  %v2575_v62 = vmov 5  }
  0x14   : > { %2459 = vset.pattern.permute.xlu0 %v2569_v0  ;;  %2460 = vset.pattern.permute.xlu1 %v2569_v0  ;;  %v333_v17 = vld [vmem:[%s3620_s2] sm:$0xff]  ;;  %v334_v18 = vld [vmem:[%s3620_s2 + $0x8] sm:$0xff] }
  0x15   : > { %s2304_s22 = sshll.u32 %s327_s21, 4  ;;  %s2584_s21 = smov 127  }
  0x16   : > { %s2699_s25 = scalar_lea.vmem %s3618_s0, %s2304_s22  ;;  %s3628_s22 = smov 5  }
  0x17   : > { %v336_v1 = vld [vmem:[%s2699_s25 + $0x8] sm:$0xff]  ;;  %v335_v2 = vld [vmem:[%s2699_s25] sm:$0xff] }
  0x18   : > { %v358_v3 = vmul.f32 -0.025543464, %v336_v1  ;;  %v346_v4 = vmul.f32 -0.057657376, %v336_v1  ;;  %v370_v5 = vmul.f32 0.4432098, %v336_v1 }
  0x19   : > { %v345_v6 = vmul.f32 -0.057657376, %v335_v2  ;;  %v369_v7 = vmul.f32 0.4432098, %v335_v2  ;;  %v357_v8 = vmul.f32 -0.025543464, %v335_v2 }
  0x1a   : > { %363 = vrot.lane.b32.xlu1 %v358_v3, %s3632_s26  ;;  %351 = vrot.lane.b32.xlu0 %v346_v4, %s3632_s26  ;;  %v382_v9 = vmul.f32 0.12857261, %v336_v1  ;;  %v381_v10 = vmul.f32 0.12857261, %v335_v2  ;;  %v342_v12 = vmul.f32 0.0020289666, %v336_v1 }
  0x1b   : > { %v341_v14 = vmul.f32 0.0020289666, %v335_v2  ;;  %v338_v15 = vmul.f32 0.009389464, %v336_v1  ;;  %v337_v16 = vmul.f32 0.009389464, %v335_v2 }
  0x1e   : > { %375 = vrot.lane.b32.xlu1 %v370_v5, %s3636_s27  ;;  %349 = vrot.lane.b32.xlu0 %v345_v6, %s3632_s26 }
  0x22   : > { %373 = vrot.lane.b32.xlu1 %v369_v7, %s3636_s27  ;;  %361 = vrot.lane.b32.xlu0 %v357_v8, %s3632_s26  ;;  %s3647_s26 = smov 2  }
  0x26   : > { %395 = vrot.lane.b32.xlu1 %v382_v9, %s2572_s28  ;;  %387 = vrot.lane.b32.xlu0 %v382_v9, %s3636_s27 }
  0x2a   : > { %393 = vrot.lane.b32.xlu1 %v381_v10, %s2572_s28  ;;  %385 = vrot.lane.b32.xlu0 %v381_v10, %s3636_s27  ;;  %s3648_s27 = smov 1  }
  0x2e   : > { %411 = vrot.lane.b32.xlu1 %v358_v3, %s3630_s29  ;;  %403 = vrot.lane.b32.xlu0 %v370_v5, %s2572_s28 }
  0x32   : > { %401 = vrot.lane.b32.xlu1 %v369_v7, %s2572_s28  ;;  %456 = vperm.xlu0 %2459, %v332_v11  }
  0x36   : > { %409 = vrot.lane.b32.xlu1 %v357_v8, %s3630_s29  ;;  %419 = vrot.lane.b32.xlu0 %v346_v4, %s3630_s29 }
  0x3a   : > { %429 = vrot.lane.b32.xlu1 %v342_v12, %s3628_s22  ;;  %451 = vperm.xlu0 %2459, %v331_v13  }
  0x3e   : > { %417 = vrot.lane.b32.xlu1 %v345_v6, %s3630_s29  ;;  %427 = vrot.lane.b32.xlu0 %v341_v14, %s3628_s22  ;;  %s3649_s29 = smov 4  }
  0x42   : > { %439 = vrot.lane.b32.xlu1 %v338_v15, %s3628_s22  ;;  %437 = vrot.lane.b32.xlu0 %v337_v16, %s3628_s22  ;;  %s3650_s22 = smov 5  }
  0x46   : > { %673 = vperm.xlu0 %2459, %v333_v17   ;;  %678 = vperm.xlu1 %2460, %v334_v18  }
  0x4a   : > { %2461 = vset.pattern.permute.xlu1 %v2575_v62  ;;  %2462 = vset.pattern.permute.xlu0 %v2575_v62 }
  0x8c   : > { %v364_v19 = vpop.permute.xlu1 %363  ;;  %v352_v20 = vpop.permute.xlu0 %351 }
  0x8d   : > { %v356_v31 = vadd.f32 %v352_v20, %v338_v15  ;;  %v368_v37 = vadd.f32 %v364_v19, %v342_v12 }
  0x90   : > { %v376_v21 = vpop.permute.xlu1 %375  ;;  %v350_v22 = vpop.permute.xlu0 %349 }
  0x91   : > { %v380_v32 = vadd.f32 %v376_v21, %v356_v31  ;;  %v355_v47 = vadd.f32 %v350_v22, %v337_v16  ;;  %v2576_v21 = vmov 683565275  }
  0x94   : > { %v374_v23 = vpop.permute.xlu1 %373  ;;  %v362_v24 = vpop.permute.xlu0 %361 }
  0x95   : > { %v379_v51 = vadd.f32 %v374_v23, %v355_v47  ;;  %v367_v58 = vadd.f32 %v362_v24, %v341_v14  ;;  %v2577_v23 = vmov 2475754826  }
  0x98   : > { %v396_v25 = vpop.permute.xlu1 %395  ;;  %v388_v27 = vpop.permute.xlu0 %387 }
  0x99   : > { %v400_v34 = vadd.f32 %v396_v25, %v380_v32  ;;  %v392_v41 = vadd.f32 %v388_v27, %v368_v37  ;;  %v2578_v25 = vmov 2131351028   ;;  %v2579_v27 = vmov 2102212464  }
  0x9a   : > { %v2580_v32 = vmov 920167782  }
  0x9c   : > { %v394_v26 = vpop.permute.xlu1 %393  ;;  %v386_v29 = vpop.permute.xlu0 %385 }
  0x9d   : > { %v399_v56 = vadd.f32 %v394_v26, %v379_v51  ;;  %v391_v63 = vadd.f32 %v386_v29, %v367_v58 }
  0xa0   : > { %v412_v28 = vpop.permute.xlu1 %411  ;;  %v404_v35 = vpop.permute.xlu0 %403 }
  0xa1   : > { %v416_v36 = vadd.f32 %v412_v28, %v400_v34  ;;  %v408_v43 = vadd.f32 %v404_v35, %v392_v41 }
  0xa4   : > { %v402_v30 = vpop.permute.xlu1 %401 }
  0xa5   : > { %v407_v6 = vadd.f32 %v402_v30, %v391_v63 }
  0xa8   : > { %v410_v33 = vpop.permute.xlu1 %409 }
  0xa9   : > { %v415_v61 = vadd.f32 %v410_v33, %v399_v56 }
  0xac   : > { %v430_v38 = vpop.permute.xlu1 %429 }
  0xad   : > { %v434_v39 = vadd.f32 %v430_v38, %v416_v36  ;;  %v457_v40 = vpop.permute.xlu0 %456  ;;  %v2581_v36 = vmov 1326507024  }
  0xaf   : > { %v2735_v42 = vmul.f32 2.0, %v434_v39 }
  0xb0   : > { %v418_v44 = vpop.permute.xlu1 %417 }
  0xb1   : > { %v2738_v45 = vmul.f32 %v457_v40, %v2735_v42  ;;  %v420_v46 = vpop.permute.xlu0 %419  ;;  %v423_v12 = vadd.f32 %v418_v44, %v407_v6 }
  0xb2   : > { %v424_v48 = vadd.f32 %v420_v46, %v408_v43 }
  0xb3   : > { %v565_v49 = vand.u32 2147483647, %v2738_v45  ;;  %v568_v50 = vand.u32 2139095040, %v2738_v45 }
  0xb4   : > { %v440_v52 = vpop.permute.xlu1 %439 }
  0xb5   : > { %v569_v53 = vshrl.u32 %v568_v50, 23  ;;  %v444_v54 = vadd.f32 %v440_v52, %v424_v48  ;;  %v2742_v55 = vpop.permute.xlu0 %451  ;;  %v572_v57 = vand.u32 8388607, %v565_v49 }
  0xb7   : > { %v2267_v59 = vadd.s32 4294967169, %v569_v53  ;;  %v2746_v60 = vmul.f32 2.0, %v444_v54  ;;  %v573_v4 = vor.u32 8388608, %v572_v57 }
  0xb9   : > { %v575_v1 = vadd.s32 1, %v2267_v59  ;;  %v2751_v2 = vmul.f32 %v457_v40, %v2746_v60  ;;  %v428_v3 = vpop.permute.xlu0 %427  ;;  %v2757_v15 = vshll.u32 %v573_v4, 8 }
  0xba   : > { %v433_v5 = vadd.f32 %v428_v3, %v415_v61 }
  0xbb   : > { %vm576_vm0 = vcmp.gt.s32.totalorder %v575_v1, 0  ;;  %v791_v7 = vand.u32 2147483647, %v2751_v2  ;;  %v794_v8 = vand.u32 2139095040, %v2751_v2 }
  0xbc   : > { %v577_v9 = vsel %vm576_vm0, %v575_v1, 0  ;;  %v2755_v10 = vmul.f32 2.0, %v433_v5 }
  0xbd   : > { %v579_v11 = vand.u32 31, %v577_v9  ;;  %v438_v13 = vpop.permute.xlu0 %437  ;;  %v578_v14 = vshrl.u32 %v577_v9, 5  ;;  %v795_v16 = vshrl.u32 %v794_v8, 23  ;;  %v798_v18 = vand.u32 8388607, %v791_v7 }
  0xbe   : > { %v2763_v19 = vmul.f32 %v2742_v55, %v2755_v10  ;;  %v443_v20 = vadd.f32 %v438_v13, %v423_v12 }
  0xbf   : > { %v580_v17 = vsub.s32 32, %v579_v11  ;;  %v582_v22 = vshll.u32 %v2576_v21, %v579_v11  ;;  %v585_v24 = vshll.u32 %v2577_v23, %v579_v11  ;;  %v588_v26 = vshll.u32 %v2578_v25, %v579_v11 }
  0xc0   : > { %v591_v28 = vshll.u32 %v2579_v27, %v579_v11  ;;  %v594_v33 = vshll.u32 %v2580_v32, %v579_v11  ;;  %vm597_vm1 = vcmp.lt.s32.totalorder %v578_v14, 1  ;;  %v2275_v41 = vadd.s32 4294967169, %v795_v16 }
  0xc1   : > { %v583_v29 = vshrl.u32 %v2577_v23, %v580_v17  ;;  %v586_v30 = vshrl.u32 %v2578_v25, %v580_v17  ;;  %v589_v31 = vshrl.u32 %v2579_v27, %v580_v17  ;;  %v581_v34 = vshrl.u32 %v2576_v21, %v580_v17 }
  0xc2   : > { %v592_v35 = vshrl.u32 %v2580_v32, %v580_v17  ;;  %v595_v37 = vshrl.u32 %v2581_v36, %v580_v17  ;;  %vm599_vm2 = vcmp.lt.s32.totalorder %v578_v14, 3  ;;  %vm600_vm3 = vcmp.lt.s32.totalorder %v578_v14, 4 }
  0xc3   : > { %v584_v38 = vor.u32 %v583_v29, %v582_v22  ;;  %v587_v39 = vor.u32 %v586_v30, %v585_v24  ;;  %v590_v40 = vor.u32 %v589_v31, %v588_v26  ;;  %v801_v54 = vadd.s32 1, %v2275_v41 }
  0xc4   : > { %v593_v43 = vor.u32 %v592_v35, %v591_v28  ;;  %v596_v44 = vor.u32 %v595_v37, %v594_v33  ;;  %vm598_vm4 = vcmp.lt.s32.totalorder %v578_v14, 2  ;;  %v799_v58 = vor.u32 8388608, %v798_v18 }
  0xc5   : > { %v601_v46 = vsel %vm597_vm1, %v581_v34, %v584_v38  ;;  %v602_v47 = vsel %vm600_vm3, %v590_v40, 2102212464  ;;  %v605_v48 = vsel %vm597_vm1, %v584_v38, %v587_v39  ;;  %v609_v50 = vsel %vm597_vm1, %v587_v39, %v590_v40 }
  0xc6   : > { %v603_v51 = vsel %vm599_vm2, %v587_v39, %v602_v47  ;;  %v606_v52 = vsel %vm600_vm3, %v593_v43, 920167782  ;;  %v610_v53 = vsel %vm600_vm3, %v596_v44, 1326507024  ;;  %vm802_vm5 = vcmp.gt.s32.totalorder %v801_v54, 0 }
  0xc7   : > { %v607_v56 = vsel %vm599_vm2, %v590_v40, %v606_v52  ;;  %v611_v57 = vsel %vm599_vm2, %v593_v43, %v610_v53  ;;  %v604_v59 = vsel %vm598_vm4, %v601_v46, %v603_v51  ;;  %v803_v6 = vsel %vm802_vm5, %v801_v54, 0 }
  0xc8   : > { %v608_v61 = vsel %vm598_vm4, %v605_v48, %v607_v56  ;;  %v612_v63 = vsel %vm598_vm4, %v609_v50, %v611_v57  ;;  %v464_v8 = vand.u32 2139095040, %v2763_v19  ;;  %v805_v9 = vand.u32 31, %v803_v6 }
  0xc9   : > { %v2777_v1 = vmul.u32.u64.low %v2757_v15, %v612_v63  ;;  %v2778_v3 = vmul.u32.u64.high %v2757_v15, %v612_v63, %v2777_v1  ;;  %v2781_v4 = vmul.u32.u64.low %v2757_v15, %v608_v61  ;;  %v2782_v5 = vmul.u32.u64.high %v2757_v15, %v608_v61, %v2781_v4 }
  0xca   : > { %v620_v11 = vmul.u32 %v2757_v15, %v604_v59  ;;  %v804_v12 = vshrl.u32 %v803_v6, 5  ;;  %v2787_v13 = vshll.u32 %v799_v58, 8  ;;  %v461_v14 = vand.u32 2147483647, %v2763_v19 }
  0xcb   : > { %vm622_vm6 = vc.u32 %v2778_v3, %v2781_v4  ;;  %v623_v16 = vadd.s32 1, %v2782_v5  ;;  %v806_v17 = vsub.s32 32, %v805_v9  ;;  %v2793_v18 = vmul.f32 2.0, %v443_v20 }
  0xcc   : > { %v808_v22 = vshll.u32 %v2576_v21, %v805_v9  ;;  %v811_v24 = vshll.u32 %v2577_v23, %v805_v9  ;;  %v814_v26 = vshll.u32 %v2578_v25, %v805_v9  ;;  %v465_v15 = vshrl.u32 %v464_v8, 23 }
  0xcd   : > { %v624_v28 = vsel %vm622_vm6, %v623_v16, %v2782_v5  ;;  %v809_v29 = vshrl.u32 %v2577_v23, %v806_v17  ;;  %v812_v30 = vshrl.u32 %v2578_v25, %v806_v17  ;;  %v817_v31 = vshll.u32 %v2579_v27, %v805_v9 }
  0xce   : > { %v625_v33 = vadd.s32 %v624_v28, %v620_v11  ;;  %v807_v34 = vshrl.u32 %v2576_v21, %v806_v17  ;;  %v815_v20 = vshrl.u32 %v2579_v27, %v806_v17  ;;  %v818_v35 = vshrl.u32 %v2580_v32, %v806_v17 }
  0xcf   : > { %v810_v37 = vor.u32 %v809_v29, %v808_v22  ;;  %v813_v38 = vor.u32 %v812_v30, %v811_v24  ;;  %v820_v39 = vshll.u32 %v2580_v32, %v805_v9  ;;  %v821_v40 = vshrl.u32 %v2581_v36, %v806_v17 }
  0xd0   : > { %v626_v41 = vadd.s32 536870912, %v625_v33  ;;  %v816_v43 = vor.u32 %v815_v20, %v814_v26  ;;  %v819_v44 = vor.u32 %v818_v35, %v817_v31  ;;  %vm823_vm7 = vcmp.lt.s32.totalorder %v804_v12, 1 }
  0xd1   : > { %v822_v46 = vor.u32 %v821_v40, %v820_v39  ;;  %vm824_vm8 = vcmp.lt.s32.totalorder %v804_v12, 2  ;;  %vm825_vm9 = vcmp.lt.s32.totalorder %v804_v12, 3  ;;  %vm826_vm10 = vcmp.lt.s32.totalorder %v804_v12, 4 }
  0xd2   : > { %v2807_v47 = vshrl.u32 %v626_v41, 30  ;;  %v828_v48 = vsel %vm826_vm10, %v816_v43, 2102212464  ;;  %v831_v50 = vsel %vm823_vm7, %v810_v37, %v813_v38  ;;  %v832_v51 = vsel %vm826_vm10, %v819_v44, 920167782 }
  0xd3   : > { %v827_v52 = vsel %vm823_vm7, %v807_v34, %v810_v37  ;;  %v833_v53 = vsel %vm825_vm9, %v816_v43, %v832_v51  ;;  %v835_v54 = vsel %vm823_vm7, %v813_v38, %v816_v43  ;;  %v836_v56 = vsel %vm826_vm10, %v822_v46, 1326507024 }
  0xd4   : > { %v628_v57 = vshll.u32 %v2807_v47, 30  ;;  %v829_v58 = vsel %vm825_vm9, %v813_v38, %v828_v48  ;;  %v834_v59 = vsel %vm824_vm8, %v831_v50, %v833_v53  ;;  %v837_v61 = vsel %vm825_vm9, %v819_v44, %v836_v56 }
  0xd5   : > { %v838_v63 = vsel %vm824_vm8, %v835_v54, %v837_v61  ;;  %v2813_v1 = vmul.u32.u64.low %v2787_v13, %v834_v59  ;;  %v2814_v5 = vmul.u32.u64.high %v2787_v13, %v834_v59, %v2813_v1  ;;  %v468_v6 = vand.u32 8388607, %v461_v14 }
  0xd6   : > { %v629_v8 = vsub.s32 %v625_v33, %v628_v57  ;;  %v2820_v9 = vmul.u32.u64.low %v2787_v13, %v838_v63  ;;  %v2821_v11 = vmul.u32.u64.high %v2787_v13, %v838_v63, %v2820_v9  ;;  %v2263_v16 = vadd.s32 4294967169, %v465_v15 }
  0xd7   : > { %v830_v17 = vsel %vm824_vm8, %v827_v52, %v829_v58  ;;  %v2826_v22 = vmul.f32 %v2742_v55, %v2793_v18  ;;  %v849_v28 = vadd.s32 1, %v2814_v5  ;;  %v469_v29 = vor.u32 8388608, %v468_v6 }
  0xd8   : > { %v631_v24 = vsub.s32 0, %v629_v8  ;;  %v471_v26 = vadd.s32 1, %v2263_v16  ;;  %v846_v33 = vmul.u32 %v2787_v13, %v830_v17  ;;  %vm848_vm11 = vc.u32 %v2821_v11, %v2813_v1 }
  0xd9   : > { %v690_v30 = vand.u32 2139095040, %v2826_v22  ;;  %v850_v12 = vsel %vm848_vm11, %v849_v28, %v2814_v5  ;;  %v621_v37 = vadd.s32 %v2781_v4, %v2778_v3  ;;  %v2838_v39 = vshll.u32 %v469_v29, 8 }
  0xda   : > { %v2268_v31 = vmin.u32 %v631_v24, %v629_v8  ;;  %vm472_vm12 = vcmp.gt.s32.totalorder %v471_v26, 0  ;;  %v851_v20 = vadd.s32 %v850_v12, %v846_v33  ;;  %v687_v13 = vand.u32 2147483647, %v2826_v22 }
  0xdb   : > { %v473_v15 = vsel %vm472_vm12, %v471_v26, 0  ;;  %v691_v34 = vshrl.u32 %v690_v30, 23  ;;  %vm567_vm2 = vcmp.lt.s32.totalorder %v2738_v45, 0  ;;  %vm2891_vm3 = vcmp.le.f32.partialorder %v565_v49, 0.7853982 }
  0xdc   : > { %v633_v55 = vclz %v2268_v31  ;;  %v475_v35 = vand.u32 31, %v473_v15  ;;  %v2836_v38 = vshrl.u32 %v473_v15, 5  ;;  %v852_v41 = vadd.s32 536870912, %v851_v20 }
  0xdd   : > { %v2271_v44 = vadd.s32 4294967169, %v691_v34  ;;  %vm793_vm11 = vcmp.lt.s32.totalorder %v2751_v2, 0  ;;  %vm2950_vm12 = vcmp.le.f32.partialorder %v791_v7, 0.7853982 }
  0xde   : > { %v2269_v40 = vadd.s32 4294967294, %v633_v55  ;;  %v476_v43 = vsub.s32 32, %v475_v35  ;;  %v478_v46 = vshll.u32 %v2576_v21, %v475_v35  ;;  %v481_v48 = vshll.u32 %v2577_v23, %v475_v35 }
  0xdf   : > { %v484_v50 = vshll.u32 %v2578_v25, %v475_v35  ;;  %v487_v51 = vshll.u32 %v2579_v27, %v475_v35  ;;  %v2845_v3 = vshrl.u32 %v852_v41, 30  ;;  %v490_v52 = vshll.u32 %v2580_v32, %v475_v35 }
  0xe0   : > { %vm2270_vm13 = vcmp.lt.s32.totalorder %v2269_v40, 0  ;;  %v479_v4 = vshrl.u32 %v2577_v23, %v476_v43  ;;  %v482_v54 = vshrl.u32 %v2578_v25, %v476_v43  ;;  %v485_v56 = vshrl.u32 %v2579_v27, %v476_v43 }
  0xe1   : > { %v636_v53 = vsel %vm2270_vm13, 0, %v2269_v40  ;;  %v488_v57 = vshrl.u32 %v2580_v32, %v476_v43  ;;  %v854_v63 = vshll.u32 %v2845_v3, 30  ;;  %v491_v28 = vshrl.u32 %v2581_v36, %v476_v43 }
  0xe2   : > { %v637_v58 = vsub.s32 32, %v636_v53  ;;  %v638_v59 = vshll.u32 %v629_v8, %v636_v53  ;;  %v641_v61 = vsub.s32 4294967266, %v636_v53  ;;  %v480_v5 = vor.u32 %v479_v4, %v478_v46 }
  0xe3   : > { %v483_v6 = vor.u32 %v482_v54, %v481_v48  ;;  %v486_v9 = vor.u32 %v485_v56, %v484_v50  ;;  %v489_v16 = vor.u32 %v488_v57, %v487_v51  ;;  %v855_v26 = vsub.s32 %v851_v20, %v854_v63 }
  0xe4   : > { %v639_v17 = vshrl.u32 %v621_v37, %v637_v58  ;;  %v642_v24 = vadd.s32 127, %v641_v61  ;;  %v477_v29 = vshrl.u32 %v2576_v21, %v476_v43  ;;  %vm493_vm14 = vcmp.lt.s32.totalorder %v2836_v38, 1 }
  0xe5   : > { %vm494_vm15 = vcmp.lt.s32.totalorder %v2836_v38, 2  ;;  %vm496_vm0 = vcmp.lt.s32.totalorder %v2836_v38, 4  ;;  %v857_v31 = vsub.s32 0, %v855_v26  ;;  %v492_v33 = vor.u32 %v491_v28, %v490_v52 }
  0xe6   : > { %v640_v8 = vor.u32 %v639_v17, %v638_v59  ;;  %v643_v30 = vshll.u32 %v642_v24, 23  ;;  %vm495_vm1 = vcmp.lt.s32.totalorder %v2836_v38, 3  ;;  %v498_v12 = vsel %vm496_vm0, %v486_v9, 2102212464 }
  0xe7   : > { %v501_v15 = vsel %vm493_vm14, %v480_v5, %v483_v6  ;;  %v502_v34 = vsel %vm496_vm0, %v489_v16, 920167782  ;;  %v2276_v35 = vmin.u32 %v857_v31, %v855_v26  ;;  %v497_v37 = vsel %vm493_vm14, %v477_v29, %v480_v5 }
  0xe8   : > { %v644_v55 = vor.u32 4788187, %v643_v30  ;;  %v647_v20 = vcvt.s32.f32 %v640_v8  ;;  %v499_v40 = vsel %vm495_vm1, %v483_v6, %v498_v12  ;;  %v503_v41 = vsel %vm495_vm1, %v486_v9, %v502_v34 }
  0xe9   : > { %v505_v43 = vsel %vm493_vm14, %v483_v6, %v486_v9  ;;  %v506_v46 = vsel %vm496_vm0, %v492_v33, 1326507024  ;;  %v859_v50 = vclz %v2276_v35  ;;  %v504_v51 = vsel %vm494_vm15, %v501_v15, %v503_v41 }
  0xea   : > { %v645_v48 = vand.u32 2147483647, %v644_v55  ;;  %v507_v4 = vsel %vm495_vm1, %v489_v16, %v506_v46  ;;  %v2876_v53 = vmul.u32.u64.low %v2838_v39, %v504_v51  ;;  %v2877_v54 = vmul.u32.u64.high %v2838_v39, %v504_v51, %v2876_v53 }
  0xeb   : > { %v508_v52 = vsel %vm494_vm15, %v505_v43, %v507_v4  ;;  %v694_v56 = vand.u32 8388607, %v687_v13  ;;  %v2277_v58 = vadd.s32 4294967294, %v859_v50  ;;  %v500_v63 = vsel %vm494_vm15, %v497_v37, %v499_v40 }
  0xec   : > { %v648_v57 = vmul.f32 %v647_v20, %v645_v48  ;;  %v2883_v59 = vmul.u32.u64.low %v2838_v39, %v508_v52  ;;  %v2884_v61 = vmul.u32.u64.high %v2838_v39, %v508_v52, %v2883_v59  ;;  %v697_v5 = vadd.s32 1, %v2271_v44 }
  0xed   : > { %v847_v16 = vadd.s32 %v2813_v1, %v2821_v11  ;;  %vm2278_vm4 = vcmp.lt.s32.totalorder %v2277_v58, 0  ;;  %v651_v17 = vsub.s32 4, %v2807_v47  ;;  %v519_v28 = vadd.s32 1, %v2877_v54 }
  0xee   : > { %v649_v9 = vxor.u32 2147483648, %v648_v57  ;;  %v862_v24 = vsel %vm2278_vm4, 0, %v2277_v58  ;;  %v695_v29 = vor.u32 8388608, %v694_v56  ;;  %vm698_vm5 = vcmp.gt.s32.totalorder %v697_v5, 0 }
  0xef   : > { %v863_v44 = vsub.s32 32, %v862_v24  ;;  %v867_v49 = vsub.s32 4294967266, %v862_v24  ;;  %v516_v8 = vmul.u32 %v2838_v39, %v500_v63  ;;  %v864_v30 = vshll.u32 %v855_v26, %v862_v24 }
  0xf0   : > { %v650_v38 = vsel %vm567_vm2, %v649_v9, %v648_v57  ;;  %vm518_vm6 = vc.u32 %v2884_v61, %v2876_v53  ;;  %v699_v1 = vsel %vm698_vm5, %v697_v5, 0  ;;  %v2908_v20 = vshll.u32 %v695_v29, 8 }
  0xf1   : > { %v653_v11 = vsel %vm2891_vm3, %v2738_v45, %v650_v38  ;;  %v865_v31 = vshrl.u32 %v847_v16, %v863_v44  ;;  %v868_v33 = vadd.s32 127, %v867_v49  ;;  %v520_v12 = vsel %vm518_vm6, %v519_v28, %v2877_v54 }
  0xf2   : > { %v700_v15 = vshrl.u32 %v699_v1, 5  ;;  %v521_v34 = vadd.s32 %v520_v12, %v516_v8  ;;  %v701_v55 = vand.u32 31, %v699_v1  ;;  %v652_v26 = vsel %vm567_vm2, %v651_v17, %v2807_v47 }
  0xf3   : > { %v866_v35 = vor.u32 %v865_v31, %v864_v30  ;;  %v869_v39 = vshll.u32 %v868_v33, 23  ;;  %2475 = vcosq.f32 %v653_v11  ;;  %v517_v7 = vadd.s32 %v2876_v53, %v2884_v61 }
  0xf4   : > { %v522_v37 = vadd.s32 536870912, %v521_v34  ;;  %v702_v40 = vsub.s32 32, %v701_v55  ;;  %v704_v41 = vshll.u32 %v2576_v21, %v701_v55  ;;  %vm719_vm7 = vcmp.lt.s32.totalorder %v700_v15, 1 }
  0xf5   : > { %v870_v43 = vor.u32 4788187, %v869_v39  ;;  %v873_v46 = vcvt.s32.f32 %v866_v35  ;;  %v707_v48 = vshll.u32 %v2577_v23, %v701_v55  ;;  %v710_v50 = vshll.u32 %v2578_v25, %v701_v55 }
  0xf6   : > { %v2916_v51 = vshrl.u32 %v522_v37, 30  ;;  %v705_v4 = vshrl.u32 %v2577_v23, %v702_v40  ;;  %v708_v52 = vshrl.u32 %v2578_v25, %v702_v40  ;;  %v713_v47 = vshll.u32 %v2579_v27, %v701_v55 }
  0xf7   : > { %v871_v54 = vand.u32 2147483647, %v870_v43  ;;  %v711_v56 = vshrl.u32 %v2579_v27, %v702_v40  ;;  %v714_v57 = vshrl.u32 %v2580_v32, %v702_v40  ;;  %v716_v58 = vshll.u32 %v2580_v32, %v701_v55 }
  0xf8   : > { %v524_v59 = vshll.u32 %v2916_v51, 30  ;;  %v706_v63 = vor.u32 %v705_v4, %v704_v41  ;;  %v709_v5 = vor.u32 %v708_v52, %v707_v48  ;;  %v717_v9 = vshrl.u32 %v2581_v36, %v702_v40 }
  0xf9   : > { %v874_v16 = vmul.f32 %v873_v46, %v871_v54  ;;  %v712_v17 = vor.u32 %v711_v56, %v710_v50  ;;  %v715_v24 = vor.u32 %v714_v57, %v713_v47  ;;  %vm720_vm8 = vcmp.lt.s32.totalorder %v700_v15, 2 }
  0xfa   : > { %v525_v28 = vsub.s32 %v521_v34, %v524_v59  ;;  %v703_v29 = vshrl.u32 %v2576_v21, %v702_v40  ;;  %v718_v38 = vor.u32 %v717_v9, %v716_v58  ;;  %vm722_vm9 = vcmp.lt.s32.totalorder %v700_v15, 4 }
  0xfb   : > { %vm721_vm10 = vcmp.lt.s32.totalorder %v700_v15, 3  ;;  %v724_v44 = vsel %vm722_vm9, %v712_v17, 2102212464  ;;  %v727_v49 = vsel %vm719_vm7, %v706_v63, %v709_v5  ;;  %v728_v8 = vsel %vm722_vm9, %v715_v24, 920167782 }
  0xfc   : > { %v875_v30 = vxor.u32 2147483648, %v874_v16  ;;  %v527_v1 = vsub.s32 0, %v525_v28  ;;  %v729_v31 = vsel %vm721_vm10, %v712_v17, %v728_v8  ;;  %v731_v33 = vsel %vm719_vm7, %v709_v5, %v712_v17 }
  0xfd   : > { %v723_v12 = vsel %vm719_vm7, %v703_v29, %v706_v63  ;;  %v725_v55 = vsel %vm721_vm10, %v709_v5, %v724_v44  ;;  %v730_v35 = vsel %vm720_vm8, %v727_v49, %v729_v31  ;;  %v732_v34 = vsel %vm722_vm9, %v718_v38, 1326507024 }
  0xfe   : > { %v2264_v39 = vmin.u32 %v527_v1, %v525_v28  ;;  %v733_v37 = vsel %vm721_vm10, %v715_v24, %v732_v34  ;;  %v2932_v40 = vmul.u32.u64.low %v2908_v20, %v730_v35  ;;  %v2933_v41 = vmul.u32.u64.high %v2908_v20, %v730_v35, %v2932_v40 }
  0xff   : > { %v734_v43 = vsel %vm720_vm8, %v731_v33, %v733_v37  ;;  %v654_v46 = vsel %vm2891_vm3, 0, %v652_v26  ;;  %2477 = vsinq.f32 %v653_v11  ;;  %v876_v50 = vsel %vm793_vm11, %v875_v30, %v874_v16 }
 0x100   : > { %v2476_v48 = vpop.eup %2475  ;;  %v529_v4 = vclz %v2264_v39  ;;  %v2943_v52 = vmul.u32.u64.low %v2908_v20, %v734_v43  ;;  %v2944_v47 = vmul.u32.u64.high %v2908_v20, %v734_v43, %v2943_v52  ;;  %v726_v54 = vsel %vm720_vm8, %v723_v12, %v725_v55 }
 0x101   : > { %v745_v57 = vadd.s32 1, %v2933_v41  ;;  %v877_v11 = vsub.s32 4, %v2845_v3  ;;  %v658_v26 = vadd.s32 3, %v654_v46  ;;  %v879_v58 = vsel %vm2950_vm12, %v2751_v2, %v876_v50 }
 0x102   : > { %v2265_v56 = vadd.s32 4294967294, %v529_v4  ;;  %v742_v15 = vmul.u32 %v2908_v20, %v726_v54  ;;  %vm744_vm14 = vc.u32 %v2944_v47, %v2932_v40  ;;  %2479 = vcosq.f32 %v879_v58 }
 0x103   : > { %v746_v63 = vsel %vm744_vm14, %v745_v57, %v2933_v41  ;;  %2481 = vsinq.f32 %v879_v58  ;;  %v878_v17 = vsel %vm793_vm11, %v877_v11, %v2845_v3  ;;  %v659_v24 = vand.u32 3, %v658_v26  ;;  %v679_v57 = vpop.permute.xlu1 %678 }
 0x104   : > { %vm2266_vm13 = vcmp.lt.s32.totalorder %v2265_v56, 0  ;;  %v747_v16 = vadd.s32 %v746_v63, %v742_v15  ;;  %v665_v49 = vxor.u32 2147483648, %v2476_v48  ;;  %v880_v53 = vsel %vm2950_vm12, 0, %v878_v17 }
 0x105   : > { %v532_v59 = vsel %vm2266_vm13, 0, %v2265_v56  ;;  %vm664_vm15 = vcmp.eq.s32.totalorder %v659_v24, 2  ;;  %v884_v12 = vadd.s32 3, %v880_v53  ;;  %vm661_vm0 = vcmp.eq.s32.totalorder %v659_v24, 0 }
 0x106   : > { %v533_v5 = vsub.s32 32, %v532_v59  ;;  %v537_v9 = vsub.s32 4294967266, %v532_v59  ;;  %v534_v20 = vshll.u32 %v525_v28, %v532_v59  ;;  %v748_v44 = vadd.s32 536870912, %v747_v16 }
 0x107   : > { %vm657_vm1 = vweird.f32 %v2738_v45  ;;  %vm660_vm2 = vcmp.lt.s32.totalorder %v659_v24, 2  ;;  %v885_v46 = vand.u32 3, %v884_v12  ;;  %vm883_vm3 = vweird.f32 %v2751_v2 }
 0x108   : > { %v535_v29 = vshrl.u32 %v517_v7, %v533_v5  ;;  %v538_v38 = vadd.s32 127, %v537_v9  ;;  %v2969_v30 = vshrl.u32 %v748_v44, 30  ;;  %vm463_vm4 = vcmp.lt.s32.totalorder %v2763_v19, 0 }
 0x109   : > { %v547_v11 = vsub.s32 4, %v2916_v51  ;;  %vm2980_vm5 = vcmp.le.f32.partialorder %v461_v14, 0.7853982  ;;  %vm887_vm6 = vcmp.eq.s32.totalorder %v885_v46, 0  ;;  %vm890_vm7 = vcmp.eq.s32.totalorder %v885_v46, 2 }
 0x10a   : > { %v536_v61 = vor.u32 %v535_v29, %v534_v20  ;;  %v539_v8 = vshll.u32 %v538_v38, 23  ;;  %v750_v33 = vshll.u32 %v2969_v30, 30  ;;  %vm886_vm8 = vcmp.lt.s32.totalorder %v885_v46, 2 }
 0x10b   : > { %v743_v38 = vadd.s32 %v2932_v40, %v2944_v47  ;;  %vm689_vm12 = vcmp.lt.s32.totalorder %v2826_v22, 0  ;;  %vm688_vm14 = vcmp.le.f32.partialorder %v687_v13, 0.7853982 }
 0x10c   : > { %v2478_v1 = vpop.eup %2477  ;;  %v540_v31 = vor.u32 4788187, %v539_v8  ;;  %v543_v35 = vcvt.s32.f32 %v536_v61  ;;  %v751_v34 = vsub.s32 %v747_v16, %v750_v33  ;;  %v548_v16 = vsel %vm463_vm4, %v547_v11, %v2916_v51 }
 0x10d   : > { %v662_v3 = vxor.u32 2147483648, %v2478_v1  ;;  %v666_v55 = vsel %vm664_vm15, %v665_v49, %v2478_v1  ;;  %v550_v53 = vsel %vm2980_vm5, 0, %v548_v16  ;;  %vm553_vm15 = vweird.f32 %v2763_v19 }
 0x10e   : > { %v541_v28 = vand.u32 2147483647, %v540_v31  ;;  %v753_v41 = vsub.s32 0, %v751_v34  ;;  %v2582_v31 = vmov 21  }
 0x10f   : > { %v663_v39 = vsel %vm661_vm0, %v2476_v48, %v662_v3  ;;  %v2480_v50 = vpop.eup %2479 }
 0x110   : > { %v544_v37 = vmul.f32 %v543_v35, %v541_v28  ;;  %v667_v43 = vsel %vm660_vm2, %v663_v39, %v666_v55  ;;  %v2482_v52 = vpop.eup %2481  ;;  %v2272_v56 = vmin.u32 %v753_v41, %v751_v34  ;;  %v891_v26 = vxor.u32 2147483648, %v2480_v50 }
 0x111   : > { %v668_v4 = vsel %vm657_vm1, nan, %v667_v43  ;;  %v888_v45 = vxor.u32 2147483648, %v2482_v52 }
 0x112   : > { %v545_v54 = vxor.u32 2147483648, %v544_v37  ;;  %v670_v6 = vmul.f32 %v668_v4, %v668_v4  ;;  %v755_v58 = vclz %v2272_v56  ;;  %v892_v9 = vsel %vm890_vm7, %v891_v26, %v2482_v52 }
 0x113   : > { %v889_v63 = vsel %vm887_vm6, %v2480_v50, %v888_v45  ;;  %vm922_vm6 = vcmask 154648   ;;  %vm933_vm7 = vcmask 171160  }
 0x114   : > { %v546_v48 = vsel %vm463_vm4, %v545_v54, %v544_v37  ;;  %v682_v59 = vmul.f32 %v679_v57, %v670_v6  ;;  %v2273_v5 = vadd.s32 4294967294, %v755_v58  ;;  %v893_v14 = vsel %vm886_vm8, %v889_v63, %v892_v9  ;;  %v674_v6 = vpop.permute.xlu0 %673 }
 0x115   : > { %v549_v7 = vsel %vm2980_vm5, %v2763_v19, %v546_v48  ;;  %v894_v24 = vsel %vm883_vm3, nan, %v893_v14  ;;  %vm779_vm3 = vweird.f32 %v2826_v22  ;;  %vm911_vm4 = vcmask 23552  }
 0x116   : > { %2483 = vcosq.f32 %v549_v7  ;;  %v684_v17 = vadd.f32 %v682_v59, %v2735_v42  ;;  %vm2274_vm9 = vcmp.lt.s32.totalorder %v2273_v5, 0  ;;  %v896_v29 = vmul.f32 %v894_v24, %v894_v24 }
 0x117   : > { %2485 = vsinq.f32 %v549_v7  ;;  %v758_v20 = vsel %vm2274_vm9, 0, %v2273_v5  ;;  %v554_v42 = vadd.s32 3, %v550_v53  ;;  %vm936_vm5 = vcmask 15360  }
 0x118   : > { %908 = vperm.xlu1 %2461, %v684_v17   ;;  %v759_v44 = vsub.s32 32, %v758_v20  ;;  %v763_v49 = vsub.s32 4294967266, %v758_v20  ;;  %v898_v51 = vmul.f32 %v896_v29, %v679_v57  ;;  %v760_v61 = vshll.u32 %v751_v34, %v758_v20 }
 0x119   : > { %v555_v40 = vand.u32 3, %v554_v42  ;;  %vm945_vm8 = vcmask 146448   ;;  %vm948_vm9 = vcmask 171152  }
 0x11a   : > { %v761_v8 = vshrl.u32 %v743_v38, %v759_v44  ;;  %v764_v1 = vadd.s32 127, %v763_v49  ;;  %v900_v2 = vadd.f32 %v898_v51, %v2746_v60  ;;  %v773_v60 = vsub.s32 4, %v2969_v30 }
 0x11b   : > { %vm560_vm10 = vcmp.eq.s32.totalorder %v555_v40, 2  ;;  %vm557_vm11 = vcmp.eq.s32.totalorder %v555_v40, 0  ;;  %vm556_vm13 = vcmp.lt.s32.totalorder %v555_v40, 2 }
 0x11c   : > { %2463 = vset.pattern.permute.xlu1 %v2582_v31  ;;  %v762_v33 = vor.u32 %v761_v8, %v760_v61  ;;  %v765_v12 = vshll.u32 %v764_v1, 23  ;;  %v774_v57 = vsel %vm689_vm12, %v773_v60, %v2969_v30  ;;  %v2588_v60 = vmov 0.0  }
 0x11d   : > { %930 = vperm.xlu1 %2463, %v900_v2   ;;  %v776_v45 = vsel %vm688_vm14, 0, %v774_v57  ;;  %1084 = vst.msk [vmem:[#allocation4 + $0x8] sm:$0xff] %vm911_vm4, %v2588_v60  ;;  %1083 = vst.msk [vmem:[#allocation4] sm:$0xff] %vm911_vm4, %v2588_v60 }
 0x11e   : > { %v766_v3 = vor.u32 4788187, %v765_v12  ;;  %v769_v55 = vcvt.s32.f32 %v762_v33  ;;  %v780_v48 = vadd.s32 3, %v776_v45 }
 0x120   : > { %v767_v47 = vand.u32 2147483647, %v766_v3  ;;  %v781_v19 = vand.u32 3, %v780_v48 }
 0x122   : > { %v770_v39 = vmul.f32 %v769_v55, %v767_v47  ;;  %vm786_vm0 = vcmp.eq.s32.totalorder %v781_v19, 2  ;;  %vm783_vm1 = vcmp.eq.s32.totalorder %v781_v19, 0  ;;  %vm782_vm2 = vcmp.lt.s32.totalorder %v781_v19, 2 }
 0x123   : > { %v2484_v28 = vpop.eup %2483 }
 0x124   : > { %v2486_v35 = vpop.eup %2485  ;;  %v561_v37 = vxor.u32 2147483648, %v2484_v28  ;;  %v771_v41 = vxor.u32 2147483648, %v770_v39 }
 0x125   : > { %v558_v34 = vxor.u32 2147483648, %v2486_v35 }
 0x126   : > { %v562_v43 = vsel %vm560_vm10, %v561_v37, %v2486_v35  ;;  %v772_v50 = vsel %vm689_vm12, %v771_v41, %v770_v39  ;;  %vm1095_vm10 = vcmask 179352   ;;  %vm1203_vm12 = vcmask 916480  }
 0x127   : > { %v559_v46 = vsel %vm557_vm11, %v2484_v28, %v558_v34  ;;  %v775_v52 = vsel %vm688_vm14, %v2826_v22, %v772_v50  ;;  %vm3638_vm11 = vcmask 130048  }
 0x128   : > { %v563_v4 = vsel %vm556_vm13, %v559_v46, %v562_v43  ;;  %2487 = vcosq.f32 %v775_v52 }
 0x129   : > { %v564_v54 = vsel %vm553_vm15, nan, %v563_v4  ;;  %2489 = vsinq.f32 %v775_v52 }
 0x12a   : > { %v669_v56 = vmul.f32 %v564_v54, %v564_v54 }
 0x12c   : > { %v681_v11 = vmul.f32 %v674_v6, %v669_v56 }
 0x12e   : > { %v683_v26 = vadd.f32 %v681_v11, %v2755_v10 }
 0x130   : > { %903 = vperm.xlu0 %2462, %v683_v26  }
 0x134   : > { %918 = vrot.lane.b32.xlu0 %v900_v2, %s2583_s17 }
 0x135   : > { %2464 = vset.pattern.permute.xlu0 %v2569_v0  ;;  %v2488_v13 = vpop.eup %2487 }
 0x136   : > { %v2490_v58 = vpop.eup %2489  ;;  %v787_v15 = vxor.u32 2147483648, %v2488_v13 }
 0x137   : > { %v784_v30 = vxor.u32 2147483648, %v2490_v58 }
 0x138   : > { %941 = vrot.lane.b32.xlu0 %v684_v17, %s2583_s17  ;;  %v788_v7 = vsel %vm786_vm0, %v787_v15, %v2490_v58 }
 0x139   : > { %v785_v59 = vsel %vm783_vm1, %v2488_v13, %v784_v30 }
 0x13a   : > { %v789_v10 = vsel %vm782_vm2, %v785_v59, %v788_v7 }
 0x13b   : > { %v790_v63 = vsel %vm779_vm3, nan, %v789_v10 }
 0x13c   : > { %v895_v5 = vmul.f32 %v790_v63, %v790_v63 }
 0x13e   : > { %v897_v9 = vmul.f32 %v895_v5, %v674_v6 }
 0x140   : > { %v899_v16 = vadd.f32 %v897_v9, %v2793_v18 }
 0x142   : > { %926 = vperm.xlu1 %2463, %v899_v16  }
 0x146   : > { %916 = vrot.lane.b32.xlu1 %v899_v16, %s2583_s17 }
 0x147   : > { %2465 = vset.pattern.permute.xlu1 %v2569_v0 }
 0x14a   : > { %939 = vrot.lane.b32.xlu1 %v683_v26, %s2583_s17 }
 0x193   : > { %v909_v14 = vpop.permute.xlu1 %908 }
 0x194   : > { %913 = vst.msk [vmem:[#allocation2 + $0x8] sm:$0xff] %vm911_vm4, %v909_v14 }
 0x195   : > { %938 = vst.msk [vmem:[#allocation3 + $0x8] sm:$0xff] %vm936_vm5, %v909_v14 }
 0x198   : > { %v931_v17 = vpop.permute.xlu1 %930 }
 0x1ab   : > { %v904_v22 = vpop.permute.xlu0 %903 }
 0x1ac   : > { %912 = vst.msk [vmem:[#allocation2] sm:$0xff] %vm911_vm4, %v904_v22 }
 0x1ad   : > { %937 = vst.msk [vmem:[#allocation3] sm:$0xff] %vm936_vm5, %v904_v22 }
 0x1af   : > { %v919_v18 = vpop.permute.xlu0 %918 }
 0x1b0   : > { %924 = vst.msk [vmem:[#allocation2 + $0x8] sm:$0xff] %vm922_vm6, %v919_v18 }
 0x1b1   : > { %935 = vst.msk [vmem:[#allocation2 + $0x8] sm:$0xff] %vm933_vm7, %v931_v17 }
 0x1b3   : > { %v942_v24 = vpop.permute.xlu0 %941 }
 0x1b4   : > { %947 = vst.msk [vmem:[#allocation3 + $0x8] sm:$0xff] %vm945_vm8, %v942_v24 }
 0x1b5   : > { %950 = vst.msk [vmem:[#allocation3 + $0x8] sm:$0xff] %vm948_vm9, %v931_v17 }
 0x1b8   : > { %v952_v20 = vld [vmem:[#allocation2 + $0x8] sm:$0xff] }
 0x1b9   : > { %v964_v29 = vmul.f32 -0.025543464, %v952_v20  ;;  %v988_v53 = vmul.f32 0.12857261, %v952_v20  ;;  %v1012_v1 = vmul.f32 0.4432098, %v952_v20 }
 0x1ba   : > { %v1036_v40 = vmul.f32 -0.057657376, %v952_v20  ;;  %v1060_v35 = vmul.f32 0.009389464, %v952_v20  ;;  %v954_v6 = vmul.f32 0.0020289666, %v952_v20 }
 0x1bb   : > { %969 = vrot.lane.b32.xlu0 %v964_v29, %s2584_s21 }
 0x1bc   : > { %v958_v38 = vld [vmem:[#allocation3 + $0x8] sm:$0xff] }
 0x1bd   : > { %v976_v44 = vmul.f32 -0.057657376, %v958_v38  ;;  %v927_v49 = vpop.permute.xlu1 %926  ;;  %v1000_v61 = vmul.f32 0.4432098, %v958_v38  ;;  %v1024_v33 = vmul.f32 0.12857261, %v958_v38 }
 0x1be   : > { %v1048_v55 = vmul.f32 -0.025543464, %v958_v38  ;;  %v1072_v37 = vmul.f32 0.0020289666, %v958_v38  ;;  %v960_v57 = vmul.f32 0.009389464, %v958_v38 }
 0x1bf   : > { %981 = vrot.lane.b32.xlu0 %v976_v44, %s2584_s21 }
 0x1c0   : > { %v962_v45 = vadd.f32 %v960_v57, %v954_v6 }
 0x1c1   : > { %v917_v51 = vpop.permute.xlu1 %916 }
 0x1c2   : > { %923 = vst.msk [vmem:[#allocation2] sm:$0xff] %vm922_vm6, %v917_v51 }
 0x1c3   : > { %993 = vrot.lane.b32.xlu0 %v988_v53, %s2585_s23  ;;  %934 = vst.msk [vmem:[#allocation2] sm:$0xff] %vm933_vm7, %v927_v49 }
 0x1c5   : > { %v940_v8 = vpop.permute.xlu1 %939 }
 0x1c6   : > { %946 = vst.msk [vmem:[#allocation3] sm:$0xff] %vm945_vm8, %v940_v8 }
 0x1c7   : > { %1005 = vrot.lane.b32.xlu0 %v1000_v61, %s2585_s23  ;;  %949 = vst.msk [vmem:[#allocation3] sm:$0xff] %vm948_vm9, %v927_v49 }
 0x1ca   : > { %v951_v42 = vld [vmem:[#allocation2] sm:$0xff] }
 0x1cb   : > { %1017 = vrot.lane.b32.xlu0 %v1012_v1, %s2583_s17  ;;  %v963_v2 = vmul.f32 -0.025543464, %v951_v42  ;;  %v987_v47 = vmul.f32 0.12857261, %v951_v42  ;;  %v1011_v39 = vmul.f32 0.4432098, %v951_v42 }
 0x1cc   : > { %v1035_v41 = vmul.f32 -0.057657376, %v951_v42  ;;  %v1059_v46 = vmul.f32 0.009389464, %v951_v42  ;;  %v953_v17 = vmul.f32 0.0020289666, %v951_v42 }
 0x1cd   : > { %967 = vrot.lane.b32.xlu1 %v963_v2, %s2584_s21 }
 0x1ce   : > { %v957_v12 = vld [vmem:[#allocation3] sm:$0xff] }
 0x1cf   : > { %1029 = vrot.lane.b32.xlu0 %v1024_v33, %s2583_s17  ;;  %v975_v3 = vmul.f32 -0.057657376, %v957_v12  ;;  %v999_v28 = vmul.f32 0.4432098, %v957_v12  ;;  %v1023_v34 = vmul.f32 0.12857261, %v957_v12 }
 0x1d0   : > { %v1047_v43 = vmul.f32 -0.025543464, %v957_v12  ;;  %v1071_v50 = vmul.f32 0.0020289666, %v957_v12  ;;  %v959_v22 = vmul.f32 0.009389464, %v957_v12 }
 0x1d1   : > { %979 = vrot.lane.b32.xlu1 %v975_v3, %s2584_s21 }
 0x1d2   : > { %v961_v38 = vadd.f32 %v959_v22, %v953_v17 }
 0x1d3   : > { %1041 = vrot.lane.b32.xlu0 %v1036_v40, %s2586_s24 }
 0x1d5   : > { %991 = vrot.lane.b32.xlu1 %v987_v47, %s2585_s23 }
 0x1d7   : > { %1053 = vrot.lane.b32.xlu0 %v1048_v55, %s2586_s24 }
 0x1d9   : > { %1003 = vrot.lane.b32.xlu1 %v999_v28, %s2585_s23 }
 0x1db   : > { %1065 = vrot.lane.b32.xlu0 %v1060_v35, %s3634_s14 }
 0x1dd   : > { %1015 = vrot.lane.b32.xlu1 %v1011_v39, %s2583_s17 }
 0x1df   : > { %1077 = vrot.lane.b32.xlu0 %v1072_v37, %s3634_s14 }
 0x1e1   : > { %1027 = vrot.lane.b32.xlu1 %v1023_v34, %s2583_s17 }
 0x1e5   : > { %1039 = vrot.lane.b32.xlu1 %v1035_v41, %s2586_s24  ;;  %v1189_v41 = vld [vmem:[%s3621_s3] sm:$0xff] }
 0x1e6   : > { %2354 = vmatprep.mubr.msk.f32.mxu0 %vm1203_vm12, %v1189_v41 }
 0x1e9   : > { %1051 = vrot.lane.b32.xlu1 %v1047_v43, %s2586_s24  ;;  %v1192_v43 = vld [vmem:[%s3622_s4 + $0x8] sm:$0xff] }
 0x1ed   : > { %1063 = vrot.lane.b32.xlu1 %v1059_v46, %s3634_s14 }
 0x1f1   : > { %1075 = vrot.lane.b32.xlu1 %v1071_v50, %s3634_s14 }
 0x22d   : > { %v970_v4 = vpop.permute.xlu0 %969 }
 0x22e   : > { %v974_v26 = vadd.f32 %v970_v4, %v962_v45 }
 0x231   : > { %v982_v52 = vpop.permute.xlu0 %981 }
 0x232   : > { %v986_v13 = vadd.f32 %v982_v52, %v974_v26 }
 0x235   : > { %v994_v54 = vpop.permute.xlu0 %993 }
 0x236   : > { %v998_v58 = vadd.f32 %v994_v54, %v986_v13 }
 0x239   : > { %v1006_v56 = vpop.permute.xlu0 %1005 }
 0x23a   : > { %v1010_v7 = vadd.f32 %v1006_v56, %v998_v58 }
 0x23d   : > { %v1018_v11 = vpop.permute.xlu0 %1017 }
 0x23e   : > { %v1022_v59 = vadd.f32 %v1018_v11, %v1010_v7 }
 0x23f   : > { %v968_v48 = vpop.permute.xlu1 %967 }
 0x240   : > { %v973_v49 = vadd.f32 %v968_v48, %v961_v38 }
 0x241   : > { %v1030_v19 = vpop.permute.xlu0 %1029 }
 0x242   : > { %v1034_v5 = vadd.f32 %v1030_v19, %v1022_v59 }
 0x243   : > { %v980_v15 = vpop.permute.xlu1 %979 }
 0x244   : > { %v985_v51 = vadd.f32 %v980_v15, %v973_v49  ;;  %v2590_v49 = vmov 15  }
 0x245   : > { %v1042_v30 = vpop.permute.xlu0 %1041 }
 0x246   : > { %v1046_v9 = vadd.f32 %v1042_v30, %v1034_v5 }
 0x247   : > { %v992_v10 = vpop.permute.xlu1 %991 }
 0x248   : > { %v997_v61 = vadd.f32 %v992_v10, %v985_v51  ;;  %v1315_v51 = vld [vmem:[%s3623_s5] sm:$0xff] }
 0x249   : > { %v1054_v63 = vpop.permute.xlu0 %1053 }
 0x24a   : > { %v1058_v18 = vadd.f32 %v1054_v63, %v1046_v9 }
 0x24b   : > { %v1004_v16 = vpop.permute.xlu1 %1003 }
 0x24c   : > { %v1009_v1 = vadd.f32 %v1004_v16, %v997_v61 }
 0x24d   : > { %v1066_v14 = vpop.permute.xlu0 %1065 }
 0x24e   : > { %v1070_v24 = vadd.f32 %v1066_v14, %v1058_v18  ;;  %v1190_v18 = vld [vmem:[%s3621_s3 + $0x8] sm:$0xff] }
 0x24f   : > { %v1016_v20 = vpop.permute.xlu1 %1015 }
 0x250   : > { %v1021_v2 = vadd.f32 %v1016_v20, %v1009_v1 }
 0x251   : > { %v1078_v29 = vpop.permute.xlu0 %1077 }
 0x252   : > { %v1082_v44 = vadd.f32 %v1078_v29, %v1070_v24 }
 0x253   : > { %v1028_v53 = vpop.permute.xlu1 %1027 }
 0x254   : > { %1089 = vrot.lane.b32.xlu0 %v1082_v44, %s2572_s28  ;;  %v1033_v3 = vadd.f32 %v1028_v53, %v1021_v2  ;;  %v1316_v53 = vld [vmem:[%s3623_s5 + $0x8] sm:$0xff] }
 0x257   : > { %v1040_v8 = vpop.permute.xlu1 %1039 }
 0x258   : > { %v1045_v40 = vadd.f32 %v1040_v8, %v1033_v3 }
 0x25b   : > { %v1052_v33 = vpop.permute.xlu1 %1051 }
 0x25c   : > { %v1057_v47 = vadd.f32 %v1052_v33, %v1045_v40 }
 0x25f   : > { %v1064_v12 = vpop.permute.xlu1 %1063 }
 0x260   : > { %v1069_v42 = vadd.f32 %v1064_v12, %v1057_v47 }
 0x263   : > { %v1076_v55 = vpop.permute.xlu1 %1075 }
 0x264   : > { %v1081_v28 = vadd.f32 %v1076_v55, %v1069_v42 }
 0x266   : > { %1087 = vrot.lane.b32.xlu1 %v1081_v28, %s2572_s28 }
 0x2c6   : > { %v1090_v35 = vpop.permute.xlu0 %1089 }
 0x2c7   : > { %1094 = vst.msk [vmem:[#allocation4 + $0x8] sm:$0xff] %vm922_vm6, %v1090_v35 }
 0x2c8   : > { %1097 = vst.msk [vmem:[#allocation4 + $0x8] sm:$0xff] %vm1095_vm10, %v2588_v60 }
 0x2cf   : > { %v1164_v39 = vld [vmem:[#allocation4 + $0x8] sm:$0xff] }
 0x2d0   : > { %1169 = vrot.lane.b32.xlu0 %v1164_v39, %s2589_s16  ;;  %1102 = vst.msk [vmem:[#allocation5 + $0x8] sm:$0xff] %vm3638_vm11, %v1164_v39 }
 0x2d4   : > { %1157 = vrot.lane.b32.xlu0 %v1164_v39, %s3634_s14 }
 0x2d7   : > { %v1176_v14 = vld [vmem:[#allocation5 + $0x8] sm:$0xff] }
 0x2d8   : > { %1145 = vrot.lane.b32.xlu0 %v1164_v39, %s2586_s24  ;;  %v1088_v37 = vpop.permute.xlu1 %1087 }
 0x2d9   : > { %1093 = vst.msk [vmem:[#allocation4] sm:$0xff] %vm922_vm6, %v1088_v37 }
 0x2da   : > { %1096 = vst.msk [vmem:[#allocation4] sm:$0xff] %vm1095_vm10, %v2588_v60  ;;  %v1191_v60 = vld [vmem:[%s3622_s4] sm:$0xff] }
 0x2dc   : > { %1133 = vrot.lane.b32.xlu0 %v1164_v39, %s2583_s17 }
 0x2e0   : > { %1121 = vrot.lane.b32.xlu0 %v1164_v39, %s2585_s23 }
 0x2e1   : > { %v1163_v34 = vld [vmem:[#allocation4] sm:$0xff] }
 0x2e2   : > { %1167 = vrot.lane.b32.xlu1 %v1163_v34, %s2589_s16  ;;  %1101 = vst.msk [vmem:[#allocation5] sm:$0xff] %vm3638_vm11, %v1163_v34 }
 0x2e4   : > { %1109 = vrot.lane.b32.xlu0 %v1164_v39, %s2584_s21 }
 0x2e6   : > { %1155 = vrot.lane.b32.xlu1 %v1163_v34, %s3634_s14 }
 0x2e8   : > { %1200 = vperm.xlu0 %2464, %v1192_v43  }
 0x2e9   : > { %v1175_v22 = vld [vmem:[#allocation5] sm:$0xff] }
 0x2ea   : > { %1143 = vrot.lane.b32.xlu1 %v1163_v34, %s2586_s24 }
 0x2ee   : > { %1131 = vrot.lane.b32.xlu1 %v1163_v34, %s2583_s17 }
 0x2f2   : > { %1119 = vrot.lane.b32.xlu1 %v1163_v34, %s2585_s23 }
 0x2f6   : > { %1107 = vrot.lane.b32.xlu1 %v1163_v34, %s2584_s21 }
 0x2fa   : > { %1195 = vperm.xlu1 %2465, %v1191_v60  }
 0x342   : > { %v1170_v46 = vpop.permute.xlu0 %1169 }
 0x343   : > { %1174 = vst.msk [vmem:[#allocation5 + $0x68] sm:$0xff] %vm3638_vm11, %v1170_v46  ;;  %v1317_v46 = vld [vmem:[%s3624_s6] sm:$0xff] }
 0x346   : > { %v1158_v50 = vpop.permute.xlu0 %1157 }
 0x347   : > { %1162 = vst.msk [vmem:[#allocation5 + $0x58] sm:$0xff] %vm3638_vm11, %v1158_v50 }
 0x34a   : > { %v1188_v4 = vld [vmem:[#allocation5 + $0x68] sm:$0xff]  ;;  %v1146_v52 = vpop.permute.xlu0 %1145 }
 0x34b   : > { %2326 = vmatprep.subr.mxu0 %v1188_v4  ;;  %1150 = vst.msk [vmem:[#allocation5 + $0x48] sm:$0xff] %vm3638_vm11, %v1146_v52 }
 0x34c   : > { %2327 = vmatpush3.msra.mxu0 %v1188_v4  ;;  %v1318_v4 = vld [vmem:[%s3624_s6 + $0x8] sm:$0xff] }
 0x34e   : > { %v1134_v54 = vpop.permute.xlu0 %1133  ;;  %v1186_v48 = vld [vmem:[#allocation5 + $0x58] sm:$0xff] }
 0x34f   : > { %1138 = vst.msk [vmem:[#allocation5 + $0x38] sm:$0xff] %vm3638_vm11, %v1134_v54 }
 0x352   : > { %v1122_v56 = vpop.permute.xlu0 %1121  ;;  %v1184_v58 = vld [vmem:[#allocation5 + $0x48] sm:$0xff] }
 0x353   : > { %1126 = vst.msk [vmem:[#allocation5 + $0x28] sm:$0xff] %vm3638_vm11, %v1122_v56 }
 0x354   : > { %v1168_v57 = vpop.permute.xlu1 %1167 }
 0x355   : > { %1173 = vst.msk [vmem:[#allocation5 + $0x60] sm:$0xff] %vm3638_vm11, %v1168_v57 }
 0x356   : > { %v1110_v6 = vpop.permute.xlu0 %1109  ;;  %v1182_v7 = vld [vmem:[#allocation5 + $0x38] sm:$0xff] }
 0x357   : > { %1114 = vst.msk [vmem:[#allocation5 + $0x18] sm:$0xff] %vm3638_vm11, %v1110_v6 }
 0x358   : > { %v1156_v11 = vpop.permute.xlu1 %1155 }
 0x359   : > { %1161 = vst.msk [vmem:[#allocation5 + $0x50] sm:$0xff] %vm3638_vm11, %v1156_v11 }
 0x35a   : > { %v1180_v63 = vld [vmem:[#allocation5 + $0x28] sm:$0xff] }
 0x35c   : > { %v1144_v45 = vpop.permute.xlu1 %1143  ;;  %v1187_v26 = vld [vmem:[#allocation5 + $0x60] sm:$0xff] }
 0x35d   : > { %1149 = vst.msk [vmem:[#allocation5 + $0x40] sm:$0xff] %vm3638_vm11, %v1144_v45  ;;  %2328 = vmatprep.subr.mxu0 %v1187_v26 }
 0x35e   : > { %2329 = vmatpush3.msra.mxu0 %v1187_v26  ;;  %v1178_v9 = vld [vmem:[#allocation5 + $0x18] sm:$0xff] }
 0x35f   : > { %2330 = vmatprep.subr.mxu0 %v1186_v48 }
 0x360   : > { %v1132_v19 = vpop.permute.xlu1 %1131  ;;  %2331 = vmatpush3.msra.mxu0 %v1186_v48  ;;  %v1185_v13 = vld [vmem:[#allocation5 + $0x50] sm:$0xff] }
 0x361   : > { %1137 = vst.msk [vmem:[#allocation5 + $0x30] sm:$0xff] %vm3638_vm11, %v1132_v19  ;;  %2332 = vmatprep.subr.mxu0 %v1185_v13 }
 0x362   : > { %2333 = vmatpush3.msra.mxu0 %v1185_v13 }
 0x363   : > { %2334 = vmatprep.subr.mxu0 %v1184_v58  ;;  %v1201_v17 = vpop.permute.xlu0 %1200 }
 0x364   : > { %v1120_v15 = vpop.permute.xlu1 %1119  ;;  %2335 = vmatpush3.msra.mxu0 %v1184_v58  ;;  %v1183_v30 = vld [vmem:[#allocation5 + $0x40] sm:$0xff] }
 0x365   : > { %1125 = vst.msk [vmem:[#allocation5 + $0x20] sm:$0xff] %vm3638_vm11, %v1120_v15  ;;  %2336 = vmatprep.subr.mxu0 %v1183_v30 }
 0x366   : > { %2337 = vmatpush3.msra.mxu0 %v1183_v30 }
 0x367   : > { %2338 = vmatprep.subr.mxu0 %v1182_v7 }
 0x368   : > { %v1108_v59 = vpop.permute.xlu1 %1107  ;;  %2339 = vmatpush3.msra.mxu0 %v1182_v7  ;;  %v1181_v10 = vld [vmem:[#allocation5 + $0x30] sm:$0xff] }
 0x369   : > { %1113 = vst.msk [vmem:[#allocation5 + $0x10] sm:$0xff] %vm3638_vm11, %v1108_v59  ;;  %2340 = vmatprep.subr.mxu0 %v1181_v10 }
 0x36a   : > { %2341 = vmatpush3.msra.mxu0 %v1181_v10 }
 0x36b   : > { %2342 = vmatprep.subr.mxu0 %v1180_v63 }
 0x36c   : > { %2343 = vmatpush3.msra.mxu0 %v1180_v63  ;;  %v1179_v5 = vld [vmem:[#allocation5 + $0x20] sm:$0xff] }
 0x36d   : > { %2344 = vmatprep.subr.mxu0 %v1179_v5 }
 0x36e   : > { %2345 = vmatpush3.msra.mxu0 %v1179_v5 }
 0x36f   : > { %2346 = vmatprep.subr.mxu0 %v1178_v9 }
 0x370   : > { %2347 = vmatpush3.msra.mxu0 %v1178_v9  ;;  %v1177_v16 = vld [vmem:[#allocation5 + $0x10] sm:$0xff] }
 0x371   : > { %2348 = vmatprep.subr.mxu0 %v1177_v16 }
 0x372   : > { %2349 = vmatpush3.msra.mxu0 %v1177_v16 }
 0x373   : > { %2350 = vmatprep.subr.mxu0 %v1176_v14 }
 0x374   : > { %2351 = vmatpush3.msra.mxu0 %v1176_v14 }
 0x375   : > { %2352 = vmatprep.subr.mxu0 %v1175_v22  ;;  %v1196_v20 = vpop.permute.xlu1 %1195 }
 0x376   : > { %2353 = vmatpush3.msra.mxu0 %v1175_v22 }
 0x377   : > { %2355 = vmatmul.mubr.msk.f32.vlgmr.msra.gmra.mxu0 %vm1203_vm12, %v1190_v18 }
 0x437   : > { %v2356_v24 = vpop.f32.mrf.mxu0 }
 0x438   : > { %v1282_v29 = vadd.f32 %v2356_v24, %v1201_v17 }
 0x439   : > { %v1276_v38 = vpop.f32.mrf.mxu0 }
 0x43a   : > { %v1277_v44 = vadd.f32 %v1276_v38, %v1196_v20  ;;  %1292 = vperm.xlu1 %2465, %v1282_v29  }
 0x43c   : > { %1287 = vperm.xlu0 %2464, %v1277_v44  }
 0x43e   : > { %2466 = vset.pattern.permute.xlu1 %v2590_v49 }
 0x43f   : > { %1310 = vperm.xlu1 %2466, %v1282_v29  }
 0x440   : > { %2467 = vset.pattern.permute.xlu0 %v2590_v49 }
 0x441   : > { %1306 = vperm.xlu0 %2467, %v1277_v44  }
 0x443   : > { %1299 = vrot.lane.b32.xlu1 %v1282_v29, %s2572_s28 }
 0x444   : > { %2469 = vset.pattern.permute.xlu1 %v2569_v0 }
 0x445   : > { %2468 = vset.pattern.permute.xlu0 %v2569_v0 }
 0x446   : > { %1440 = vperm.xlu0 %2468, %v1316_v53  }
 0x447   : > { %1297 = vrot.lane.b32.xlu1 %v1277_v44, %s2572_s28 }
 0x44a   : > { %1435 = vperm.xlu0 %2468, %v1315_v51  }
 0x4b5   : > { %v1293_v61 = vpop.permute.xlu1 %1292 }
 0x4b6   : > { %1296 = vst.msk [vmem:[#allocation6 + $0x8] sm:$0xff] %vm911_vm4, %v1293_v61 }
 0x4b7   : > { %v1288_v8 = vpop.permute.xlu0 %1287 }
 0x4b8   : > { %1295 = vst.msk [vmem:[#allocation6] sm:$0xff] %vm911_vm4, %v1288_v8 }
 0x4ba   : > { %v1311_v1 = vpop.permute.xlu1 %1310 }
 0x4bc   : > { %v1307_v3 = vpop.permute.xlu0 %1306 }
 0x4be   : > { %v1300_v2 = vpop.permute.xlu1 %1299 }
 0x4bf   : > { %1304 = vst.msk [vmem:[#allocation6 + $0x8] sm:$0xff] %vm922_vm6, %v1300_v2 }
 0x4c0   : > { %1314 = vst.msk [vmem:[#allocation6 + $0x8] sm:$0xff] %vm1095_vm10, %v1311_v1 }
 0x4c1   : > { %v3144_v52 = vpop.permute.xlu0 %1440 }
 0x4c2   : > { %v1298_v33 = vpop.permute.xlu1 %1297 }
 0x4c3   : > { %1303 = vst.msk [vmem:[#allocation6] sm:$0xff] %vm922_vm6, %v1298_v33 }
 0x4c4   : > { %1313 = vst.msk [vmem:[#allocation6] sm:$0xff] %vm1095_vm10, %v1307_v3 }
 0x4c5   : > { %v3146_v54 = vpop.permute.xlu0 %1435 }
 0x4c7   : > { %v1320_v40 = vld [vmem:[#allocation6 + $0x8] sm:$0xff] }
 0x4c8   : > { %v1354_v12 = vmul.f32 0.4432098, %v1320_v40  ;;  %v1330_v47 = vmul.f32 -0.057657376, %v1320_v40  ;;  %v1366_v42 = vmul.f32 0.12857261, %v1320_v40 }
 0x4c9   : > { %v1342_v55 = vmul.f32 -0.025543464, %v1320_v40  ;;  %v3119_v28 = vmul.f32 0.0020289666, %v1320_v40  ;;  %v1322_v50 = vmul.f32 0.009389464, %v1320_v40 }
 0x4ca   : > { %1359 = vrot.lane.b32.xlu1 %v1354_v12, %s3647_s26  ;;  %1335 = vrot.lane.b32.xlu0 %v1330_v47, %s3648_s27 }
 0x4cb   : > { %v1319_v35 = vld [vmem:[#allocation6] sm:$0xff] }
 0x4cc   : > { %v1329_v39 = vmul.f32 -0.057657376, %v1319_v35  ;;  %v1341_v37 = vmul.f32 -0.025543464, %v1319_v35  ;;  %v1353_v34 = vmul.f32 0.4432098, %v1319_v35 }
 0x4cd   : > { %v1365_v41 = vmul.f32 0.12857261, %v1319_v35  ;;  %v1325_v43 = vmul.f32 0.0020289666, %v1319_v35  ;;  %v1321_v60 = vmul.f32 0.009389464, %v1319_v35 }
 0x4ce   : > { %1379 = vrot.lane.b32.xlu1 %v1366_v42, %s2572_s28  ;;  %1347 = vrot.lane.b32.xlu0 %v1342_v55, %s3648_s27 }
 0x4d2   : > { %1395 = vrot.lane.b32.xlu1 %v1342_v55, %s3649_s29  ;;  %1371 = vrot.lane.b32.xlu0 %v1366_v42, %s3647_s26 }
 0x4d6   : > { %1413 = vrot.lane.b32.xlu1 %v3119_v28, %s3650_s22  ;;  %1387 = vrot.lane.b32.xlu0 %v1354_v12, %s2572_s28 }
 0x4da   : > { %1403 = vrot.lane.b32.xlu0 %v1330_v47, %s3649_s29  ;;  %1333 = vrot.lane.b32.xlu1 %v1329_v39, %s3648_s27 }
 0x4de   : > { %1345 = vrot.lane.b32.xlu0 %v1341_v37, %s3648_s27  ;;  %1357 = vrot.lane.b32.xlu1 %v1353_v34, %s3647_s26 }
 0x4e2   : > { %1369 = vrot.lane.b32.xlu0 %v1365_v41, %s3647_s26  ;;  %1377 = vrot.lane.b32.xlu1 %v1365_v41, %s2572_s28 }
 0x4e6   : > { %1385 = vrot.lane.b32.xlu1 %v1353_v34, %s2572_s28  ;;  %1411 = vrot.lane.b32.xlu0 %v1325_v43, %s3650_s22 }
 0x4ea   : > { %1393 = vrot.lane.b32.xlu1 %v1341_v37, %s3649_s29  ;;  %1421 = vrot.lane.b32.xlu0 %v1321_v60, %s3650_s22 }
 0x4ee   : > { %1401 = vrot.lane.b32.xlu1 %v1329_v39, %s3649_s29  ;;  %1657 = vperm.xlu0 %2468, %v1317_v46   ;;  %s3660_s29 = smov 123  }
 0x4f2   : > { %1423 = vrot.lane.b32.xlu1 %v1322_v50, %s3650_s22  ;;  %2472 = vset.pattern.permute.xlu0 %v2575_v62  ;;  %s2305_s22 = sshll.u32 %s2665_s13, 8  ;;  %s2591_s13 = smov [#allocation7]  }
 0x4f3   : > { %s3574_s16 = scalar_lea.hbm %s3627_s9, %s2305_s22 }
 0x4f6   : > { %1662 = vperm.xlu1 %2469, %v1318_v4  }
 0x4fa   : > { %2470 = vset.pattern.permute.xlu1 %v2575_v62 }
 0x53c   : > { %v1360_v56 = vpop.permute.xlu1 %1359  ;;  %v1336_v57 = vpop.permute.xlu0 %1335 }
 0x53d   : > { %v1340_v6 = vadd.f32 %v1336_v57, %v1322_v50 }
 0x53f   : > { %v1364_v26 = vadd.f32 %v1360_v56, %v1340_v6 }
 0x540   : > { %v1380_v11 = vpop.permute.xlu1 %1379  ;;  %v1348_v45 = vpop.permute.xlu0 %1347 }
 0x541   : > { %v1384_v13 = vadd.f32 %v1380_v11, %v1364_v26  ;;  %v1352_v61 = vadd.f32 %v1348_v45, %v3119_v28 }
 0x544   : > { %v1396_v48 = vpop.permute.xlu1 %1395  ;;  %v1372_v19 = vpop.permute.xlu0 %1371 }
 0x545   : > { %v1400_v58 = vadd.f32 %v1396_v48, %v1384_v13  ;;  %v1376_v40 = vadd.f32 %v1372_v19, %v1352_v61 }
 0x548   : > { %v1414_v15 = vpop.permute.xlu1 %1413  ;;  %v1388_v30 = vpop.permute.xlu0 %1387 }
 0x549   : > { %v1418_v7 = vadd.f32 %v1414_v15, %v1400_v58  ;;  %v1392_v55 = vadd.f32 %v1388_v30, %v1376_v40 }
 0x54b   : > { %v3148_v59 = vmul.f32 2.0, %v1418_v7 }
 0x54c   : > { %v1334_v62 = vpop.permute.xlu1 %1333  ;;  %v1404_v10 = vpop.permute.xlu0 %1403 }
 0x54d   : > { %v3152_v63 = vmul.f32 %v3144_v52, %v3148_v59  ;;  %v1339_v20 = vadd.f32 %v1334_v62, %v1321_v60  ;;  %v1408_v28 = vadd.f32 %v1404_v10, %v1392_v55 }
 0x54f   : > { %v1552_v5 = vand.u32 2139095040, %v3152_v63  ;;  %v1549_v12 = vand.u32 2147483647, %v3152_v63 }
 0x550   : > { %v1358_v9 = vpop.permute.xlu1 %1357  ;;  %v1346_v16 = vpop.permute.xlu0 %1345 }
 0x551   : > { %v1553_v14 = vshrl.u32 %v1552_v5, 23  ;;  %v1363_v49 = vadd.f32 %v1358_v9, %v1339_v20  ;;  %v1351_v53 = vadd.f32 %v1346_v16, %v1325_v43  ;;  %v1556_v60 = vand.u32 8388607, %v1549_v12 }
 0x553   : > { %v2285_v22 = vadd.s32 4294967169, %v1553_v14  ;;  %v1557_v30 = vor.u32 8388608, %v1556_v60 }
 0x554   : > { %v1378_v18 = vpop.permute.xlu1 %1377  ;;  %v1370_v24 = vpop.permute.xlu0 %1369 }
 0x555   : > { %v1559_v17 = vadd.s32 1, %v2285_v22  ;;  %v1383_v51 = vadd.f32 %v1378_v18, %v1363_v49  ;;  %v1375_v33 = vadd.f32 %v1370_v24, %v1351_v53 }
 0x557   : > { %vm1560_vm13 = vcmp.gt.s32.totalorder %v1559_v17, 0 }
 0x558   : > { %v1561_v29 = vsel %vm1560_vm13, %v1559_v17, 0  ;;  %v1386_v38 = vpop.permute.xlu1 %1385  ;;  %v1412_v8 = vpop.permute.xlu0 %1411 }
 0x559   : > { %v1563_v44 = vand.u32 31, %v1561_v29  ;;  %v1391_v47 = vadd.f32 %v1386_v38, %v1375_v33  ;;  %v3160_v41 = vshrl.u32 %v1561_v29, 5 }
 0x55b   : > { %v1564_v2 = vsub.s32 32, %v1563_v44  ;;  %v1578_v4 = vshll.u32 %v2580_v32, %v1563_v44  ;;  %v1575_v6 = vshll.u32 %v2579_v27, %v1563_v44  ;;  %v1572_v48 = vshll.u32 %v2578_v25, %v1563_v44 }
 0x55c   : > { %v1394_v1 = vpop.permute.xlu1 %1393  ;;  %v1422_v43 = vpop.permute.xlu0 %1421  ;;  %v1566_v7 = vshll.u32 %v2576_v21, %v1563_v44  ;;  %v1569_v62 = vshll.u32 %v2577_v23, %v1563_v44  ;;  %vm1584_vm14 = vcmp.lt.s32.totalorder %v3160_v41, 4  ;;  %vm1581_vm15 = vcmp.lt.s32.totalorder %v3160_v41, 1 }
 0x55d   : > { %v1399_v3 = vadd.f32 %v1394_v1, %v1383_v51  ;;  %v1579_v39 = vshrl.u32 %v2581_v36, %v1564_v2  ;;  %v1573_v46 = vshrl.u32 %v2579_v27, %v1564_v2  ;;  %v1576_v50 = vshrl.u32 %v2580_v32, %v1564_v2 }
 0x55e   : > { %v1567_v45 = vshrl.u32 %v2577_v23, %v1564_v2  ;;  %v1570_v26 = vshrl.u32 %v2578_v25, %v1564_v2  ;;  %v1565_v38 = vshrl.u32 %v2576_v21, %v1564_v2  ;;  %vm1582_vm0 = vcmp.lt.s32.totalorder %v3160_v41, 2 }
 0x55f   : > { %v1417_v42 = vadd.f32 %v1412_v8, %v1399_v3  ;;  %v1580_v19 = vor.u32 %v1579_v39, %v1578_v4  ;;  %v1574_v10 = vor.u32 %v1573_v46, %v1572_v48  ;;  %v1577_v5 = vor.u32 %v1576_v50, %v1575_v6 }
 0x560   : > { %v1402_v35 = vpop.permute.xlu1 %1401  ;;  %v1568_v22 = vor.u32 %v1567_v45, %v1566_v7  ;;  %v1571_v18 = vor.u32 %v1570_v26, %v1569_v62  ;;  %vm1583_vm1 = vcmp.lt.s32.totalorder %v3160_v41, 3  ;;  %v3221_v46 = vshll.u32 %v1557_v30, 8 }
 0x561   : > { %v3158_v37 = vmul.f32 2.0, %v1417_v42  ;;  %v1407_v34 = vadd.f32 %v1402_v35, %v1391_v47  ;;  %v1594_v17 = vsel %vm1584_vm14, %v1580_v19, 1326507024  ;;  %v1590_v44 = vsel %vm1584_vm14, %v1577_v5, 920167782 }
 0x562   : > { %v1595_v1 = vsel %vm1583_vm1, %v1577_v5, %v1594_v17  ;;  %v1585_v33 = vsel %vm1581_vm15, %v1565_v38, %v1568_v22  ;;  %v1589_v42 = vsel %vm1581_vm15, %v1568_v22, %v1571_v18  ;;  %v1591_v55 = vsel %vm1583_vm1, %v1574_v10, %v1590_v44 }
 0x563   : > { %v3169_v56 = vmul.f32 %v3146_v54, %v3158_v37  ;;  %v1427_v57 = vadd.f32 %v1422_v43, %v1407_v34  ;;  %v3225_v4 = vsel %vm1582_vm0, %v1589_v42, %v1591_v55 }
 0x564   : > { %v1424_v11 = vpop.permute.xlu1 %1423 }
 0x565   : > { %v1448_v13 = vand.u32 2139095040, %v3169_v56  ;;  %v3176_v58 = vmul.f32 2.0, %v1427_v57  ;;  %v1428_v15 = vadd.f32 %v1424_v11, %v1408_v28  ;;  %v1445_v61 = vand.u32 2147483647, %v3169_v56 }
 0x567   : > { %v1449_v9 = vshrl.u32 %v1448_v13, 23  ;;  %v3182_v16 = vmul.f32 %v3146_v54, %v3176_v58  ;;  %v3184_v14 = vmul.f32 2.0, %v1428_v15  ;;  %v1586_v54 = vsel %vm1584_vm14, %v1574_v10, 2102212464 }
 0x568   : > { %v1587_v3 = vsel %vm1583_vm1, %v1571_v18, %v1586_v54  ;;  %v1452_v28 = vand.u32 8388607, %v1445_v61 }
 0x569   : > { %v2281_v24 = vadd.s32 4294967169, %v1449_v9  ;;  %v1674_v20 = vand.u32 2139095040, %v3182_v16  ;;  %v3191_v29 = vmul.f32 %v3144_v52, %v3184_v14  ;;  %v1671_v8 = vand.u32 2147483647, %v3182_v16 }
 0x56a   : > { %v1593_v52 = vsel %vm1581_vm15, %v1571_v18, %v1574_v10  ;;  %v3219_v60 = vsel %vm1582_vm0, %v1585_v33, %v1587_v3  ;;  %v1453_v41 = vor.u32 8388608, %v1452_v28 }
 0x56b   : > { %v1455_v49 = vadd.s32 1, %v2281_v24  ;;  %v1675_v53 = vshrl.u32 %v1674_v20, 23  ;;  %v1778_v51 = vand.u32 2139095040, %v3191_v29  ;;  %v1596_v34 = vsel %vm1582_vm0, %v1593_v52, %v1595_v1 }
 0x56c   : > { %v1678_v43 = vand.u32 8388607, %v1671_v8  ;;  %v3228_v6 = vmul.u32.u64.low %v3221_v46, %v1596_v34  ;;  %v3229_v11 = vmul.u32.u64.high %v3221_v46, %v1596_v34, %v3228_v6  ;;  %v1604_v19 = vmul.u32 %v3221_v46, %v3219_v60 }
 0x56d   : > { %vm1456_vm2 = vcmp.gt.s32.totalorder %v1455_v49, 0  ;;  %v2289_v2 = vadd.s32 4294967169, %v1675_v53  ;;  %v1779_v47 = vshrl.u32 %v1778_v51, 23  ;;  %v1493_v53 = vshll.u32 %v1453_v41, 8 }
 0x56e   : > { %v1457_v40 = vsel %vm1456_vm2, %v1455_v49, 0  ;;  %v1679_v30 = vor.u32 8388608, %v1678_v43  ;;  %v3244_v18 = vmul.u32.u64.low %v3221_v46, %v3225_v4  ;;  %v3245_v17 = vmul.u32.u64.high %v3221_v46, %v3225_v4, %v3244_v18 }
 0x56f   : > { %v1459_v35 = vand.u32 31, %v1457_v40  ;;  %v1681_v39 = vadd.s32 1, %v2289_v2  ;;  %v2293_v57 = vadd.s32 4294967169, %v1779_v47  ;;  %v1458_v13 = vshrl.u32 %v1457_v40, 5 }
 0x570   : > { %v3252_v51 = vshll.u32 %v1679_v30, 8  ;;  %vm1606_vm0 = vc.u32 %v3229_v11, %v3244_v18 }
 0x571   : > { %v1460_v50 = vsub.s32 32, %v1459_v35  ;;  %vm1682_vm3 = vcmp.gt.s32.totalorder %v1681_v39, 0  ;;  %v1471_v7 = vshll.u32 %v2579_v27, %v1459_v35  ;;  %v1474_v62 = vshll.u32 %v2580_v32, %v1459_v35 }
 0x572   : > { %v1683_v48 = vsel %vm1682_vm3, %v1681_v39, 0  ;;  %v1785_v22 = vadd.s32 1, %v2293_v57  ;;  %v1462_v38 = vshll.u32 %v2576_v21, %v1459_v35  ;;  %v1465_v54 = vshll.u32 %v2577_v23, %v1459_v35 }
 0x573   : > { %v1472_v45 = vshrl.u32 %v2580_v32, %v1460_v50  ;;  %v1475_v26 = vshrl.u32 %v2581_v36, %v1460_v50  ;;  %v3235_v15 = vand.u32 31, %v1683_v48  ;;  %v1463_v10 = vshrl.u32 %v2577_v23, %v1460_v50 }
 0x574   : > { %v1466_v5 = vshrl.u32 %v2578_v25, %v1460_v50  ;;  %vm1480_vm10 = vcmp.lt.s32.totalorder %v1458_v13, 4  ;;  %v1461_v52 = vshrl.u32 %v2576_v21, %v1460_v50  ;;  %v1468_v40 = vshll.u32 %v2578_v25, %v1459_v35 }
 0x575   : > { %v1686_v9 = vsub.s32 32, %v3235_v15  ;;  %v1473_v24 = vor.u32 %v1472_v45, %v1471_v7  ;;  %v1476_v20 = vor.u32 %v1475_v26, %v1474_v62  ;;  %v1464_v1 = vor.u32 %v1463_v10, %v1462_v38 }
 0x576   : > { %v1467_v2 = vor.u32 %v1466_v5, %v1465_v54  ;;  %v1697_v33 = vshll.u32 %v2579_v27, %v3235_v15  ;;  %v1700_v3 = vshll.u32 %v2580_v32, %v3235_v15  ;;  %v1469_v47 = vshrl.u32 %v2579_v27, %v1460_v50 }
 0x577   : > { %v1698_v44 = vshrl.u32 %v2580_v32, %v1686_v9  ;;  %v1701_v49 = vshrl.u32 %v2581_v36, %v1686_v9  ;;  %v1486_v42 = vsel %vm1480_vm10, %v1473_v24, 920167782  ;;  %v1490_v55 = vsel %vm1480_vm10, %v1476_v20, 1326507024 }
 0x578   : > { %v3263_v39 = vshrl.u32 %v1683_v48, 5  ;;  %vm1786_vm12 = vcmp.gt.s32.totalorder %v1785_v22, 0  ;;  %v1470_v43 = vor.u32 %v1469_v47, %v1468_v40  ;;  %vm1477_vm13 = vcmp.lt.s32.totalorder %v1458_v13, 1 }
 0x579   : > { %v1699_v34 = vor.u32 %v1698_v44, %v1697_v33  ;;  %v1702_v28 = vor.u32 %v1701_v49, %v1700_v3  ;;  %vm1478_vm14 = vcmp.lt.s32.totalorder %v1458_v13, 2  ;;  %vm1479_vm15 = vcmp.lt.s32.totalorder %v1458_v13, 3 }
 0x57a   : > { %v1481_v4 = vsel %vm1477_vm13, %v1461_v52, %v1464_v1  ;;  %v1485_v57 = vsel %vm1477_vm13, %v1464_v1, %v1467_v2  ;;  %v1482_v35 = vsel %vm1480_vm10, %v1470_v43, 2102212464  ;;  %v1487_v50 = vsel %vm1479_vm15, %v1470_v43, %v1486_v42 }
 0x57b   : > { %v1489_v6 = vsel %vm1477_vm13, %v1467_v2, %v1470_v43  ;;  %v1491_v45 = vsel %vm1479_vm15, %v1473_v24, %v1490_v55  ;;  %vm1706_vm1 = vcmp.lt.s32.totalorder %v3263_v39, 4  ;;  %v3269_v26 = vsel %vm1786_vm12, %v1785_v22, 0 }
 0x57c   : > { %v1483_v48 = vsel %vm1479_vm15, %v1467_v2, %v1482_v35  ;;  %v1488_v41 = vsel %vm1478_vm14, %v1485_v57, %v1487_v50  ;;  %v1492_v7 = vsel %vm1478_vm14, %v1489_v6, %v1491_v45  ;;  %v1712_v5 = vsel %vm1706_vm1, %v1699_v34, 920167782 }
 0x57d   : > { %v1484_v30 = vsel %vm1478_vm14, %v1481_v4, %v1483_v48  ;;  %v3271_v62 = vmul.u32.u64.low %v1493_v53, %v1488_v41  ;;  %v3272_v10 = vmul.u32.u64.high %v1493_v53, %v1488_v41, %v3271_v62  ;;  %v1716_v13 = vsel %vm1706_vm1, %v1702_v28, 1326507024 }
 0x57e   : > { %v3279_v20 = vmul.u32.u64.low %v1493_v53, %v1492_v7  ;;  %v3280_v24 = vmul.u32.u64.high %v1493_v53, %v1492_v7, %v3279_v20  ;;  %v1688_v22 = vshll.u32 %v2576_v21, %v3235_v15  ;;  %v1689_v38 = vshrl.u32 %v2577_v23, %v1686_v9 }
 0x57f   : > { %v1691_v54 = vshll.u32 %v2577_v23, %v3235_v15  ;;  %v1692_v44 = vshrl.u32 %v2578_v25, %v1686_v9  ;;  %v1500_v49 = vmul.u32 %v1493_v53, %v1484_v30  ;;  %v1687_v52 = vshrl.u32 %v2576_v21, %v1686_v9 }
 0x580   : > { %v1694_v1 = vshll.u32 %v2578_v25, %v3235_v15  ;;  %v1695_v2 = vshrl.u32 %v2579_v27, %v1686_v9  ;;  %v1503_v33 = vadd.s32 1, %v3272_v10  ;;  %v1690_v3 = vor.u32 %v1689_v38, %v1688_v22 }
 0x581   : > { %v1693_v40 = vor.u32 %v1692_v44, %v1691_v54  ;;  %vm1705_vm2 = vcmp.lt.s32.totalorder %v3263_v39, 3  ;;  %vm1502_vm3 = vc.u32 %v3280_v24, %v3271_v62  ;;  %vm1703_vm10 = vcmp.lt.s32.totalorder %v3263_v39, 1 }
 0x582   : > { %v1696_v47 = vor.u32 %v1695_v2, %v1694_v1  ;;  %v1717_v53 = vsel %vm1705_vm2, %v1699_v34, %v1716_v13  ;;  %v1504_v42 = vsel %vm1502_vm3, %v1503_v33, %v3272_v10  ;;  %vm1704_vm12 = vcmp.lt.s32.totalorder %v3263_v39, 2 }
 0x583   : > { %v1711_v15 = vsel %vm1703_vm10, %v1690_v3, %v1693_v40  ;;  %v1607_v9 = vadd.s32 1, %v3245_v17  ;;  %v1505_v55 = vadd.s32 %v1504_v42, %v1500_v49  ;;  %v1707_v57 = vsel %vm1703_vm10, %v1687_v52, %v1690_v3 }
 0x584   : > { %v1708_v28 = vsel %vm1706_vm1, %v1696_v47, 2102212464  ;;  %v1713_v43 = vsel %vm1705_vm2, %v1696_v47, %v1712_v5  ;;  %v1715_v4 = vsel %vm1703_vm10, %v1693_v40, %v1696_v47  ;;  %v1789_v5 = vand.u32 31, %v3269_v26 }
 0x585   : > { %v1714_v35 = vsel %vm1704_vm12, %v1711_v15, %v1713_v43  ;;  %v1718_v34 = vsel %vm1704_vm12, %v1715_v4, %v1717_v53  ;;  %v1608_v50 = vsel %vm1606_vm0, %v1607_v9, %v3245_v17  ;;  %v1506_v6 = vadd.s32 536870912, %v1505_v55 }
 0x586   : > { %v1709_v45 = vsel %vm1705_vm2, %v1693_v40, %v1708_v28  ;;  %v3317_v48 = vmul.u32.u64.low %v3252_v51, %v1718_v34  ;;  %v3318_v41 = vmul.u32.u64.high %v3252_v51, %v1718_v34, %v3317_v48  ;;  %v1609_v10 = vadd.s32 %v1608_v50, %v1604_v19 }
 0x587   : > { %v3321_v30 = vmul.u32.u64.low %v3252_v51, %v1714_v35  ;;  %v3322_v7 = vmul.u32.u64.high %v3252_v51, %v1714_v35, %v3321_v30  ;;  %v3329_v17 = vshrl.u32 %v1506_v6, 30  ;;  %v1710_v13 = vsel %vm1704_vm12, %v1707_v57, %v1709_v45 }
 0x588   : > { %v1610_v20 = vadd.s32 536870912, %v1609_v10  ;;  %v1790_v44 = vsub.s32 32, %v1789_v5  ;;  %v1726_v46 = vmul.u32 %v3252_v51, %v1710_v13  ;;  %v1801_v47 = vshll.u32 %v2579_v27, %v1789_v5 }
 0x589   : > { %v1508_v22 = vshll.u32 %v3329_v17, 30  ;;  %vm1728_vm13 = vc.u32 %v3318_v41, %v3321_v30  ;;  %v1729_v38 = vadd.s32 1, %v3322_v7  ;;  %v1775_v51 = vand.u32 2147483647, %v3191_v29 }
 0x58a   : > { %v3337_v54 = vshrl.u32 %v1610_v20, 30  ;;  %v1802_v2 = vshrl.u32 %v2580_v32, %v1790_v44  ;;  %v1805_v53 = vshrl.u32 %v2581_v36, %v1790_v44  ;;  %v1804_v43 = vshll.u32 %v2580_v32, %v1789_v5 }
 0x58b   : > { %v3339_v60 = vsub.s32 %v1505_v55, %v1508_v22  ;;  %v1730_v19 = vsel %vm1728_vm13, %v1729_v38, %v3322_v7  ;;  %v3353_v55 = vshrl.u32 %v3269_v26, 5  ;;  %v1793_v4 = vshrl.u32 %v2577_v23, %v1790_v44 }
 0x58c   : > { %v1612_v39 = vshll.u32 %v3337_v54, 30  ;;  %v1731_v52 = vadd.s32 %v1730_v19, %v1726_v46  ;;  %v1803_v28 = vor.u32 %v1802_v2, %v1801_v47  ;;  %v1796_v34 = vshrl.u32 %v2578_v25, %v1790_v44 }
 0x58d   : > { %v1511_v49 = vsub.s32 0, %v3339_v60  ;;  %v1799_v36 = vshrl.u32 %v2579_v27, %v1790_v44  ;;  %v1806_v50 = vor.u32 %v1805_v53, %v1804_v43  ;;  %v1782_v45 = vand.u32 8388607, %v1775_v51 }
 0x58e   : > { %v1613_v1 = vsub.s32 %v1609_v10, %v1612_v39  ;;  %v1732_v3 = vadd.s32 536870912, %v1731_v52  ;;  %v1792_v26 = vshll.u32 %v2576_v21, %v1789_v5  ;;  %v1795_v32 = vshll.u32 %v2577_v23, %v1789_v5 }
 0x58f   : > { %v2282_v33 = vmin.u32 %v1511_v49, %v3339_v60  ;;  %v1798_v10 = vshll.u32 %v2578_v25, %v1789_v5  ;;  %vm1810_vm14 = vcmp.lt.s32.totalorder %v3353_v55, 4  ;;  %v1605_v13 = vadd.s32 %v3244_v18, %v3229_v11 }
 0x590   : > { %v1615_v40 = vsub.s32 0, %v1613_v1  ;;  %v3350_v15 = vshrl.u32 %v1732_v3, 30  ;;  %v1794_v27 = vor.u32 %v1793_v4, %v1792_v26  ;;  %v1797_v22 = vor.u32 %v1796_v34, %v1795_v32 }
 0x591   : > { %v1513_v42 = vclz %v2282_v33  ;;  %v1800_v38 = vor.u32 %v1799_v36, %v1798_v10  ;;  %v1816_v46 = vsel %vm1810_vm14, %v1803_v28, 920167782  ;;  %v1820_v19 = vsel %vm1810_vm14, %v1806_v50, 1326507024 }
 0x592   : > { %v2286_v9 = vmin.u32 %v1615_v40, %v1613_v1  ;;  %v1734_v57 = vshll.u32 %v3350_v15, 30  ;;  %v1783_v39 = vor.u32 8388608, %v1782_v45  ;;  %v1791_v11 = vshrl.u32 %v2576_v21, %v1790_v44 }
 0x593   : > { %v2283_v6 = vadd.s32 4294967294, %v1513_v42  ;;  %vm1807_vm1 = vcmp.lt.s32.totalorder %v3353_v55, 1  ;;  %vm1808_vm2 = vcmp.lt.s32.totalorder %v3353_v55, 2  ;;  %vm1809_vm3 = vcmp.lt.s32.totalorder %v3353_v55, 3 }
 0x594   : > { %v1617_v35 = vclz %v2286_v9  ;;  %v3363_v48 = vsub.s32 %v1731_v52, %v1734_v57  ;;  %v1815_v2 = vsel %vm1807_vm1, %v1794_v27, %v1797_v22  ;;  %v1819_v33 = vsel %vm1807_vm1, %v1797_v22, %v1800_v38 }
 0x595   : > { %vm2284_vm0 = vcmp.lt.s32.totalorder %v2283_v6, 0  ;;  %v1817_v21 = vsel %vm1809_vm3, %v1800_v38, %v1816_v46  ;;  %v1812_v53 = vsel %vm1810_vm14, %v1800_v38, 2102212464  ;;  %v1821_v42 = vsel %vm1809_vm3, %v1803_v28, %v1820_v19 }
 0x596   : > { %v2287_v7 = vadd.s32 4294967294, %v1617_v35  ;;  %v1737_v20 = vsub.s32 0, %v3363_v48  ;;  %v1516_v49 = vsel %vm2284_vm0, 0, %v2283_v6  ;;  %v1823_v9 = vshll.u32 %v1783_v39, 8 }
 0x597   : > { %v1521_v43 = vsub.s32 4294967266, %v1516_v49  ;;  %v1822_v35 = vsel %vm1808_vm2, %v1819_v33, %v1821_v42  ;;  %v1811_v28 = vsel %vm1807_vm1, %v1791_v11, %v1794_v27  ;;  %v1813_v26 = vsel %vm1809_vm3, %v1797_v22, %v1812_v53 }
 0x598   : > { %vm2288_vm15 = vcmp.lt.s32.totalorder %v2287_v7, 0  ;;  %v2290_v25 = vmin.u32 %v1737_v20, %v3363_v48  ;;  %v3394_v34 = vmul.u32.u64.low %v1823_v9, %v1822_v35  ;;  %v3395_v36 = vmul.u32.u64.high %v1823_v9, %v1822_v35, %v3394_v34 }
 0x599   : > { %v1620_v23 = vsel %vm2288_vm15, 0, %v2287_v7  ;;  %v1522_v20 = vadd.s32 127, %v1521_v43  ;;  %v1814_v46 = vsel %vm1808_vm2, %v1811_v28, %v1813_v26  ;;  %v1517_v19 = vsub.s32 32, %v1516_v49 }
 0x59a   : > { %v1621_v5 = vsub.s32 32, %v1620_v23  ;;  %v1625_v18 = vsub.s32 4294967266, %v1620_v23  ;;  %v1739_v52 = vclz %v2290_v25  ;;  %v1622_v3 = vshll.u32 %v1613_v1, %v1620_v23 }
 0x59b   : > { %v1818_v1 = vsel %vm1808_vm2, %v1815_v2, %v1817_v21  ;;  %vm1551_vm13 = vcmp.lt.s32.totalorder %v3152_v63, 0  ;;  %v1635_v22 = vsub.s32 4, %v3337_v54  ;;  %v1523_v39 = vshll.u32 %v1522_v20, 23 }
 0x59c   : > { %v1623_v40 = vshrl.u32 %v1605_v13, %v1621_v5  ;;  %v1626_v47 = vadd.s32 127, %v1625_v18  ;;  %v2291_v44 = vadd.s32 4294967294, %v1739_v52  ;;  %v1501_v5 = vadd.s32 %v3271_v62, %v3280_v24 }
 0x59d   : > { %v3401_v10 = vmul.u32.u64.low %v1823_v9, %v1818_v1  ;;  %v3402_v13 = vmul.u32.u64.high %v1823_v9, %v1818_v1, %v3401_v10  ;;  %v1830_v18 = vmul.u32 %v1823_v9, %v1814_v46  ;;  %v1727_v55 = vadd.s32 %v3321_v30, %v3318_v41 }
 0x59e   : > { %v1624_v4 = vor.u32 %v1623_v40, %v1622_v3  ;;  %v1627_v57 = vshll.u32 %v1626_v47, 23  ;;  %vm2292_vm10 = vcmp.lt.s32.totalorder %v2291_v44, 0  ;;  %vm3418_vm14 = vcmp.le.f32.partialorder %v1549_v12, 0.7853982 }
 0x59f   : > { %v1742_v50 = vsel %vm2292_vm10, 0, %v2291_v44  ;;  %vm1832_vm12 = vc.u32 %v3395_v36, %v3401_v10  ;;  %v1833_v25 = vadd.s32 1, %v3402_v13  ;;  %v1519_v3 = vshrl.u32 %v1501_v5, %v1517_v19 }
 0x5a0   : > { %v1628_v6 = vor.u32 4788187, %v1627_v57  ;;  %v1747_v45 = vsub.s32 4294967266, %v1742_v50  ;;  %v1631_v32 = vcvt.s32.f32 %v1624_v4  ;;  %v1743_v11 = vsub.s32 32, %v1742_v50 }
 0x5a1   : > { %v1834_v33 = vsel %vm1832_vm12, %v1833_v25, %v3402_v13  ;;  %v1518_v41 = vshll.u32 %v3339_v60, %v1516_v49  ;;  %v1636_v12 = vsel %vm1551_vm13, %v1635_v22, %v3337_v54  ;;  %v1524_v30 = vor.u32 4788187, %v1523_v39 }
 0x5a2   : > { %v1629_v7 = vand.u32 2147483647, %v1628_v6  ;;  %v1748_v23 = vadd.s32 127, %v1747_v45  ;;  %v1835_v24 = vadd.s32 %v1834_v33, %v1830_v18  ;;  %v1745_v47 = vshrl.u32 %v1727_v55, %v1743_v11  ;;  %v3453_v18 = vpop.permute.xlu1 %1662 }
 0x5a3   : > { %v1520_v44 = vor.u32 %v1519_v3, %v1518_v41  ;;  %v1744_v53 = vshll.u32 %v3363_v48, %v1742_v50  ;;  %v1638_v43 = vsel %vm3418_vm14, 0, %v1636_v12  ;;  %v1525_v4 = vand.u32 2147483647, %v1524_v30 }
 0x5a4   : > { %v1632_v38 = vmul.f32 %v1631_v32, %v1629_v7  ;;  %v1749_v40 = vshll.u32 %v1748_v23, 23  ;;  %v1836_v21 = vadd.s32 536870912, %v1835_v24  ;;  %v1642_v35 = vadd.s32 3, %v1638_v43 }
 0x5a5   : > { %v1746_v60 = vor.u32 %v1745_v47, %v1744_v53  ;;  %v1527_v57 = vcvt.s32.f32 %v1520_v44  ;;  %vm1641_vm15 = vweird.f32 %v3152_v63  ;;  %vm3441_vm1 = vcmp.le.f32.partialorder %v1445_v61, 0.7853982 }
 0x5a6   : > { %v1633_v27 = vxor.u32 2147483648, %v1632_v38  ;;  %v1750_v42 = vor.u32 4788187, %v1749_v40  ;;  %v3433_v9 = vshrl.u32 %v1836_v21, 30  ;;  %v1643_v26 = vand.u32 3, %v1642_v35 }
 0x5a7   : > { %v1528_v34 = vmul.f32 %v1527_v57, %v1525_v4  ;;  %v1753_v6 = vcvt.s32.f32 %v1746_v60  ;;  %vm1447_vm2 = vcmp.lt.s32.totalorder %v3169_v56, 0  ;;  %v1831_v39 = vadd.s32 %v3401_v10, %v3395_v36 }
 0x5a8   : > { %v1634_v2 = vsel %vm1551_vm13, %v1633_v27, %v1632_v38  ;;  %v1838_v49 = vshll.u32 %v3433_v9, 30  ;;  %v1751_v54 = vand.u32 2147483647, %v1750_v42  ;;  %vm1648_vm0 = vcmp.eq.s32.totalorder %v1643_v26, 2 }
 0x5a9   : > { %v1637_v62 = vsel %vm3418_vm14, %v3152_v63, %v1634_v2  ;;  %v1529_v7 = vxor.u32 2147483648, %v1528_v34  ;;  %vm1645_vm3 = vcmp.eq.s32.totalorder %v1643_v26, 0  ;;  %vm1644_vm10 = vcmp.lt.s32.totalorder %v1643_v26, 2 }
 0x5aa   : > { %2491 = vcosq.f32 %v1637_v62  ;;  %v1839_v1 = vsub.s32 %v1835_v24, %v1838_v49  ;;  %v1754_v28 = vmul.f32 %v1753_v6, %v1751_v54  ;;  %vm1673_vm13 = vcmp.lt.s32.totalorder %v3182_v16, 0 }
 0x5ab   : > { %2493 = vsinq.f32 %v1637_v62  ;;  %v1530_v22 = vsel %vm1447_vm2, %v1529_v7, %v1528_v34  ;;  %vm3462_vm14 = vcmp.le.f32.partialorder %v1671_v8, 0.7853982  ;;  %v1531_v47 = vsub.s32 4, %v3329_v17 }
 0x5ac   : > { %v1841_v45 = vsub.s32 0, %v1839_v1  ;;  %v1755_v38 = vxor.u32 2147483648, %v1754_v28  ;;  %v1533_v33 = vsel %vm3441_vm1, %v3169_v56, %v1530_v22  ;;  %v1757_v21 = vsub.s32 4, %v3350_v15 }
 0x5ad   : > { %2495 = vcosq.f32 %v1533_v33  ;;  %v1532_v43 = vsel %vm1447_vm2, %v1531_v47, %v3329_v17  ;;  %v1861_v60 = vsub.s32 4, %v3433_v9 }
 0x5ae   : > { %v2294_v48 = vmin.u32 %v1841_v45, %v1839_v1  ;;  %v1756_v11 = vsel %vm1673_vm13, %v1755_v38, %v1754_v28  ;;  %2497 = vsinq.f32 %v1533_v33  ;;  %v1534_v49 = vsel %vm3441_vm1, 0, %v1532_v43 }
 0x5af   : > { %v1759_v63 = vsel %vm3462_vm14, %v3182_v16, %v1756_v11 }
 0x5b0   : > { %v1843_v32 = vclz %v2294_v48  ;;  %2499 = vcosq.f32 %v1759_v63 }
 0x5b1   : > { %2501 = vsinq.f32 %v1759_v63  ;;  %v1658_v63 = vpop.permute.xlu0 %1657 }
 0x5b2   : > { %v2295_v19 = vadd.s32 4294967294, %v1843_v32 }
 0x5b4   : > { %vm2296_vm12 = vcmp.lt.s32.totalorder %v2295_v19, 0 }
 0x5b5   : > { %v1846_v61 = vsel %vm2296_vm12, 0, %v2295_v19 }
 0x5b6   : > { %v1847_v52 = vsub.s32 32, %v1846_v61  ;;  %v1851_v2 = vsub.s32 4294967266, %v1846_v61  ;;  %v1848_v10 = vshll.u32 %v1839_v1, %v1846_v61  ;;  %v1538_v1 = vadd.s32 3, %v1534_v49 }
 0x5b7   : > { %v2492_v50 = vpop.eup %2491 }
 0x5b8   : > { %v2494_v13 = vpop.eup %2493  ;;  %v1649_v20 = vxor.u32 2147483648, %v2492_v50  ;;  %v1849_v40 = vshrl.u32 %v1831_v39, %v1847_v52  ;;  %v1852_v62 = vadd.s32 127, %v1851_v2  ;;  %v1539_v26 = vand.u32 3, %v1538_v1 }
 0x5b9   : > { %v1646_v46 = vxor.u32 2147483648, %v2494_v13 }
 0x5ba   : > { %v1650_v27 = vsel %vm1648_vm0, %v1649_v20, %v2494_v13  ;;  %v1850_v41 = vor.u32 %v1849_v40, %v1848_v10  ;;  %v1853_v12 = vshll.u32 %v1852_v62, 23  ;;  %vm3489_vm0 = vcmp.le.f32.partialorder %v1775_v51, 0.7853982  ;;  %v2496_v35 = vpop.eup %2495 }
 0x5bb   : > { %v1647_v25 = vsel %vm1645_vm3, %v2492_v50, %v1646_v46  ;;  %v2498_v34 = vpop.eup %2497  ;;  %v1545_v32 = vxor.u32 2147483648, %v2496_v35  ;;  %vm1541_vm1 = vcmp.eq.s32.totalorder %v1539_v26, 0  ;;  %vm1544_vm2 = vcmp.eq.s32.totalorder %v1539_v26, 2 }
 0x5bc   : > { %v1651_v5 = vsel %vm1644_vm10, %v1647_v25, %v1650_v27  ;;  %v1854_v8 = vor.u32 4788187, %v1853_v12  ;;  %v1857_v53 = vcvt.s32.f32 %v1850_v41  ;;  %v1542_v7 = vxor.u32 2147483648, %v2498_v34 }
 0x5bd   : > { %v1652_v55 = vsel %vm1641_vm15, nan, %v1651_v5  ;;  %vm1777_vm15 = vcmp.lt.s32.totalorder %v3191_v29, 0  ;;  %v2500_v51 = vpop.eup %2499  ;;  %v1546_v46 = vsel %vm1544_vm2, %v1545_v32, %v2498_v34  ;;  %vm1540_vm12 = vcmp.lt.s32.totalorder %v1539_v26, 2 }
 0x5be   : > { %v1654_v3 = vmul.f32 %v1652_v55, %v1652_v55  ;;  %v1855_v44 = vand.u32 2147483647, %v1854_v8  ;;  %v1862_v54 = vsel %vm1777_vm15, %v1861_v60, %v3433_v9  ;;  %v2502_v28 = vpop.eup %2501  ;;  %v1771_v20 = vxor.u32 2147483648, %v2500_v51 }
 0x5bf   : > { %v1864_v45 = vsel %vm3489_vm0, 0, %v1862_v54  ;;  %v1768_v13 = vxor.u32 2147483648, %v2502_v28  ;;  %v1543_v38 = vsel %vm1541_vm1, %v2496_v35, %v1542_v7  ;;  %vm1867_vm2 = vweird.f32 %v3191_v29 }
 0x5c0   : > { %v1666_v24 = vmul.f32 %v3453_v18, %v1654_v3  ;;  %v1858_v42 = vmul.f32 %v1857_v53, %v1855_v44  ;;  %v1868_v50 = vadd.s32 3, %v1864_v45  ;;  %v1547_v25 = vsel %vm1540_vm12, %v1543_v38, %v1546_v46  ;;  %v2156_v38 = vld [vmem:[%s3626_s8] sm:$0xff] }
 0x5c2   : > { %v3471_v30 = vadd.f32 %v1666_v24, %v3148_v59  ;;  %v1758_v59 = vsel %vm1673_vm13, %v1757_v21, %v3350_v15  ;;  %v1859_v4 = vxor.u32 2147483648, %v1858_v42  ;;  %v1869_v9 = vand.u32 3, %v1868_v50 }
 0x5c4   : > { %1892 = vperm.xlu1 %2470, %v3471_v30   ;;  %v1860_v17 = vsel %vm1777_vm15, %v1859_v4, %v1858_v42  ;;  %vm1537_vm15 = vweird.f32 %v3169_v56  ;;  %vm1871_vm11 = vcmp.eq.s32.totalorder %v1869_v9, 0  ;;  %vm1870_vm1 = vcmp.lt.s32.totalorder %v1869_v9, 2 }
 0x5c5   : > { %v1863_v15 = vsel %vm3489_vm0, %v3191_v29, %v1860_v17  ;;  %vm1763_vm0 = vweird.f32 %v3182_v16  ;;  %v1548_v55 = vsel %vm1537_vm15, nan, %v1547_v25 }
 0x5c6   : > { %2503 = vcosq.f32 %v1863_v15  ;;  %v1653_v36 = vmul.f32 %v1548_v55, %v1548_v55 }
 0x5c7   : > { %2505 = vsinq.f32 %v1863_v15 }
 0x5c8   : > { %2471 = vset.pattern.permute.xlu1 %v2582_v31  ;;  %v1760_v31 = vsel %vm3462_vm14, 0, %v1758_v59  ;;  %vm1874_vm14 = vcmp.eq.s32.totalorder %v1869_v9, 2  ;;  %v1665_v24 = vmul.f32 %v1658_v63, %v1653_v36 }
 0x5c9   : > { %v1764_v6 = vadd.s32 3, %v1760_v31 }
 0x5ca   : > { %v1667_v41 = vadd.f32 %v1665_v24, %v3158_v37 }
 0x5cb   : > { %v1765_v48 = vand.u32 3, %v1764_v6 }
 0x5cd   : > { %vm1767_vm3 = vcmp.eq.s32.totalorder %v1765_v48, 0  ;;  %vm1770_vm10 = vcmp.eq.s32.totalorder %v1765_v48, 2  ;;  %vm1766_vm13 = vcmp.lt.s32.totalorder %v1765_v48, 2 }
 0x5ce   : > { %v1769_v19 = vsel %vm1767_vm3, %v2500_v51, %v1768_v13  ;;  %v1772_v23 = vsel %vm1770_vm10, %v1771_v20, %v2502_v28  ;;  %v2063_v13 = vld [vmem:[%s3625_s7] sm:$0xff] }
 0x5cf   : > { %v1773_v5 = vsel %vm1766_vm13, %v1769_v19, %v1772_v23  ;;  %v2157_v19 = vld [vmem:[%s3626_s8 + $0x8] sm:$0xff] }
 0x5d0   : > { %v1774_v52 = vsel %vm1763_vm0, nan, %v1773_v5 }
 0x5d1   : > { %v1879_v10 = vmul.f32 %v1774_v52, %v1774_v52 }
 0x5d3   : > { %v2504_v27 = vpop.eup %2503  ;;  %v1881_v56 = vmul.f32 %v1879_v10, %v1658_v63 }
 0x5d4   : > { %v2506_v22 = vpop.eup %2505  ;;  %v1875_v39 = vxor.u32 2147483648, %v2504_v27 }
 0x5d5   : > { %v1872_v61 = vxor.u32 2147483648, %v2506_v22  ;;  %v1883_v12 = vadd.f32 %v1881_v56, %v3176_v58 }
 0x5d6   : > { %v1876_v11 = vsel %vm1874_vm14, %v1875_v39, %v2506_v22 }
 0x5d7   : > { %v1873_v2 = vsel %vm1871_vm11, %v2504_v27, %v1872_v61 }
 0x5d8   : > { %v1877_v33 = vsel %vm1870_vm1, %v1873_v2, %v1876_v11 }
 0x5d9   : > { %v1878_v3 = vsel %vm1867_vm2, nan, %v1877_v33 }
 0x5da   : > { %v1880_v40 = vmul.f32 %v1878_v3, %v1878_v3 }
 0x5dc   : > { %v1882_v62 = vmul.f32 %v1880_v40, %v3453_v18 }
 0x5de   : > { %v1884_v16 = vadd.f32 %v1882_v62, %v3184_v14 }
 0x5e0   : > { %1901 = vrot.lane.b32.xlu0 %v1884_v16, %s2583_s17  ;;  %1912 = vperm.xlu1 %2471, %v1884_v16  }
 0x5e4   : > { %1908 = vperm.xlu1 %2471, %v1883_v12   ;;  %1887 = vperm.xlu0 %2472, %v1667_v41  }
 0x5e8   : > { %1899 = vrot.lane.b32.xlu1 %v1883_v12, %s2583_s17  ;;  %1921 = vrot.lane.b32.xlu0 %v3471_v30, %s2583_s17 }
 0x5e9   : > { %2473 = vset.pattern.permute.xlu0 %v2569_v0  ;;  %2474 = vset.pattern.permute.xlu1 %v2569_v0 }
 0x5ec   : > { %1919 = vrot.lane.b32.xlu1 %v1667_v41, %s2583_s17 }
 0x63f   : > { %v1893_v14 = vpop.permute.xlu1 %1892 }
 0x640   : > { %1896 = vst.msk [vmem:[#allocation2 + $0x8] sm:$0xff] %vm911_vm4, %v1893_v14 }
 0x641   : > { %1918 = vst.msk [vmem:[#allocation3 + $0x8] sm:$0xff] %vm936_vm5, %v1893_v14 }
 0x652   : > { %v1902_v37 = vpop.permute.xlu0 %1901 }
 0x653   : > { %1906 = vst.msk [vmem:[#allocation2 + $0x8] sm:$0xff] %vm922_vm6, %v1902_v37 }
 0x65b   : > { %v1913_v58 = vpop.permute.xlu1 %1912 }
 0x65c   : > { %1916 = vst.msk [vmem:[#allocation2 + $0x8] sm:$0xff] %vm933_vm7, %v1913_v58 }
 0x65f   : > { %v1909_v29 = vpop.permute.xlu1 %1908  ;;  %v1888_v18 = vpop.permute.xlu0 %1887 }
 0x660   : > { %1895 = vst.msk [vmem:[#allocation2] sm:$0xff] %vm911_vm4, %v1888_v18  ;;  %vm3659_vm4 = vcmask 130048  }
 0x661   : > { %1917 = vst.msk [vmem:[#allocation3] sm:$0xff] %vm936_vm5, %v1888_v18  ;;  %2361 = vmatprep.mubr.msk.f32.mxu1 %vm3659_vm4, %v2063_v13  ;;  %vm3661_vm5 = vmmov %vm3659_vm4 }
 0x663   : > { %v1900_v0 = vpop.permute.xlu1 %1899  ;;  %v1922_v30 = vpop.permute.xlu0 %1921  ;;  %v1930_v8 = vld [vmem:[#allocation2 + $0x8] sm:$0xff] }
 0x664   : > { %1905 = vst.msk [vmem:[#allocation2] sm:$0xff] %vm922_vm6, %v1900_v0  ;;  %v1942_v47 = vmul.f32 -0.025543464, %v1930_v8  ;;  %v1932_v4 = vmul.f32 0.0020289666, %v1930_v8  ;;  %vm3662_vm6 = vmmov %vm3659_vm4 }
 0x665   : > { %1926 = vst.msk [vmem:[#allocation3 + $0x8] sm:$0xff] %vm945_vm8, %v1922_v30  ;;  %v1966_v57 = vmul.f32 0.12857261, %v1930_v8  ;;  %v1990_v6 = vmul.f32 0.4432098, %v1930_v8 }
 0x666   : > { %1915 = vst.msk [vmem:[#allocation2] sm:$0xff] %vm933_vm7, %v1909_v29  ;;  %1947 = vrot.lane.b32.xlu0 %v1942_v47, %s2584_s21  ;;  %v2014_v26 = vmul.f32 -0.057657376, %v1930_v8  ;;  %v2038_v32 = vmul.f32 0.009389464, %v1930_v8  ;;  %vm3663_vm7 = vmmov %vm3659_vm4 }
 0x667   : > { %1928 = vst.msk [vmem:[#allocation3 + $0x8] sm:$0xff] %vm948_vm9, %v1913_v58  ;;  %v1920_v21 = vpop.permute.xlu1 %1919 }
 0x668   : > { %1925 = vst.msk [vmem:[#allocation3] sm:$0xff] %vm945_vm8, %v1920_v21 }
 0x669   : > { %1927 = vst.msk [vmem:[#allocation3] sm:$0xff] %vm948_vm9, %v1909_v29 }
 0x66d   : > { %v1929_v44 = vld [vmem:[#allocation2] sm:$0xff] }
 0x66e   : > { %v1936_v53 = vld [vmem:[#allocation3 + $0x8] sm:$0xff]  ;;  %v1941_v42 = vmul.f32 -0.025543464, %v1929_v44  ;;  %v1931_v15 = vmul.f32 0.0020289666, %v1929_v44 }
 0x66f   : > { %v1954_v43 = vmul.f32 -0.057657376, %v1936_v53  ;;  %v1938_v60 = vmul.f32 0.009389464, %v1936_v53  ;;  %v1965_v54 = vmul.f32 0.12857261, %v1929_v44 }
 0x670   : > { %1945 = vrot.lane.b32.xlu1 %v1941_v42, %s2584_s21  ;;  %v1935_v59 = vld [vmem:[#allocation3] sm:$0xff]  ;;  %v1978_v35 = vmul.f32 0.4432098, %v1936_v53  ;;  %v1989_v51 = vmul.f32 0.4432098, %v1929_v44 }
 0x671   : > { %1959 = vrot.lane.b32.xlu0 %v1954_v43, %s2584_s21  ;;  %v1953_v49 = vmul.f32 -0.057657376, %v1935_v59  ;;  %v1940_v17 = vadd.f32 %v1938_v60, %v1932_v4  ;;  %v1937_v31 = vmul.f32 0.009389464, %v1935_v59  ;;  %v1977_v34 = vmul.f32 0.4432098, %v1935_v59 }
 0x672   : > { %v2002_v45 = vmul.f32 0.12857261, %v1936_v53  ;;  %v2001_v28 = vmul.f32 0.12857261, %v1935_v59  ;;  %v2013_v48 = vmul.f32 -0.057657376, %v1929_v44 }
 0x673   : > { %v1939_v1 = vadd.f32 %v1937_v31, %v1931_v15  ;;  %v2026_v50 = vmul.f32 -0.025543464, %v1936_v53  ;;  %v2025_v7 = vmul.f32 -0.025543464, %v1935_v59  ;;  %v2037_v20 = vmul.f32 0.009389464, %v1929_v44 }
 0x674   : > { %1957 = vrot.lane.b32.xlu1 %v1953_v49, %s2584_s21  ;;  %v2050_v9 = vmul.f32 0.0020289666, %v1936_v53  ;;  %v2049_v46 = vmul.f32 0.0020289666, %v1935_v59  ;;  %v2064_v49 = vld [vmem:[%s3625_s7 + $0x8] sm:$0xff]  ;;  %s323_s21 = sand.u32 1, %s2559_s10  }
 0x675   : > { %1971 = vrot.lane.b32.xlu0 %v1966_v57, %s2585_s23 }
 0x678   : > { %1969 = vrot.lane.b32.xlu1 %v1965_v54, %s2585_s23  ;;  %v2062_v54 = vld [vmem:[%s2699_s25 + $0x8] sm:$0xff] }
 0x679   : > { %1983 = vrot.lane.b32.xlu0 %v1978_v35, %s2585_s23 }
 0x67c   : > { %1981 = vrot.lane.b32.xlu1 %v1977_v34, %s2585_s23  ;;  %s2260_s23 = sshll.u32 %s323_s21, 4 }
 0x67d   : > { %1995 = vrot.lane.b32.xlu0 %v1990_v6, %s2583_s17 }
 0x680   : > { %1993 = vrot.lane.b32.xlu1 %v1989_v51, %s2583_s17 }
 0x681   : > { %2007 = vrot.lane.b32.xlu0 %v2002_v45, %s2583_s17 }
 0x684   : > { %2005 = vrot.lane.b32.xlu1 %v2001_v28, %s2583_s17 }
 0x685   : > { %2019 = vrot.lane.b32.xlu0 %v2014_v26, %s2586_s24 }
 0x688   : > { %2017 = vrot.lane.b32.xlu1 %v2013_v48, %s2586_s24 }
 0x689   : > { %2031 = vrot.lane.b32.xlu0 %v2026_v50, %s2586_s24 }
 0x68c   : > { %2029 = vrot.lane.b32.xlu1 %v2025_v7, %s2586_s24  ;;  %s2511_s24 = sshll.u32 %s2591_s13, 4  ;;  %s2512_s24 = int_to_ptr.vmem [resolvable:$false] %s2511_s24 }
 0x68d   : > { %2043 = vrot.lane.b32.xlu0 %v2038_v32, %s3660_s29  ;;  %s2513_s27 = scalar_lea.vmem %s2512_s24, 512 }
 0x690   : > { %2041 = vrot.lane.b32.xlu1 %v2037_v20, %s3660_s29 }
 0x691   : > { %2055 = vrot.lane.b32.xlu0 %v2050_v9, %s3660_s29 }
 0x694   : > { %2053 = vrot.lane.b32.xlu1 %v2049_v46, %s3660_s29  ;;  %s325_s29 = scalar_lea.vmem [#allocation7], %s2260_s23 }
 0x695   : > { %2160 = vperm.xlu0 %2473, %v2156_v38  }
 0x698   : > { %2165 = vperm.xlu1 %2474, %v2157_v19  }
 0x6d8   : > { %v1948_v23 = vpop.permute.xlu0 %1947 }
 0x6d9   : > { %v1952_v52 = vadd.f32 %v1948_v23, %v1940_v17 }
 0x6e2   : > { %v1946_v27 = vpop.permute.xlu1 %1945 }
 0x6e3   : > { %v1960_v22 = vpop.permute.xlu0 %1959  ;;  %v1951_v36 = vadd.f32 %v1946_v27, %v1939_v1  ;;  %v2061_v1 = vld [vmem:[%s2699_s25] sm:$0xff] }
 0x6e4   : > { %v1964_v3 = vadd.f32 %v1960_v22, %v1952_v52 }
 0x6e6   : > { %v1958_v25 = vpop.permute.xlu1 %1957 }
 0x6e7   : > { %v1972_v5 = vpop.permute.xlu0 %1971  ;;  %v1963_v63 = vadd.f32 %v1958_v25, %v1951_v36 }
 0x6e8   : > { %v1976_v10 = vadd.f32 %v1972_v5, %v1964_v3 }
 0x6ea   : > { %v1970_v39 = vpop.permute.xlu1 %1969 }
 0x6eb   : > { %v1984_v61 = vpop.permute.xlu0 %1983  ;;  %v1975_v56 = vadd.f32 %v1970_v39, %v1963_v63 }
 0x6ec   : > { %v1988_v24 = vadd.f32 %v1984_v61, %v1976_v10 }
 0x6ee   : > { %v1982_v11 = vpop.permute.xlu1 %1981 }
 0x6ef   : > { %v1996_v55 = vpop.permute.xlu0 %1995  ;;  %v1987_v14 = vadd.f32 %v1982_v11, %v1975_v56 }
 0x6f0   : > { %v2000_v16 = vadd.f32 %v1996_v55, %v1988_v24 }
 0x6f2   : > { %v1994_v2 = vpop.permute.xlu1 %1993 }
 0x6f3   : > { %v2008_v33 = vpop.permute.xlu0 %2007  ;;  %v1999_v58 = vadd.f32 %v1994_v2, %v1987_v14 }
 0x6f4   : > { %v2012_v37 = vadd.f32 %v2008_v33, %v2000_v16 }
 0x6f6   : > { %v2006_v40 = vpop.permute.xlu1 %2005 }
 0x6f7   : > { %v2020_v62 = vpop.permute.xlu0 %2019  ;;  %v2011_v30 = vadd.f32 %v2006_v40, %v1999_v58 }
 0x6f8   : > { %v2024_v29 = vadd.f32 %v2020_v62, %v2012_v37 }
 0x6fa   : > { %v2018_v41 = vpop.permute.xlu1 %2017 }
 0x6fb   : > { %v2032_v12 = vpop.permute.xlu0 %2031  ;;  %v2023_v47 = vadd.f32 %v2018_v41, %v2011_v30 }
 0x6fc   : > { %v2036_v8 = vadd.f32 %v2032_v12, %v2024_v29 }
 0x6fe   : > { %v2030_v18 = vpop.permute.xlu1 %2029 }
 0x6ff   : > { %v2044_v0 = vpop.permute.xlu0 %2043  ;;  %v2035_v42 = vadd.f32 %v2030_v18, %v2023_v47 }
 0x700   : > { %v2048_v21 = vadd.f32 %v2044_v0, %v2036_v8 }
 0x702   : > { %v2042_v44 = vpop.permute.xlu1 %2041 }
 0x703   : > { %v2056_v53 = vpop.permute.xlu0 %2055  ;;  %v2047_v59 = vadd.f32 %v2042_v44, %v2035_v42 }
 0x704   : > { %v2060_v43 = vadd.f32 %v2056_v53, %v2048_v21 }
 0x706   : > { %2357 = vmatprep.subr.mxu1 %v2060_v43  ;;  %v2054_v4 = vpop.permute.xlu1 %2053 }
 0x707   : > { %2358 = vmatpush3.msra.mxu1 %v2060_v43  ;;  %v2059_v60 = vadd.f32 %v2054_v4, %v2047_v59 }
 0x709   : > { %2359 = vmatprep.subr.mxu1 %v2059_v60 }
 0x70a   : > { %2360 = vmatpush3.msra.mxu1 %v2059_v60 }
 0x70b   : > { %2362 = vmatmul.mubr.msk.f32.vlgmr.msra.gmra.mxu1 %vm3661_vm5, %v2064_v49 }
 0x710   : > { %v2161_v31 = vpop.permute.xlu0 %2160 }
 0x713   : > { %v2166_v15 = vpop.permute.xlu1 %2165 }
 0x7cb   : > { %v2363_v57 = vpop.f32.mrf.mxu1 }
 0x7cc   : > { %2150 = vrot.lane.b32.xlu0 %v2363_v57, %s2572_s28 }
 0x7cd   : > { %v2137_v17 = vpop.f32.mrf.mxu1 }
 0x7ce   : > { %2148 = vrot.lane.b32.xlu1 %v2137_v17, %s2572_s28  ;;  %s2194_s28 = sshll.u32 %s325_s29, 4  ;;  %s3569_s28 = int_to_ptr.vmem [resolvable:$true] %s2194_s28 }
 0x7cf   : > { %s2507_s26 = scalar_lea.vmem %s3569_s28, 256  ;;  %p2514_p0 = scmp.lt.s32.totalorder %s3569_s28, %s2512_s24 }
 0x7d0   : > { %p2508_p11 = scmp.ne.s32.totalorder %s3569_s28, %s2507_s26  ;;  %p2515_p1 = scmp.lt.s32.totalorder %s2513_s27, %s2507_s26 }
 0x7d2   : > { %p2509_p12 = pnand %p2508_p11, %p2682_p5  ;;  %p2516_p2 = por %p2515_p1, %p2514_p0 }
 0x7d4   : > { %p2510_p13 = pneg %p2509_p12 }
 0x7d6   : > { %p2517_p3 = pnand %p2516_p2, %p2510_p13 }
 0x83e   : > { %v2151_v35 = vpop.permute.xlu0 %2150 }
 0x83f   : > { %v2155_v34 = vadd.f32 %v2151_v35, %v2062_v54 }
 0x840   : > { %v2149_v6 = vpop.permute.xlu1 %2148 }
 0x841   : > { %v2169_v51 = vadd.f32 %v2166_v15, %v2155_v34  ;;  %v2154_v45 = vadd.f32 %v2149_v6, %v2061_v1 }
 0x843   : > { %v2168_v28 = vadd.f32 %v2161_v31, %v2154_v45  ;;  %2174 = vrot.lane.b32.xlu0 %v2169_v51, %s2583_s17 }
 0x845   : > { %2172 = vrot.lane.b32.xlu1 %v2168_v28, %s2583_s17  ;;  %s3578_s17 = scalar_lea.sflag [#allocation8], %s323_s21 }
 0x8b5   : > { %v2175_v26 = vpop.permute.xlu0 %2174 }
 0x8b6   : > { %2179 = vst.msk [vmem:[%s325_s29 + $0x8] sm:$0xff] %vm3662_vm6, %v2175_v26 }
 0x8b7   : > { %v2173_v48 = vpop.permute.xlu1 %2172 }
 0x8b8   : > { %2178 = vst.msk [vmem:[%s325_s29] sm:$0xff] %vm3663_vm7, %v2173_v48 }
 0x8b9   : > { %2520 = shalt.err (!%p2517_p3)
}
 0x8ba   : > { %s2521_s21 = scalar_lea.hbm %s3574_s16, 256  ;;  %s2525_s22 = scalar_lea.hbm %s3627_s9, 512 }
 0x8bb   : > { %p2522_p4 = scmp.ne.s32.totalorder %s3574_s16, %s2521_s21  ;;  %p2526_p9 = scmp.lt.s32.totalorder %s3574_s16, %s3627_s9 }
 0x8bc   : > { %p2527_p10 = scmp.lt.s32.totalorder %s2525_s22, %s2521_s21 }
 0x8bd   : > { %p2523_p7 = pnand %p2522_p4, %p2682_p5 }
 0x8be   : > { %p2528_p11 = por %p2527_p10, %p2526_p9 }
 0x8bf   : > { %p2524_p8 = pneg %p2523_p7 }
 0x8c1   : > { %p2529_p12 = pnand %p2528_p11, %p2524_p8 }
 0x8c3   : > { %2532 = shalt.err (!%p2529_p12)
}
 0x8c4   : > { %s2592_s26 = smov 128   ;;  %s2593_s13 = smov 8  }
 0x8c5   : > { %2396 = dma.vmem_to_hbm [thread:$0]  (%p2682_p5), %s3569_s28, 256, %s3574_s16, %s3578_s17, %s2592_s26, %s2592_s26, %s2593_s13  }
 0x8c6 PF: > { %p2402_p13 = scmp.ge.s32.totalorder %s2567_s12, 2  ;;  %s2209_s24 = sand.u32 1, %s2555_s30  }
 0x8c7   : > { %s2210_s27 = scalar_lea.sflag [#allocation8], %s2209_s24 }
 0x8c8   : > { %p2399_p0 = pnand %p2402_p13, %p2686_p6 }
 0x8ca   : > { %p2400_p1 = pneg %p2399_p0 }
 0x8cc   : > { %2550 = dma.done.wait (%p2400_p1), %s2210_s27, 256  }
 0x8cd   : > { %2552 = vsyncadd (%p2400_p1), %s2210_s27, 4294967040  ;;  %p19_p2 = scmp.ge.s32.totalorder %s2669_s15, 4   ;;  %s3664_s30 = smov %s2559_s10 }
 0x8ce   : > { %s3665_s10 = smov %s2563_s11  ;;  %s3666_s11 = smov %s2680_s18 }
 0x8cf   : > { %s3667_s12 = smov %s2669_s15  ;;  %21 = sbr.rel (!%p19_p2) target bundleno = 3 (0x3), region = 91 }
 0x8d4   :  { %2215 = vsyncpa [#allocation8], 1 }
 0x8d5   :  { %2217 = vsyncpa [#allocation8 + $0x1], 1 }

</bundles_post_ra>
